<compile_context>
chip_gen: v7x
topology: tpu7x:2x2x1
jax: 0.10.0
libtpu: 0.0.40
codegen_flags: <defaults>
</compile_context>

<pallas_src>
import functools

import jax
import jax.numpy as jnp
from jax.experimental import pallas as pl
from jax.experimental.pallas import tpu as pltpu

NUM_GROUPS = 8
GN_EPS = 1e-5


def _midcoder_kernel(x_ref, cond_ref,
                     w1_ref, b1_ref, g1_ref, be1_ref,
                     w2_ref, b2_ref, g2_ref, be2_ref,
                     m_ref, mask_ref,
                     o_ref, *, H, W):
    l = pl.program_id(1)
    HW = H * W
    C = x_ref.shape[-1]

    # Seed the resident carry (output block, same (b,0,0) index across L)
    # with the sample's input on the first layer.
    @pl.when(l == 0)
    def _():
        o_ref[0] = x_ref[0]

    x = o_ref[0]                                   # (HW, C) layer input, f32

    def silu(v):
        return v * jax.nn.sigmoid(v)

    def conv3x3(h, w_ref, b_ref):
        # K-fused conv: 9 shifted/masked taps concatenated along K, one
        # (HW, 9C) x (9C, C) bf16 matmul with f32 accumulation on the MXU.
        # SAME padding: static sublane roll of the flattened image per tap,
        # wrap-around garbage zeroed by the precomputed (HW, 1) validity mask.
        taps = []
        for ky in range(3):
            for kx in range(3):
                tap = ky * 3 + kx
                off = (ky - 1) * W + (kx - 1)      # flat offset of this tap
                if off == 0:
                    taps.append(h)
                else:
                    src = pltpu.roll(h, shift=(-off) % HW, axis=0)
                    taps.append(src * mask_ref[tap])   # (HW,1) bcast over C
        lhs = jnp.concatenate(taps, axis=-1).astype(jnp.bfloat16)  # (HW, 9C)
        return jnp.dot(lhs, w_ref[0],
                       preferred_element_type=jnp.float32) + b_ref[0]

    def group_norm(h, g_ref, b_ref):
        # Per-sample GroupNorm(8): channel sums reduced over groups with a
        # (C, C) group-mask matrix on the MXU.  Affine folded into the
        # normalization: 2 VPU ops per element instead of 4.
        s = jnp.sum(h, axis=0, keepdims=True)              # (1, C)
        s2 = jnp.sum(h * h, axis=0, keepdims=True)         # (1, C)
        mean = jnp.dot(s, m_ref[...], preferred_element_type=jnp.float32)
        ex2 = jnp.dot(s2, m_ref[...], preferred_element_type=jnp.float32)
        var = jnp.maximum(ex2 - mean * mean, 0.0)          # clamp cancellation
        inv = jax.lax.rsqrt(var + GN_EPS)
        scale = inv * g_ref[0]                              # (1, C)
        bias = b_ref[0] - mean * scale                      # (1, C)
        return h * scale + bias

    # ---- block1: conv3x3 -> GroupNorm(8) -> SiLU ----
    h = silu(group_norm(conv3x3(x, w1_ref, b1_ref), g1_ref, be1_ref))

    # ---- time / label conditioning (precomputed host-side) ----
    h = h + cond_ref[0, 0]

    # ---- block2: conv3x3 -> GroupNorm(8) -> SiLU ----
    h = silu(group_norm(conv3x3(h, w2_ref, b2_ref), g2_ref, be2_ref))

    # ---- residual: re-read the carry instead of keeping x live ----
    o_ref[0] = (h + o_ref[0]).astype(o_ref.dtype)


def midcoder_forward(x_nchw, t_embed, y_embed, layer_params):
    """Pallas forward matching Midcoder.forward (x: NCHW)."""
    B, C, H, W = x_nchw.shape
    HW = H * W
    L = len(layer_params)
    cg = C // NUM_GROUPS
    assert C % NUM_GROUPS == 0
    assert C % 128 == 0 and HW % 8 == 0       # lane/sublane-dense blocks
    assert H >= 2 and W >= 2                  # flat-offset roll+mask validity

    # Layout conversion once for the whole stack (not per layer).
    x2d = jnp.transpose(x_nchw, (0, 2, 3, 1)).reshape(B, HW, C)

    def pack_conv(w):  # (C_out, C_in, 3, 3) -> (9*C_in, C_out), tap = ky*3+kx
        return jnp.transpose(w, (2, 3, 1, 0)).reshape(9 * C, C)

    # Per-layer params stacked with a leading L axis; conv weights in bf16.
    w1 = jnp.stack([pack_conv(p["conv1_w"]) for p in layer_params]
                   ).astype(jnp.bfloat16)                      # (L, 9C, C)
    w2 = jnp.stack([pack_conv(p["conv2_w"]) for p in layer_params]
                   ).astype(jnp.bfloat16)
    b1 = jnp.stack([p["conv1_b"].reshape(1, C) for p in layer_params])
    b2 = jnp.stack([p["conv2_b"].reshape(1, C) for p in layer_params])
    g1 = jnp.stack([p["gn1_g"].reshape(1, C) for p in layer_params])
    be1 = jnp.stack([p["gn1_b"].reshape(1, C) for p in layer_params])
    g2 = jnp.stack([p["gn2_g"].reshape(1, C) for p in layer_params])
    be2 = jnp.stack([p["gn2_b"].reshape(1, C) for p in layer_params])

    # Precompute conditioning: silu(t)@Wt + bt + silu(y)@Wy + by, (B, L, 1, C).
    st = jax.nn.silu(t_embed)
    sy = jax.nn.silu(y_embed)
    cond = jnp.stack([st @ p["time_w"].T + p["time_b"]
                      + sy @ p["y_w"].T + p["y_b"]
                      for p in layer_params], axis=1)[:, :, None, :]

    # Group-averaging matrix: M[i,j] = 1/(cg*H*W) if group(i)==group(j).
    gid = jnp.arange(C) // cg
    group_mat = (gid[:, None] == gid[None, :]).astype(jnp.float32) / float(cg * HW)

    # Per-tap validity masks for SAME padding of the flattened image.
    pos = jnp.arange(HW)
    row = pos // W
    col = pos % W
    masks = []
    for ky in range(3):
        for kx in range(3):
            dy, dx = ky - 1, kx - 1
            masks.append((row + dy >= 0) & (row + dy < H) &
                         (col + dx >= 0) & (col + dx < W))
    tap_masks = jnp.stack(masks, 0).astype(jnp.float32)[:, :, None]  # (9,HW,1)

    def lspec(shape):   # per-layer stacked operand: index (l, 0, ...)
        n = len(shape)
        return pl.BlockSpec((1,) + shape, lambda b, l, n=n: (l,) + (0,) * n)

    def cspec(shape):   # grid-constant operand
        n = len(shape)
        return pl.BlockSpec(shape, lambda b, l, n=n: (0,) * n)

    in_specs = [
        pl.BlockSpec((1, HW, C), lambda b, l: (b, 0, 0)),        # x (lane-dense)
        pl.BlockSpec((1, 1, 1, C), lambda b, l: (b, l, 0, 0)),   # conditioning
        lspec((9 * C, C)), lspec((1, C)),                        # conv1 w, b
        lspec((1, C)), lspec((1, C)),                            # gn1 g, b
        lspec((9 * C, C)), lspec((1, C)),                        # conv2 w, b
        lspec((1, C)), lspec((1, C)),                            # gn2 g, b
        cspec((C, C)),                                           # group matrix
        cspec((9, HW, 1)),                                       # tap masks
    ]
    out_specs = pl.BlockSpec((1, HW, C), lambda b, l: (b, 0, 0))

    kernel = functools.partial(_midcoder_kernel, H=H, W=W)
    out2d = pl.pallas_call(
        kernel,
        out_shape=jax.ShapeDtypeStruct((B, HW, C), jnp.float32),
        grid_spec=pltpu.PrefetchScalarGridSpec(
            num_scalar_prefetch=0,
            grid=(B, L),                       # B parallel (2 TCs on v7x),
            in_specs=in_specs,                 # L innermost / arbitrary (carry)
            out_specs=out_specs),
        compiler_params=pltpu.CompilerParams(
            dimension_semantics=("parallel", "arbitrary")),
    )(x2d, cond, w1, b1, g1, be1, w2, b2, g2, be2, group_mat, tap_masks)

    return jnp.transpose(out2d.reshape(B, H, W, C), (0, 3, 1, 2))     # NCHW


def init_layer_params(key, C, Td, Yd):
    ks = jax.random.split(key, 8)
    return {
        "conv1_w": 0.1 * jax.random.normal(ks[0], (C, C, 3, 3), jnp.float32),
        "conv1_b": 0.1 * jax.random.normal(ks[1], (C,), jnp.float32),
        "conv2_w": 0.1 * jax.random.normal(ks[2], (C, C, 3, 3), jnp.float32),
        "conv2_b": 0.1 * jax.random.normal(ks[3], (C,), jnp.float32),
        # PyTorch GroupNorm default affine init: weight=1, bias=0
        "gn1_g": jnp.ones((C,), jnp.float32),
        "gn1_b": jnp.zeros((C,), jnp.float32),
        "gn2_g": jnp.ones((C,), jnp.float32),
        "gn2_b": jnp.zeros((C,), jnp.float32),
        "time_w": 0.1 * jax.random.normal(ks[4], (C, Td), jnp.float32),
        "time_b": 0.1 * jax.random.normal(ks[5], (C,), jnp.float32),
        "y_w": 0.1 * jax.random.normal(ks[6], (C, Yd), jnp.float32),
        "y_b": 0.1 * jax.random.normal(ks[7], (C,), jnp.float32),
    }


def reference_forward(x, t, y, layer_params):
    """Pure-JAX f32 reference mirroring the PyTorch Midcoder (NCHW)."""
    def silu(v):
        return v * jax.nn.sigmoid(v)

    def conv(h, w, b):
        out = jax.lax.conv_general_dilated(
            h, w, window_strides=(1, 1), padding="SAME",
            dimension_numbers=("NCHW", "OIHW", "NCHW"))
        return out + b[None, :, None, None]

    def gn(h, gamma, beta):
        B, C, H, W = h.shape
        hg = h.reshape(B, NUM_GROUPS, C // NUM_GROUPS, H, W)
        mean = hg.mean(axis=(2, 3, 4), keepdims=True)
        var = hg.var(axis=(2, 3, 4), keepdims=True)
        hn = ((hg - mean) / jnp.sqrt(var + GN_EPS)).reshape(B, C, H, W)
        return hn * gamma[None, :, None, None] + beta[None, :, None, None]

    for p in layer_params:
        res = x
        h = silu(gn(conv(x, p["conv1_w"], p["conv1_b"]), p["gn1_g"], p["gn1_b"]))
        tv = silu(t) @ p["time_w"].T + p["time_b"]
        yv = silu(y) @ p["y_w"].T + p["y_b"]
        h = h + tv[:, :, None, None] + yv[:, :, None, None]
        h = silu(gn(conv(h, p["conv2_w"], p["conv2_b"]), p["gn2_g"], p["gn2_b"]))
        x = h + res
    return x


if __name__ == "__main__":
    # C multiple of 128 keeps every vector op / store lane-dense (and must be
    # divisible by 8 for GroupNorm(8)).
    B, C, H, W = 2, 128, 8, 8
    Td, Yd = 64, 32
    NUM_LAYERS = 2

    key = jax.random.PRNGKey(0)
    kx, kt, kyk, kp = jax.random.split(key, 4)
    x = jax.random.normal(kx, (B, C, H, W), jnp.float32)
    t_embed = jax.random.normal(kt, (B, Td), jnp.float32)
    y_embed = jax.random.normal(kyk, (B, Yd), jnp.float32)
    layer_params = [init_layer_params(k, C, Td, Yd)
                    for k in jax.random.split(kp, NUM_LAYERS)]

    fwd = jax.jit(midcoder_forward)
    out = fwd(x, t_embed, y_embed, layer_params)
    out = jax.block_until_ready(out)

    ref = reference_forward(x, t_embed, y_embed, layer_params)
    max_err = float(jnp.max(jnp.abs(out - ref)))
    assert out.shape == (B, C, H, W)
    # bf16 MXU conv matmuls (f32 accumulation) vs. pure-f32 reference:
    # observed/expected abs error is O(1e-2) at these magnitudes over 2 layers.
    assert max_err < 5e-2, f"max abs err {max_err}"

    print("KERNEL_OK")
</pallas_src>

<mosaic_0001>
module attributes {stable_mosaic.version = 11 : i64} {
  func.func @_midcoder_kernel(%arg0: i32, %arg1: i32, %arg2: memref<1x64x128xf32, #tpu.memory_space<vmem>>, %arg3: memref<1x1x1x128xf32, #tpu.memory_space<vmem>>, %arg4: memref<1x1152x128xbf16, #tpu.memory_space<vmem>>, %arg5: memref<1x1x128xf32, #tpu.memory_space<vmem>>, %arg6: memref<1x1x128xf32, #tpu.memory_space<vmem>>, %arg7: memref<1x1x128xf32, #tpu.memory_space<vmem>>, %arg8: memref<1x1152x128xbf16, #tpu.memory_space<vmem>>, %arg9: memref<1x1x128xf32, #tpu.memory_space<vmem>>, %arg10: memref<1x1x128xf32, #tpu.memory_space<vmem>>, %arg11: memref<1x1x128xf32, #tpu.memory_space<vmem>>, %arg12: memref<128x128xf32, #tpu.memory_space<vmem>>, %arg13: memref<9x64x1xf32, #tpu.memory_space<vmem>>, %arg14: memref<1x64x128xf32, #tpu.memory_space<vmem>>) attributes {dimension_semantics = [#tpu.dimension_semantics<parallel>, #tpu.dimension_semantics<arbitrary>], iteration_bounds = array<i64: 2, 2>, scalar_prefetch = 0 : i64, scratch_operands = 0 : i64, tpu.core_type = #tpu.core_type<tc>, window_params = [{transform_indices = @transform_0, window_bounds = array<i64: 1, 64, 128>}, {transform_indices = @transform_1, window_bounds = array<i64: 1, 1, 1, 128>}, {transform_indices = @transform_2, window_bounds = array<i64: 1, 1152, 128>}, {transform_indices = @transform_3, window_bounds = array<i64: 1, 1, 128>}, {transform_indices = @transform_4, window_bounds = array<i64: 1, 1, 128>}, {transform_indices = @transform_5, window_bounds = array<i64: 1, 1, 128>}, {transform_indices = @transform_6, window_bounds = array<i64: 1, 1152, 128>}, {transform_indices = @transform_7, window_bounds = array<i64: 1, 1, 128>}, {transform_indices = @transform_8, window_bounds = array<i64: 1, 1, 128>}, {transform_indices = @transform_9, window_bounds = array<i64: 1, 1, 128>}, {pipeline_mode = #tpu.pipeline_mode<synchronous>, transform_indices = @transform_10, window_bounds = array<i64: 128, 128>}, {pipeline_mode = #tpu.pipeline_mode<synchronous>, transform_indices = @transform_11, window_bounds = array<i64: 9, 64, 1>}, {transform_indices = @transform_12, window_bounds = array<i64: 1, 64, 128>}]} {
    %c0_i32 = arith.constant 0 : i32
    %0 = arith.cmpi eq, %arg1, %c0_i32 : i32
    %1 = arith.extui %0 : i1 to i32
    %c0_i32_0 = arith.constant 0 : i32
    %2 = arith.cmpi ne, %1, %c0_i32_0 : i32
    scf.if %2 {
      %c0_109 = arith.constant 0 : index
      %c0_110 = arith.constant 0 : index
      %c0_111 = arith.constant 0 : index
      %179 = vector.load %arg2[%c0_109, %c0_110, %c0_111] : memref<1x64x128xf32, #tpu.memory_space<vmem>>, vector<1x64x128xf32>
      %180 = vector.shape_cast %179 : vector<1x64x128xf32> to vector<64x128xf32>
      %c0_112 = arith.constant 0 : index
      %c0_113 = arith.constant 0 : index
      %c0_114 = arith.constant 0 : index
      %181 = vector.load %arg14[%c0_112, %c0_113, %c0_114] : memref<1x64x128xf32, #tpu.memory_space<vmem>>, vector<1x64x128xf32>
      %182 = vector.shape_cast %181 : vector<1x64x128xf32> to vector<64x128xf32>
      %183 = vector.shape_cast %180 : vector<64x128xf32> to vector<1x64x128xf32>
      tpu.vector_store %arg14[%c0_112, %c0_113, %c0_114], %183 {strides = array<i32>} : memref<1x64x128xf32, #tpu.memory_space<vmem>>, vector<1x64x128xf32>,
    } else {
    }
    %c0 = arith.constant 0 : index
    %c0_1 = arith.constant 0 : index
    %c0_2 = arith.constant 0 : index
    %3 = vector.load %arg14[%c0, %c0_1, %c0_2] : memref<1x64x128xf32, #tpu.memory_space<vmem>>, vector<1x64x128xf32>
    %4 = vector.shape_cast %3 : vector<1x64x128xf32> to vector<64x128xf32>
    %c9_i32 = arith.constant 9 : i32
    %5 = tpu.dynamic_rotate %4 by %c9_i32 dim 0 : vector<64x128xf32>, i32 -> vector<64x128xf32>
    %c0_3 = arith.constant 0 : index
    %c0_4 = arith.constant 0 : index
    %c0_5 = arith.constant 0 : index
    %6 = vector.load %arg13[%c0_3, %c0_4, %c0_5] : memref<9x64x1xf32, #tpu.memory_space<vmem>>, vector<1x64x1xf32>
    %7 = vector.shape_cast %6 : vector<1x64x1xf32> to vector<64x1xf32>
    %8 = vector.broadcast %7 : vector<64x1xf32> to vector<64x128xf32>
    %9 = arith.mulf %5, %8 : vector<64x128xf32>
    %c8_i32 = arith.constant 8 : i32
    %10 = tpu.dynamic_rotate %4 by %c8_i32 dim 0 : vector<64x128xf32>, i32 -> vector<64x128xf32>
    %c1 = arith.constant 1 : index
    %c0_6 = arith.constant 0 : index
    %c0_7 = arith.constant 0 : index
    %11 = vector.load %arg13[%c1, %c0_6, %c0_7] : memref<9x64x1xf32, #tpu.memory_space<vmem>>, vector<1x64x1xf32>
    %12 = vector.shape_cast %11 : vector<1x64x1xf32> to vector<64x1xf32>
    %13 = vector.broadcast %12 : vector<64x1xf32> to vector<64x128xf32>
    %14 = arith.mulf %10, %13 : vector<64x128xf32>
    %c7_i32 = arith.constant 7 : i32
    %15 = tpu.dynamic_rotate %4 by %c7_i32 dim 0 : vector<64x128xf32>, i32 -> vector<64x128xf32>
    %c2 = arith.constant 2 : index
    %c0_8 = arith.constant 0 : index
    %c0_9 = arith.constant 0 : index
    %16 = vector.load %arg13[%c2, %c0_8, %c0_9] : memref<9x64x1xf32, #tpu.memory_space<vmem>>, vector<1x64x1xf32>
    %17 = vector.shape_cast %16 : vector<1x64x1xf32> to vector<64x1xf32>
    %18 = vector.broadcast %17 : vector<64x1xf32> to vector<64x128xf32>
    %19 = arith.mulf %15, %18 : vector<64x128xf32>
    %c1_i32 = arith.constant 1 : i32
    %20 = tpu.dynamic_rotate %4 by %c1_i32 dim 0 : vector<64x128xf32>, i32 -> vector<64x128xf32>
    %c3 = arith.constant 3 : index
    %c0_10 = arith.constant 0 : index
    %c0_11 = arith.constant 0 : index
    %21 = vector.load %arg13[%c3, %c0_10, %c0_11] : memref<9x64x1xf32, #tpu.memory_space<vmem>>, vector<1x64x1xf32>
    %22 = vector.shape_cast %21 : vector<1x64x1xf32> to vector<64x1xf32>
    %23 = vector.broadcast %22 : vector<64x1xf32> to vector<64x128xf32>
    %24 = arith.mulf %20, %23 : vector<64x128xf32>
    %c63_i32 = arith.constant 63 : i32
    %25 = tpu.dynamic_rotate %4 by %c63_i32 dim 0 : vector<64x128xf32>, i32 -> vector<64x128xf32>
    %c5 = arith.constant 5 : index
    %c0_12 = arith.constant 0 : index
    %c0_13 = arith.constant 0 : index
    %26 = vector.load %arg13[%c5, %c0_12, %c0_13] : memref<9x64x1xf32, #tpu.memory_space<vmem>>, vector<1x64x1xf32>
    %27 = vector.shape_cast %26 : vector<1x64x1xf32> to vector<64x1xf32>
    %28 = vector.broadcast %27 : vector<64x1xf32> to vector<64x128xf32>
    %29 = arith.mulf %25, %28 : vector<64x128xf32>
    %c57_i32 = arith.constant 57 : i32
    %30 = tpu.dynamic_rotate %4 by %c57_i32 dim 0 : vector<64x128xf32>, i32 -> vector<64x128xf32>
    %c6 = arith.constant 6 : index
    %c0_14 = arith.constant 0 : index
    %c0_15 = arith.constant 0 : index
    %31 = vector.load %arg13[%c6, %c0_14, %c0_15] : memref<9x64x1xf32, #tpu.memory_space<vmem>>, vector<1x64x1xf32>
    %32 = vector.shape_cast %31 : vector<1x64x1xf32> to vector<64x1xf32>
    %33 = vector.broadcast %32 : vector<64x1xf32> to vector<64x128xf32>
    %34 = arith.mulf %30, %33 : vector<64x128xf32>
    %c56_i32 = arith.constant 56 : i32
    %35 = tpu.dynamic_rotate %4 by %c56_i32 dim 0 : vector<64x128xf32>, i32 -> vector<64x128xf32>
    %c7 = arith.constant 7 : index
    %c0_16 = arith.constant 0 : index
    %c0_17 = arith.constant 0 : index
    %36 = vector.load %arg13[%c7, %c0_16, %c0_17] : memref<9x64x1xf32, #tpu.memory_space<vmem>>, vector<1x64x1xf32>
    %37 = vector.shape_cast %36 : vector<1x64x1xf32> to vector<64x1xf32>
    %38 = vector.broadcast %37 : vector<64x1xf32> to vector<64x128xf32>
    %39 = arith.mulf %35, %38 : vector<64x128xf32>
    %c55_i32 = arith.constant 55 : i32
    %40 = tpu.dynamic_rotate %4 by %c55_i32 dim 0 : vector<64x128xf32>, i32 -> vector<64x128xf32>
    %c8 = arith.constant 8 : index
    %c0_18 = arith.constant 0 : index
    %c0_19 = arith.constant 0 : index
    %41 = vector.load %arg13[%c8, %c0_18, %c0_19] : memref<9x64x1xf32, #tpu.memory_space<vmem>>, vector<1x64x1xf32>
    %42 = vector.shape_cast %41 : vector<1x64x1xf32> to vector<64x1xf32>
    %43 = vector.broadcast %42 : vector<64x1xf32> to vector<64x128xf32>
    %44 = arith.mulf %40, %43 : vector<64x128xf32>
    %45 = tpu.concatenate %9, %14, %19, %24, %4, %29, %34, %39, %44 in 1 : vector<64x128xf32>, vector<64x128xf32>, vector<64x128xf32>, vector<64x128xf32>, vector<64x128xf32>, vector<64x128xf32>, vector<64x128xf32>, vector<64x128xf32>, vector<64x128xf32> -> vector<64x1152xf32>
    %46 = arith.truncf %45 : vector<64x1152xf32> to vector<64x1152xbf16>
    %c0_20 = arith.constant 0 : index
    %c0_21 = arith.constant 0 : index
    %c0_22 = arith.constant 0 : index
    %47 = vector.load %arg4[%c0_20, %c0_21, %c0_22] : memref<1x1152x128xbf16, #tpu.memory_space<vmem>>, vector<1x1152x128xbf16>
    %48 = vector.shape_cast %47 : vector<1x1152x128xbf16> to vector<1152x128xbf16>
    %cst = arith.constant dense<0.000000e+00> : vector<64x128xf32>
    %49 = tpu.matmul %46, %48, %cst {dimension_numbers = #tpu.dot_dimension_numbers<[1], [0], [0], [1], [0, 0, 1, 1], [], []>} : vector<64x1152xbf16>, vector<1152x128xbf16>, vector<64x128xf32> -> vector<64x128xf32>
    %c0_23 = arith.constant 0 : index
    %c0_24 = arith.constant 0 : index
    %c0_25 = arith.constant 0 : index
    %50 = vector.load %arg5[%c0_23, %c0_24, %c0_25] : memref<1x1x128xf32, #tpu.memory_space<vmem>>, vector<1x1x128xf32>
    %51 = vector.shape_cast %50 : vector<1x1x128xf32> to vector<1x128xf32>
    %52 = vector.broadcast %51 : vector<1x128xf32> to vector<64x128xf32>
    %53 = arith.addf %49, %52 : vector<64x128xf32>
    %cst_26 = arith.constant dense<0.000000e+00> : vector<128xf32>
    %54 = vector.multi_reduction <add>, %53, %cst_26 [0] : vector<64x128xf32> to vector<128xf32>
    %55 = vector.shape_cast %54 : vector<128xf32> to vector<1x128xf32>
    %56 = arith.mulf %53, %53 : vector<64x128xf32>
    %cst_27 = arith.constant dense<0.000000e+00> : vector<128xf32>
    %57 = vector.multi_reduction <add>, %56, %cst_27 [0] : vector<64x128xf32> to vector<128xf32>
    %58 = vector.shape_cast %57 : vector<128xf32> to vector<1x128xf32>
    %c0_28 = arith.constant 0 : index
    %c0_29 = arith.constant 0 : index
    %59 = vector.load %arg12[%c0_28, %c0_29] : memref<128x128xf32, #tpu.memory_space<vmem>>, vector<128x128xf32>
    %cst_30 = arith.constant dense<0.000000e+00> : vector<1x128xf32>
    %60 = tpu.matmul %55, %59, %cst_30 {dimension_numbers = #tpu.dot_dimension_numbers<[1], [0], [0], [1], [0, 0, 1, 1], [], []>} : vector<1x128xf32>, vector<128x128xf32>, vector<1x128xf32> -> vector<1x128xf32>
    %c0_31 = arith.constant 0 : index
    %c0_32 = arith.constant 0 : index
    %61 = vector.load %arg12[%c0_31, %c0_32] : memref<128x128xf32, #tpu.memory_space<vmem>>, vector<128x128xf32>
    %cst_33 = arith.constant dense<0.000000e+00> : vector<1x128xf32>
    %62 = tpu.matmul %58, %61, %cst_33 {dimension_numbers = #tpu.dot_dimension_numbers<[1], [0], [0], [1], [0, 0, 1, 1], [], []>} : vector<1x128xf32>, vector<128x128xf32>, vector<1x128xf32> -> vector<1x128xf32>
    %63 = arith.mulf %60, %60 : vector<1x128xf32>
    %64 = arith.subf %62, %63 : vector<1x128xf32>
    %cst_34 = arith.constant 0.000000e+00 : f32
    %65 = vector.broadcast %cst_34 : f32 to vector<1x128xf32>
    %66 = arith.maximumf %64, %65 : vector<1x128xf32>
    %cst_35 = arith.constant 9.99999974E-6 : f32
    %67 = vector.broadcast %cst_35 : f32 to vector<1x128xf32>
    %68 = arith.addf %66, %67 : vector<1x128xf32>
    %69 = math.rsqrt %68 : vector<1x128xf32>
    %c0_36 = arith.constant 0 : index
    %c0_37 = arith.constant 0 : index
    %c0_38 = arith.constant 0 : index
    %70 = vector.load %arg6[%c0_36, %c0_37, %c0_38] : memref<1x1x128xf32, #tpu.memory_space<vmem>>, vector<1x1x128xf32>
    %71 = vector.shape_cast %70 : vector<1x1x128xf32> to vector<1x128xf32>
    %72 = arith.mulf %69, %71 : vector<1x128xf32>
    %c0_39 = arith.constant 0 : index
    %c0_40 = arith.constant 0 : index
    %c0_41 = arith.constant 0 : index
    %73 = vector.load %arg7[%c0_39, %c0_40, %c0_41] : memref<1x1x128xf32, #tpu.memory_space<vmem>>, vector<1x1x128xf32>
    %74 = vector.shape_cast %73 : vector<1x1x128xf32> to vector<1x128xf32>
    %75 = arith.mulf %60, %72 : vector<1x128xf32>
    %76 = arith.subf %74, %75 : vector<1x128xf32>
    %77 = vector.broadcast %72 : vector<1x128xf32> to vector<64x128xf32>
    %78 = arith.mulf %53, %77 : vector<64x128xf32>
    %79 = vector.broadcast %76 : vector<1x128xf32> to vector<64x128xf32>
    %80 = arith.addf %78, %79 : vector<64x128xf32>
    %81 = arith.negf %80 : vector<64x128xf32>
    %82 = math.exp %81 : vector<64x128xf32>
    %cst_42 = arith.constant 1.000000e+00 : f32
    %83 = vector.broadcast %cst_42 : f32 to vector<64x128xf32>
    %84 = arith.addf %83, %82 : vector<64x128xf32>
    %85 = arith.divf %83, %84 : vector<64x128xf32>
    %86 = arith.mulf %80, %85 : vector<64x128xf32>
    %c0_43 = arith.constant 0 : index
    %c0_44 = arith.constant 0 : index
    %c0_45 = arith.constant 0 : index
    %c0_46 = arith.constant 0 : index
    %87 = vector.load %arg3[%c0_43, %c0_44, %c0_45, %c0_46] : memref<1x1x1x128xf32, #tpu.memory_space<vmem>>, vector<1x1x1x128xf32>
    %88 = vector.shape_cast %87 : vector<1x1x1x128xf32> to vector<1x128xf32>
    %89 = vector.broadcast %88 : vector<1x128xf32> to vector<64x128xf32>
    %90 = arith.addf %86, %89 : vector<64x128xf32>
    %c9_i32_47 = arith.constant 9 : i32
    %91 = tpu.dynamic_rotate %90 by %c9_i32_47 dim 0 : vector<64x128xf32>, i32 -> vector<64x128xf32>
    %c0_48 = arith.constant 0 : index
    %c0_49 = arith.constant 0 : index
    %c0_50 = arith.constant 0 : index
    %92 = vector.load %arg13[%c0_48, %c0_49, %c0_50] : memref<9x64x1xf32, #tpu.memory_space<vmem>>, vector<1x64x1xf32>
    %93 = vector.shape_cast %92 : vector<1x64x1xf32> to vector<64x1xf32>
    %94 = vector.broadcast %93 : vector<64x1xf32> to vector<64x128xf32>
    %95 = arith.mulf %91, %94 : vector<64x128xf32>
    %c8_i32_51 = arith.constant 8 : i32
    %96 = tpu.dynamic_rotate %90 by %c8_i32_51 dim 0 : vector<64x128xf32>, i32 -> vector<64x128xf32>
    %c1_52 = arith.constant 1 : index
    %c0_53 = arith.constant 0 : index
    %c0_54 = arith.constant 0 : index
    %97 = vector.load %arg13[%c1_52, %c0_53, %c0_54] : memref<9x64x1xf32, #tpu.memory_space<vmem>>, vector<1x64x1xf32>
    %98 = vector.shape_cast %97 : vector<1x64x1xf32> to vector<64x1xf32>
    %99 = vector.broadcast %98 : vector<64x1xf32> to vector<64x128xf32>
    %100 = arith.mulf %96, %99 : vector<64x128xf32>
    %c7_i32_55 = arith.constant 7 : i32
    %101 = tpu.dynamic_rotate %90 by %c7_i32_55 dim 0 : vector<64x128xf32>, i32 -> vector<64x128xf32>
    %c2_56 = arith.constant 2 : index
    %c0_57 = arith.constant 0 : index
    %c0_58 = arith.constant 0 : index
    %102 = vector.load %arg13[%c2_56, %c0_57, %c0_58] : memref<9x64x1xf32, #tpu.memory_space<vmem>>, vector<1x64x1xf32>
    %103 = vector.shape_cast %102 : vector<1x64x1xf32> to vector<64x1xf32>
    %104 = vector.broadcast %103 : vector<64x1xf32> to vector<64x128xf32>
    %105 = arith.mulf %101, %104 : vector<64x128xf32>
    %c1_i32_59 = arith.constant 1 : i32
    %106 = tpu.dynamic_rotate %90 by %c1_i32_59 dim 0 : vector<64x128xf32>, i32 -> vector<64x128xf32>
    %c3_60 = arith.constant 3 : index
    %c0_61 = arith.constant 0 : index
    %c0_62 = arith.constant 0 : index
    %107 = vector.load %arg13[%c3_60, %c0_61, %c0_62] : memref<9x64x1xf32, #tpu.memory_space<vmem>>, vector<1x64x1xf32>
    %108 = vector.shape_cast %107 : vector<1x64x1xf32> to vector<64x1xf32>
    %109 = vector.broadcast %108 : vector<64x1xf32> to vector<64x128xf32>
    %110 = arith.mulf %106, %109 : vector<64x128xf32>
    %c63_i32_63 = arith.constant 63 : i32
    %111 = tpu.dynamic_rotate %90 by %c63_i32_63 dim 0 : vector<64x128xf32>, i32 -> vector<64x128xf32>
    %c5_64 = arith.constant 5 : index
    %c0_65 = arith.constant 0 : index
    %c0_66 = arith.constant 0 : index
    %112 = vector.load %arg13[%c5_64, %c0_65, %c0_66] : memref<9x64x1xf32, #tpu.memory_space<vmem>>, vector<1x64x1xf32>
    %113 = vector.shape_cast %112 : vector<1x64x1xf32> to vector<64x1xf32>
    %114 = vector.broadcast %113 : vector<64x1xf32> to vector<64x128xf32>
    %115 = arith.mulf %111, %114 : vector<64x128xf32>
    %c57_i32_67 = arith.constant 57 : i32
    %116 = tpu.dynamic_rotate %90 by %c57_i32_67 dim 0 : vector<64x128xf32>, i32 -> vector<64x128xf32>
    %c6_68 = arith.constant 6 : index
    %c0_69 = arith.constant 0 : index
    %c0_70 = arith.constant 0 : index
    %117 = vector.load %arg13[%c6_68, %c0_69, %c0_70] : memref<9x64x1xf32, #tpu.memory_space<vmem>>, vector<1x64x1xf32>
    %118 = vector.shape_cast %117 : vector<1x64x1xf32> to vector<64x1xf32>
    %119 = vector.broadcast %118 : vector<64x1xf32> to vector<64x128xf32>
    %120 = arith.mulf %116, %119 : vector<64x128xf32>
    %c56_i32_71 = arith.constant 56 : i32
    %121 = tpu.dynamic_rotate %90 by %c56_i32_71 dim 0 : vector<64x128xf32>, i32 -> vector<64x128xf32>
    %c7_72 = arith.constant 7 : index
    %c0_73 = arith.constant 0 : index
    %c0_74 = arith.constant 0 : index
    %122 = vector.load %arg13[%c7_72, %c0_73, %c0_74] : memref<9x64x1xf32, #tpu.memory_space<vmem>>, vector<1x64x1xf32>
    %123 = vector.shape_cast %122 : vector<1x64x1xf32> to vector<64x1xf32>
    %124 = vector.broadcast %123 : vector<64x1xf32> to vector<64x128xf32>
    %125 = arith.mulf %121, %124 : vector<64x128xf32>
    %c55_i32_75 = arith.constant 55 : i32
    %126 = tpu.dynamic_rotate %90 by %c55_i32_75 dim 0 : vector<64x128xf32>, i32 -> vector<64x128xf32>
    %c8_76 = arith.constant 8 : index
    %c0_77 = arith.constant 0 : index
    %c0_78 = arith.constant 0 : index
    %127 = vector.load %arg13[%c8_76, %c0_77, %c0_78] : memref<9x64x1xf32, #tpu.memory_space<vmem>>, vector<1x64x1xf32>
    %128 = vector.shape_cast %127 : vector<1x64x1xf32> to vector<64x1xf32>
    %129 = vector.broadcast %128 : vector<64x1xf32> to vector<64x128xf32>
    %130 = arith.mulf %126, %129 : vector<64x128xf32>
    %131 = tpu.concatenate %95, %100, %105, %110, %90, %115, %120, %125, %130 in 1 : vector<64x128xf32>, vector<64x128xf32>, vector<64x128xf32>, vector<64x128xf32>, vector<64x128xf32>, vector<64x128xf32>, vector<64x128xf32>, vector<64x128xf32>, vector<64x128xf32> -> vector<64x1152xf32>
    %132 = arith.truncf %131 : vector<64x1152xf32> to vector<64x1152xbf16>
    %c0_79 = arith.constant 0 : index
    %c0_80 = arith.constant 0 : index
    %c0_81 = arith.constant 0 : index
    %133 = vector.load %arg8[%c0_79, %c0_80, %c0_81] : memref<1x1152x128xbf16, #tpu.memory_space<vmem>>, vector<1x1152x128xbf16>
    %134 = vector.shape_cast %133 : vector<1x1152x128xbf16> to vector<1152x128xbf16>
    %cst_82 = arith.constant dense<0.000000e+00> : vector<64x128xf32>
    %135 = tpu.matmul %132, %134, %cst_82 {dimension_numbers = #tpu.dot_dimension_numbers<[1], [0], [0], [1], [0, 0, 1, 1], [], []>} : vector<64x1152xbf16>, vector<1152x128xbf16>, vector<64x128xf32> -> vector<64x128xf32>
    %c0_83 = arith.constant 0 : index
    %c0_84 = arith.constant 0 : index
    %c0_85 = arith.constant 0 : index
    %136 = vector.load %arg9[%c0_83, %c0_84, %c0_85] : memref<1x1x128xf32, #tpu.memory_space<vmem>>, vector<1x1x128xf32>
    %137 = vector.shape_cast %136 : vector<1x1x128xf32> to vector<1x128xf32>
    %138 = vector.broadcast %137 : vector<1x128xf32> to vector<64x128xf32>
    %139 = arith.addf %135, %138 : vector<64x128xf32>
    %cst_86 = arith.constant dense<0.000000e+00> : vector<128xf32>
    %140 = vector.multi_reduction <add>, %139, %cst_86 [0] : vector<64x128xf32> to vector<128xf32>
    %141 = vector.shape_cast %140 : vector<128xf32> to vector<1x128xf32>
    %142 = arith.mulf %139, %139 : vector<64x128xf32>
    %cst_87 = arith.constant dense<0.000000e+00> : vector<128xf32>
    %143 = vector.multi_reduction <add>, %142, %cst_87 [0] : vector<64x128xf32> to vector<128xf32>
    %144 = vector.shape_cast %143 : vector<128xf32> to vector<1x128xf32>
    %c0_88 = arith.constant 0 : index
    %c0_89 = arith.constant 0 : index
    %145 = vector.load %arg12[%c0_88, %c0_89] : memref<128x128xf32, #tpu.memory_space<vmem>>, vector<128x128xf32>
    %cst_90 = arith.constant dense<0.000000e+00> : vector<1x128xf32>
    %146 = tpu.matmul %141, %145, %cst_90 {dimension_numbers = #tpu.dot_dimension_numbers<[1], [0], [0], [1], [0, 0, 1, 1], [], []>} : vector<1x128xf32>, vector<128x128xf32>, vector<1x128xf32> -> vector<1x128xf32>
    %c0_91 = arith.constant 0 : index
    %c0_92 = arith.constant 0 : index
    %147 = vector.load %arg12[%c0_91, %c0_92] : memref<128x128xf32, #tpu.memory_space<vmem>>, vector<128x128xf32>
    %cst_93 = arith.constant dense<0.000000e+00> : vector<1x128xf32>
    %148 = tpu.matmul %144, %147, %cst_93 {dimension_numbers = #tpu.dot_dimension_numbers<[1], [0], [0], [1], [0, 0, 1, 1], [], []>} : vector<1x128xf32>, vector<128x128xf32>, vector<1x128xf32> -> vector<1x128xf32>
    %149 = arith.mulf %146, %146 : vector<1x128xf32>
    %150 = arith.subf %148, %149 : vector<1x128xf32>
    %cst_94 = arith.constant 0.000000e+00 : f32
    %151 = vector.broadcast %cst_94 : f32 to vector<1x128xf32>
    %152 = arith.maximumf %150, %151 : vector<1x128xf32>
    %cst_95 = arith.constant 9.99999974E-6 : f32
    %153 = vector.broadcast %cst_95 : f32 to vector<1x128xf32>
    %154 = arith.addf %152, %153 : vector<1x128xf32>
    %155 = math.rsqrt %154 : vector<1x128xf32>
    %c0_96 = arith.constant 0 : index
    %c0_97 = arith.constant 0 : index
    %c0_98 = arith.constant 0 : index
    %156 = vector.load %arg10[%c0_96, %c0_97, %c0_98] : memref<1x1x128xf32, #tpu.memory_space<vmem>>, vector<1x1x128xf32>
    %157 = vector.shape_cast %156 : vector<1x1x128xf32> to vector<1x128xf32>
    %158 = arith.mulf %155, %157 : vector<1x128xf32>
    %c0_99 = arith.constant 0 : index
    %c0_100 = arith.constant 0 : index
    %c0_101 = arith.constant 0 : index
    %159 = vector.load %arg11[%c0_99, %c0_100, %c0_101] : memref<1x1x128xf32, #tpu.memory_space<vmem>>, vector<1x1x128xf32>
    %160 = vector.shape_cast %159 : vector<1x1x128xf32> to vector<1x128xf32>
    %161 = arith.mulf %146, %158 : vector<1x128xf32>
    %162 = arith.subf %160, %161 : vector<1x128xf32>
    %163 = vector.broadcast %158 : vector<1x128xf32> to vector<64x128xf32>
    %164 = arith.mulf %139, %163 : vector<64x128xf32>
    %165 = vector.broadcast %162 : vector<1x128xf32> to vector<64x128xf32>
    %166 = arith.addf %164, %165 : vector<64x128xf32>
    %167 = arith.negf %166 : vector<64x128xf32>
    %168 = math.exp %167 : vector<64x128xf32>
    %cst_102 = arith.constant 1.000000e+00 : f32
    %169 = vector.broadcast %cst_102 : f32 to vector<64x128xf32>
    %170 = arith.addf %169, %168 : vector<64x128xf32>
    %171 = arith.divf %169, %170 : vector<64x128xf32>
    %172 = arith.mulf %166, %171 : vector<64x128xf32>
    %c0_103 = arith.constant 0 : index
    %c0_104 = arith.constant 0 : index
    %c0_105 = arith.constant 0 : index
    %173 = vector.load %arg14[%c0_103, %c0_104, %c0_105] : memref<1x64x128xf32, #tpu.memory_space<vmem>>, vector<1x64x128xf32>
    %174 = vector.shape_cast %173 : vector<1x64x128xf32> to vector<64x128xf32>
    %175 = arith.addf %172, %174 : vector<64x128xf32>
    %c0_106 = arith.constant 0 : index
    %c0_107 = arith.constant 0 : index
    %c0_108 = arith.constant 0 : index
    %176 = vector.load %arg14[%c0_106, %c0_107, %c0_108] : memref<1x64x128xf32, #tpu.memory_space<vmem>>, vector<1x64x128xf32>
    %177 = vector.shape_cast %176 : vector<1x64x128xf32> to vector<64x128xf32>
    %178 = vector.shape_cast %175 : vector<64x128xf32> to vector<1x64x128xf32>
    tpu.vector_store %arg14[%c0_106, %c0_107, %c0_108], %178 {strides = array<i32>} : memref<1x64x128xf32, #tpu.memory_space<vmem>>, vector<1x64x128xf32>,
    return
  }
  func.func @transform_0(%arg0: i32, %arg1: i32) -> (i32, i32, i32) {
    %c0_i32 = arith.constant 0 : i32
    %c0_i32_0 = arith.constant 0 : i32
    %c0_i32_1 = arith.constant 0 : i32
    return %arg0, %c0_i32, %c0_i32_0 : i32, i32, i32
  }
  func.func @transform_1(%arg0: i32, %arg1: i32) -> (i32, i32, i32, i32) {
    %c0_i32 = arith.constant 0 : i32
    %c0_i32_0 = arith.constant 0 : i32
    %c0_i32_1 = arith.constant 0 : i32
    return %arg0, %arg1, %c0_i32, %c0_i32_0 : i32, i32, i32, i32
  }
  func.func @transform_2(%arg0: i32, %arg1: i32) -> (i32, i32, i32) {
    %c0_i32 = arith.constant 0 : i32
    %c0_i32_0 = arith.constant 0 : i32
    %c0_i32_1 = arith.constant 0 : i32
    return %arg1, %c0_i32, %c0_i32_0 : i32, i32, i32
  }
  func.func @transform_3(%arg0: i32, %arg1: i32) -> (i32, i32, i32) {
    %c0_i32 = arith.constant 0 : i32
    %c0_i32_0 = arith.constant 0 : i32
    %c0_i32_1 = arith.constant 0 : i32
    return %arg1, %c0_i32, %c0_i32_0 : i32, i32, i32
  }
  func.func @transform_4(%arg0: i32, %arg1: i32) -> (i32, i32, i32) {
    %c0_i32 = arith.constant 0 : i32
    %c0_i32_0 = arith.constant 0 : i32
    %c0_i32_1 = arith.constant 0 : i32
    return %arg1, %c0_i32, %c0_i32_0 : i32, i32, i32
  }
  func.func @transform_5(%arg0: i32, %arg1: i32) -> (i32, i32, i32) {
    %c0_i32 = arith.constant 0 : i32
    %c0_i32_0 = arith.constant 0 : i32
    %c0_i32_1 = arith.constant 0 : i32
    return %arg1, %c0_i32, %c0_i32_0 : i32, i32, i32
  }
  func.func @transform_6(%arg0: i32, %arg1: i32) -> (i32, i32, i32) {
    %c0_i32 = arith.constant 0 : i32
    %c0_i32_0 = arith.constant 0 : i32
    %c0_i32_1 = arith.constant 0 : i32
    return %arg1, %c0_i32, %c0_i32_0 : i32, i32, i32
  }
  func.func @transform_7(%arg0: i32, %arg1: i32) -> (i32, i32, i32) {
    %c0_i32 = arith.constant 0 : i32
    %c0_i32_0 = arith.constant 0 : i32
    %c0_i32_1 = arith.constant 0 : i32
    return %arg1, %c0_i32, %c0_i32_0 : i32, i32, i32
  }
  func.func @transform_8(%arg0: i32, %arg1: i32) -> (i32, i32, i32) {
    %c0_i32 = arith.constant 0 : i32
    %c0_i32_0 = arith.constant 0 : i32
    %c0_i32_1 = arith.constant 0 : i32
    return %arg1, %c0_i32, %c0_i32_0 : i32, i32, i32
  }
  func.func @transform_9(%arg0: i32, %arg1: i32) -> (i32, i32, i32) {
    %c0_i32 = arith.constant 0 : i32
    %c0_i32_0 = arith.constant 0 : i32
    %c0_i32_1 = arith.constant 0 : i32
    return %arg1, %c0_i32, %c0_i32_0 : i32, i32, i32
  }
  func.func @transform_10(%arg0: i32, %arg1: i32) -> (i32, i32) {
    %c0_i32 = arith.constant 0 : i32
    %c0_i32_0 = arith.constant 0 : i32
    %c0_i32_1 = arith.constant 0 : i32
    return %c0_i32, %c0_i32_0 : i32, i32
  }
  func.func @transform_11(%arg0: i32, %arg1: i32) -> (i32, i32, i32) {
    %c0_i32 = arith.constant 0 : i32
    %c0_i32_0 = arith.constant 0 : i32
    %c0_i32_1 = arith.constant 0 : i32
    %c0_i32_2 = arith.constant 0 : i32
    return %c0_i32, %c0_i32_0, %c0_i32_1 : i32, i32, i32
  }
  func.func @transform_12(%arg0: i32, %arg1: i32) -> (i32, i32, i32) {
    %c0_i32 = arith.constant 0 : i32
    %c0_i32_0 = arith.constant 0 : i32
    %c0_i32_1 = arith.constant 0 : i32
    return %arg0, %c0_i32, %c0_i32_0 : i32, i32, i32
  }
}

</mosaic_0001>

<bundles_post_ra>
// kernel: midcoder_forward.1
= control target key start
LH: loop header
LB: loop body
LE: loop exit
PB: predicated region body
PF: predicated region fallthrough
CT: control target
= control target key end

     0   :  { %s6794_s0 = inlined_call_operand.vmem [shape: f32[2,64,128], index: 0, kind: input, shape index: {}]   ;;  %s6795_s1 = inlined_call_operand.vmem [shape: f32[2,2,1,128], index: 1, kind: input, shape index: {}]   ;;  %s6796_s2 = inlined_call_operand.vmem [shape: bf16[2,1152,128], index: 2, kind: input, shape index: {}]   ;;  %s6797_s3 = inlined_call_operand.vmem [shape: f32[2,1,128], index: 3, kind: input, shape index: {}]   ;;  %s6798_s4 = inlined_call_operand.vmem [shape: f32[2,1,128], index: 4, kind: input, shape index: {}]   ;;  %s6799_s5 = inlined_call_operand.vmem [shape: f32[2,1,128], index: 5, kind: input, shape index: {}]   ;;  %s6800_s6 = inlined_call_operand.vmem [shape: bf16[2,1152,128], index: 6, kind: input, shape index: {}]   ;;  %s6801_s7 = inlined_call_operand.vmem [shape: f32[2,1,128], index: 7, kind: input, shape index: {}]   ;;  %s6802_s8 = inlined_call_operand.vmem [shape: f32[2,1,128], index: 8, kind: input, shape index: {}]   ;;  %s6803_s9 = inlined_call_operand.vmem [shape: f32[2,1,128], index: 9, kind: input, shape index: {}]   ;;  %s6804_s10 = inlined_call_operand.vmem [shape: f32[128,128], index: 10, kind: input, shape index: {}]   ;;  %s6805_s11 = inlined_call_operand.vmem [shape: f32[9,64,1], index: 11, kind: input, shape index: {}]   ;;  %s6806_s12 = inlined_call_operand.hbm [shape: f32[2,64,128], index: 12, kind: output, shape index: {}]  }
   0x1   :  { %6878 = sst [smem:[#allocation59_spill]] %s6794_s0 }
   0x2   :  { %6879 = sst [smem:[#allocation60_spill]] %s6796_s2 }
   0x3   :  { %6880 = sst [smem:[#allocation61_spill]] %s6804_s10 }
   0x4   :  { %6881 = sst [smem:[#allocation62_spill]] %s6805_s11 }
   0x5   :  { %6882 = sst [smem:[#allocation63_spill]] %s6806_s12 }
   0x6   :  { %17 = vsyncpa [#allocation3], 0 }
   0x7   :  { %19 = vsyncpa [#allocation3 + $0x1], 0  ;;  %s5241_s21 = smov 0   ;;  %s5243_s22 = smov 0  }
   0x8   :  { %s5245_s23 = smov 0   ;;  %s5247_s24 = smov 0  }
   0x9   :  { %s5249_s25 = smov 0   ;;  %s5251_s26 = smov 0  }
   0xa   :  { %s5253_s27 = smov 0   ;;  %s5255_s28 = smov 0  }
   0xb LB: > { %6883 = sst [smem:[#allocation5_spill]] %s5139_s21  ;;  %s3839_s29 = sadd.s32 4294967295, %s5167_s28   ;;  %s5167_s28 = sphi %s5255_s28, %s25_s28   ;;  %s5163_s27 = sphi %s5253_s27, %s7006_s27   ;;  %s5159_s26 = sphi %s5251_s26, %s7005_s26   ;;  %s5155_s25 = sphi %s5249_s25, %s7004_s25   ;;  %s5151_s24 = sphi %s5247_s24, %s7003_s24   ;;  %s5147_s23 = sphi %s5245_s23, %s7002_s23   ;;  %s5143_s22 = sphi %s5243_s22, %s7001_s22   ;;  %s5139_s21 = sphi %s5241_s21, %s7000_s21  }
   0xc   : > { %6884 = sst [smem:[#allocation6_spill]] %s5143_s22  ;;  %s3840_s30 = sadd.s32 4294967294, %s5167_s28  }
   0xd   : > { %6885 = sst [smem:[#allocation7_spill]] %s5147_s23  ;;  %s34_s13 = sadd.s32 1, %s5159_s26 }
   0xe   : > { %6886 = sst [smem:[#allocation8_spill]] %s5155_s25  ;;  %p35_p0 = scmp.ge.s32.totalorder %s34_s13, 2 }
   0xf   : > { %6887 = sst [smem:[#allocation9_spill]] %s5159_s26  ;;  %s37_s14 = sadd.s32 1, %s5163_s27 }
  0x10   : > { %6888 = sst [smem:[#allocation10_spill]] %s5163_s27  ;;  %p358_p1 = scmp.ne.s32.totalorder %s5147_s23, %s5143_s22 }
  0x11   : > { %6889 = sst [smem:[#allocation11_spill]] %s5167_s28  ;;  %p359_p2 = scmp.eq.s32.totalorder %s3839_s29, 3 }
  0x12   : > { %s7008_s13 = smov (%p35_p0, %s34_s13), 0  ;;  %s7010_s14 = smov (!%p35_p0, %s37_s14), %s5163_s27 }
  0x13   : > { %6890 = sst [smem:[#allocation12_spill]] %s7008_s13  ;;  %p5290_p3 = por %p359_p2, %p358_p1 }
  0x14   : > { %p364_p4 = scmp.ne.s32.totalorder %s5143_s22, %s5139_s21  ;;  %p39_p5 = scmp.ge.s32.totalorder %s7010_s14, 2 }
  0x15   : > { %s6891_s15 = scalar_select %p5290_p3, 1, 0 }
  0x16   : > { %p365_p6 = scmp.eq.s32.totalorder %s3840_s30, 3  ;;  %p3843_p7 = scmp.ge.s32.totalorder %s5167_s28, 1 }
  0x17   : > { %6892 = sst [smem:[#allocation13_spill]] %s6891_s15  ;;  %p459_p8 = scmp.lt.s32.totalorder %s5167_s28, 5 }
  0x18   : > { %s7012_s14 = smov (%p39_p5, %s7010_s14), 0  ;;  %p5300_p9 = por %p365_p6, %p364_p4 }
  0x19   : > { %6893 = sst [smem:[#allocation14_spill]] %s7012_s14  ;;  %p460_p10 = pnand %p3843_p7, %p459_p8 }
  0x1a   : > { %s6894_s16 = scalar_select %p5300_p9, 1, 0 }
  0x1b   : > { %s345_s17 = ssub.s32 %s5163_s27, %s7012_s14  ;;  %s348_s18 = sadd.s32 1, %s5147_s23 }
  0x1c   : > { %6895 = sst [smem:[#allocation15_spill]] %s6894_s16  ;;  %p346_p11 = scmp.eq.s32.totalorder %s345_s17, 0 }
  0x1d   : > { %463 = sbr.rel (%p460_p10) target bundleno = 1435 (0x59b), region = 68 }
  0x1e   : > { %s5308_s19 = scalar_select %p346_p11, %s5147_s23, %s348_s18  }
  0x20   : > { %6896 = sst [smem:[#allocation16_spill]] %s5308_s19 }
  0x24   : > { %s6810_s20 = sand.u32 1, %s5143_s22   ;;  %p536_p12 = scmp.lt.s32.totalorder %s5155_s25, 1 }
  0x25   : > { %s3844_s29 = sshll.u32 %s6810_s20, 6  ;;  %p543_p13 = scmp.lt.s32.totalorder %s5151_s24, 1 }
  0x26   : > { %s537_s30 = scalar_select %p536_p12, %s5155_s25, 1 }
  0x27   : > { %s5317_s13 = scalar_select %p543_p13, %s5151_s24, 1 }
  0x28   : > { %s4075_s17 = sshll.u32 %s537_s30, 6  ;;  %s3847_s18 = sshll.u32 %s537_s30, 1 }
  0x29   : > { %s6897_s0 = sld [smem:[#allocation59_spill]]  ;;  %s5323_s19 = sadd.s32 %s3847_s18, %s5317_s13 }
  0x2a   : > { %s4773_s21 = smul.u32 576, %s5317_s13  ;;  %s6898_s2 = sld [smem:[#allocation60_spill]] }
  0x2b   : > { %s561_s18 = scalar_lea.vmem %s6799_s5, %s5317_s13  ;;  %s569_s15 = scalar_lea.vmem %s6801_s7, %s5317_s13 }
  0x2c   : > { %s5350_s16 = scalar_lea.vmem %s6800_s6, %s4773_s21  ;;  %s572_s30 = scalar_lea.vmem %s6802_s8, %s5317_s13 }
  0x2d   : > { %p3850_p0 = scmp.ne.s32.totalorder %s5151_s24, 0 }
  0x2f   : > { %s540_s26 = scalar_lea.vmem %s6897_s0, %s4075_s17  ;;  %s575_s0 = scalar_lea.vmem %s6803_s9, %s5317_s13 }
  0x30   : > { %s5341_s27 = scalar_lea.vmem %s6898_s2, %s4773_s21  ;;  %s5364_s2 = scalar_lea.vmem [#allocation2], %s3844_s29  ;;  %v581_v0 = vld [vmem:[%s540_s26] sm:$0xff] (!%p3850_p0)  ;;  %v582_v1 = vld [vmem:[%s540_s26 + $0x8] sm:$0xff] (!%p3850_p0)  ;;  %v583_v2 = vld [vmem:[%s540_s26 + $0x10] sm:$0xff] (!%p3850_p0) }
  0x31   : > { %580 = sbr.rel (%p3850_p0) target bundleno = 56 (0x38), region = 72  ;;  %589 = vst [vmem:[%s5364_s2] sm:$0xff] (!%p3850_p0), %v581_v0  ;;  %590 = vst [vmem:[%s5364_s2 + $0x8] sm:$0xff] (!%p3850_p0), %v582_v1  ;;  %v584_v3 = vld [vmem:[%s540_s26 + $0x18] sm:$0xff] (!%p3850_p0)  ;;  %v585_v4 = vld [vmem:[%s540_s26 + $0x20] sm:$0xff] (!%p3850_p0) }
  0x32   : > { %591 = vst [vmem:[%s5364_s2 + $0x10] sm:$0xff] (!%p3850_p0), %v583_v2  ;;  %v586_v5 = vld [vmem:[%s540_s26 + $0x28] sm:$0xff] (!%p3850_p0)  ;;  %592 = vst [vmem:[%s5364_s2 + $0x18] sm:$0xff] (!%p3850_p0), %v584_v3  ;;  %v587_v6 = vld [vmem:[%s540_s26 + $0x30] sm:$0xff] (!%p3850_p0) }
  0x33   : > { %593 = vst [vmem:[%s5364_s2 + $0x20] sm:$0xff] (!%p3850_p0), %v585_v4  ;;  %594 = vst [vmem:[%s5364_s2 + $0x28] sm:$0xff] (!%p3850_p0), %v586_v5  ;;  %v588_v7 = vld [vmem:[%s540_s26 + $0x38] sm:$0xff] (!%p3850_p0) }
  0x34   : > { %595 = vst [vmem:[%s5364_s2 + $0x30] sm:$0xff] (!%p3850_p0), %v587_v6  ;;  %596 = vst [vmem:[%s5364_s2 + $0x38] sm:$0xff] (!%p3850_p0), %v588_v7 }
  0x38 PF: > { %s6899_s29 = sld [smem:[#allocation62_spill]]  ;;  %v5169_v10 = vmov 0   ;;  %v4853_v21 = vld [vmem:[%s5341_s27 + $0x40] sm:$0xff]   ;;  %v4855_v23 = vld [vmem:[%s5341_s27 + $0x48] sm:$0xff]   ;;  %v4857_v27 = vld [vmem:[%s5341_s27 + $0x50] sm:$0xff]   ;;  %s6935_s11 = sld [smem:[#allocation61_spill]] }
  0x39   : > { %4852 = vset.pattern.permute.xlu1 %v5169_v10  ;;  %4851 = vset.pattern.permute.xlu0 %v5169_v10  ;;  %v4854_v22 = vld [vmem:[%s5341_s27] sm:$0xff]   ;;  %v4856_v25 = vld [vmem:[%s5341_s27 + $0x8] sm:$0xff]   ;;  %v4858_v29 = vld [vmem:[%s5341_s27 + $0x10] sm:$0xff]   ;;  %vm5171_vm2 = vmmov 0   ;;  %s6944_s26 = scalar_lea.vmem %s6797_s3, %s5317_s13  ;;  %s6945_s22 = scalar_lea.vmem %s6798_s4, %s5317_s13 }
  0x3a   : > { %4077 = vmatprep.subr.bf16.mxu0 %v4853_v21  ;;  %v4859_v31 = vld [vmem:[%s5341_s27 + $0x58] sm:$0xff]   ;;  %v4861_v35 = vld [vmem:[%s5341_s27 + $0x60] sm:$0xff]   ;;  %v4863_v39 = vld [vmem:[%s5341_s27 + $0x68] sm:$0xff]   ;;  %s6946_s21 = scalar_lea.vmem %s6795_s1, %s5323_s19  ;;  %s6992_s23 = sld [smem:[#allocation6_spill]] }
  0x3b   : > { %4078 = vmatpush3.bf16.msra.mxu0 %v4854_v22  ;;  %v4860_v32 = vld [vmem:[%s5341_s27 + $0x18] sm:$0xff]   ;;  %v4862_v38 = vld [vmem:[%s5341_s27 + $0x20] sm:$0xff]   ;;  %v4864_v41 = vld [vmem:[%s5341_s27 + $0x28] sm:$0xff]   ;;  %s6994_s28 = sld [smem:[#allocation63_spill]] }
  0x3c   : > { %4079 = vmatprep.subr.bf16.mxu0 %v4855_v23  ;;  %v4865_v40 = vld [vmem:[%s5341_s27 + $0xc0] sm:$0xff]   ;;  %v4866_v45 = vld [vmem:[%s5341_s27 + $0x70] sm:$0xff]   ;;  %v4869_v46 = vld [vmem:[%s5341_s27 + $0xc8] sm:$0xff]  }
  0x3d   : > { %4117 = vmatprep.subr.bf16.mxu1 %v4865_v40  ;;  %v4867_v43 = vld [vmem:[%s5341_s27 + $0x80] sm:$0xff]   ;;  %v4868_v47 = vld [vmem:[%s5341_s27 + $0x30] sm:$0xff]   ;;  %v4871_v49 = vld [vmem:[%s5341_s27 + $0x88] sm:$0xff]  }
  0x3e   : > { %v3851_v8 = vld [vmem:[%s6899_s29 + $0x40] sm:$0xff]  ;;  %v3852_v11 = vld [vmem:[%s6899_s29 + $0x48] sm:$0xff]  ;;  %v3853_v13 = vld [vmem:[%s6899_s29 + $0x50] sm:$0xff]  ;;  %4118 = vmatpush3.bf16.msra.mxu1 %v4867_v43 }
  0x3f   : > { %v624_v9 = vld [vmem:[%s6899_s29] sm:$0xff]  ;;  %691 = vperm.xlu0 %4851, %v3851_v8   ;;  %v625_v12 = vld [vmem:[%s6899_s29 + $0x8] sm:$0xff]  ;;  %v3854_v14 = vld [vmem:[%s6899_s29 + $0x58] sm:$0xff]  ;;  %4080 = vmatpush3.bf16.msra.mxu0 %v4856_v25  ;;  %v613_v25 = vlaneseq }
  0x40   : > { %634 = vperm.xlu1 %4852, %v624_v9   ;;  %v626_v15 = vld [vmem:[%s6899_s29 + $0x10] sm:$0xff]  ;;  %v627_v16 = vld [vmem:[%s6899_s29 + $0x18] sm:$0xff]  ;;  %v3855_v17 = vld [vmem:[%s6899_s29 + $0x60] sm:$0xff]  ;;  %4081 = vmatprep.subr.bf16.mxu0 %v4857_v27  ;;  %s6996_s25 = sand.u32 1, %s6992_s23  }
  0x41   : > { %v3856_v18 = vld [vmem:[%s6899_s29 + $0x68] sm:$0xff]  ;;  %v3867_v19 = vld [vmem:[%s6899_s29 + $0xc0] sm:$0xff]  ;;  %v3857_v33 = vld [vmem:[%s6899_s29 + $0x70] sm:$0xff]  ;;  %4119 = vmatprep.subr.bf16.mxu1 %v4869_v46 }
  0x42   : > { %v3868_v20 = vld [vmem:[%s6899_s29 + $0xc8] sm:$0xff]  ;;  %v628_v24 = vld [vmem:[%s6899_s29 + $0x20] sm:$0xff]  ;;  %v3858_v34 = vld [vmem:[%s6899_s29 + $0x78] sm:$0xff]  ;;  %4120 = vmatpush3.bf16.msra.mxu1 %v4871_v49 }
  0x43   : > { %696 = vperm.xlu0 %4851, %v3852_v11   ;;  %v629_v26 = vld [vmem:[%s6899_s29 + $0x28] sm:$0xff]  ;;  %v3859_v28 = vld [vmem:[%s6899_s29 + $0x80] sm:$0xff]  ;;  %4082 = vmatpush3.bf16.msra.mxu0 %v4858_v29  ;;  %v3869_v36 = vld [vmem:[%s6899_s29 + $0xd0] sm:$0xff]  ;;  %v5556_v29 = vshrl.u32 %v613_v25, 7 }
  0x44   : > { %639 = vperm.xlu1 %4852, %v625_v12   ;;  %v3860_v30 = vld [vmem:[%s6899_s29 + $0x88] sm:$0xff]  ;;  %4083 = vmatprep.subr.bf16.mxu0 %v4859_v31  ;;  %v3870_v37 = vld [vmem:[%s6899_s29 + $0xd8] sm:$0xff]  ;;  %v630_v42 = vld [vmem:[%s6899_s29 + $0x30] sm:$0xff] }
  0x45   : > { %v631_v44 = vld [vmem:[%s6899_s29 + $0x38] sm:$0xff]  ;;  %v3861_v48 = vld [vmem:[%s6899_s29 + $0x90] sm:$0xff]  ;;  %v3871_v56 = vld [vmem:[%s6899_s29 + $0xe0] sm:$0xff]  ;;  %vm615_vm0 = vcmp.lt.s32.totalorder %v5556_v29, 1  ;;  %vm745_vm1 = vcmp.lt.s32.totalorder %v5556_v29, 7 }
  0x46   : > { %v3862_v50 = vld [vmem:[%s6899_s29 + $0x98] sm:$0xff]  ;;  %v4873_v53 = vld [vmem:[%s5341_s27 + $0xd0] sm:$0xff]   ;;  %v3872_v57 = vld [vmem:[%s6899_s29 + $0xe8] sm:$0xff] }
  0x47   : > { %701 = vperm.xlu0 %4851, %v3853_v13   ;;  %4084 = vmatpush3.bf16.msra.mxu0 %v4860_v32  ;;  %v4870_v51 = vld [vmem:[%s5341_s27 + $0x78] sm:$0xff]   ;;  %v4874_v54 = vld [vmem:[%s5341_s27 + $0x90] sm:$0xff]   ;;  %v4877_v59 = vld [vmem:[%s5341_s27 + $0xe0] sm:$0xff]  }
  0x48   : > { %706 = vperm.xlu1 %4852, %v3854_v14   ;;  %4085 = vmatprep.subr.bf16.mxu0 %v4861_v35  ;;  %v4872_v52 = vld [vmem:[%s5341_s27 + $0x38] sm:$0xff]   ;;  %v3875_v60 = vld [vmem:[%s6899_s29 + $0x140] sm:$0xff]  ;;  %v3876_v61 = vld [vmem:[%s6899_s29 + $0x148] sm:$0xff] }
  0x49   : > { %v4875_v55 = vld [vmem:[%s5341_s27 + $0xd8] sm:$0xff]   ;;  %4121 = vmatprep.subr.bf16.mxu1 %v4873_v53  ;;  %v4878_v62 = vld [vmem:[%s5341_s27 + $0xa0] sm:$0xff]   ;;  %v4879_v0 = vld [vmem:[%s5341_s27 + $0xe8] sm:$0xff]  }
  0x4a   : > { %4122 = vmatpush3.bf16.msra.mxu1 %v4874_v54  ;;  %v4876_v58 = vld [vmem:[%s5341_s27 + $0x98] sm:$0xff]   ;;  %v3863_v63 = vld [vmem:[%s6899_s29 + $0xa0] sm:$0xff]  ;;  %v3864_v2 = vld [vmem:[%s6899_s29 + $0xa8] sm:$0xff] }
  0x4b   : > { %644 = vperm.xlu0 %4851, %v626_v15   ;;  %4086 = vmatpush3.bf16.msra.mxu0 %v4862_v38  ;;  %v4883_v1 = vld [vmem:[%s5341_s27 + $0x140] sm:$0xff]   ;;  %v4880_v3 = vld [vmem:[%s5341_s27 + $0xa8] sm:$0xff]   ;;  %v4881_v4 = vld [vmem:[%s5341_s27 + $0xf0] sm:$0xff]  }
  0x4c   : > { %649 = vperm.xlu1 %4852, %v627_v16   ;;  %4087 = vmatprep.subr.bf16.mxu0 %v4863_v39  ;;  %v3873_v5 = vld [vmem:[%s6899_s29 + $0xf0] sm:$0xff]  ;;  %v3874_v6 = vld [vmem:[%s6899_s29 + $0xf8] sm:$0xff]  ;;  %v3879_v14 = vld [vmem:[%s6899_s29 + $0x160] sm:$0xff] }
  0x4d   : > { %4123 = vmatprep.subr.bf16.mxu1 %v4875_v55  ;;  %v4882_v7 = vld [vmem:[%s5341_s27 + $0xb0] sm:$0xff]   ;;  %v4885_v8 = vld [vmem:[%s5341_s27 + $0xf8] sm:$0xff]   ;;  %v3880_v15 = vld [vmem:[%s6899_s29 + $0x168] sm:$0xff] }
  0x4e   : > { %4124 = vmatpush3.bf16.msra.mxu1 %v4876_v58  ;;  %v3877_v9 = vld [vmem:[%s6899_s29 + $0x150] sm:$0xff]  ;;  %v3878_v10 = vld [vmem:[%s6899_s29 + $0x158] sm:$0xff]  ;;  %v4899_v16 = vld [vmem:[%s5341_s27 + $0x1c0] sm:$0xff]  }
  0x4f   : > { %711 = vperm.xlu0 %4851, %v3855_v17   ;;  %4088 = vmatpush3.bf16.msra.mxu0 %v4864_v41  ;;  %v4886_v11 = vld [vmem:[%s5341_s27 + $0xb8] sm:$0xff]   ;;  %v3865_v12 = vld [vmem:[%s6899_s29 + $0xb0] sm:$0xff]  ;;  %v3891_v17 = vld [vmem:[%s6899_s29 + $0x1c0] sm:$0xff] }
  0x50   : > { %716 = vperm.xlu1 %4852, %v3856_v18   ;;  %4089 = vmatprep.subr.bf16.mxu0 %v4866_v45  ;;  %v3866_v13 = vld [vmem:[%s6899_s29 + $0xb8] sm:$0xff]  ;;  %v3892_v18 = vld [vmem:[%s6899_s29 + $0x1c8] sm:$0xff]  ;;  %v3881_v21 = vld [vmem:[%s6899_s29 + $0x170] sm:$0xff] }
  0x51   : > { %4125 = vmatprep.subr.bf16.mxu1 %v4877_v59  ;;  %v3882_v22 = vld [vmem:[%s6899_s29 + $0x178] sm:$0xff]  ;;  %v3893_v23 = vld [vmem:[%s6899_s29 + $0x1d0] sm:$0xff]  ;;  %v3896_v31 = vld [vmem:[%s6899_s29 + $0x1e8] sm:$0xff] }
  0x52   : > { %4126 = vmatpush3.bf16.msra.mxu1 %v4878_v62  ;;  %v3886_v27 = vld [vmem:[%s6899_s29 + $0x198] sm:$0xff]  ;;  %v3900_v35 = vld [vmem:[%s6899_s29 + $0x208] sm:$0xff]  ;;  %v3887_v38 = vld [vmem:[%s6899_s29 + $0x1a0] sm:$0xff] }
  0x53   : > { %822 = vperm.xlu0 %4851, %v3867_v19   ;;  %4090 = vmatpush3.bf16.msra.mxu0 %v4868_v47  ;;  %v3883_v19 = vld [vmem:[%s6899_s29 + $0x180] sm:$0xff]  ;;  %v5565_v32 = vld [vmem:[%s5364_s2 + $0x38] sm:$0xff]  ;;  %v3888_v39 = vld [vmem:[%s6899_s29 + $0x1a8] sm:$0xff] }
  0x54   : > { %827 = vperm.xlu1 %4852, %v3868_v20   ;;  %4091 = vmatprep.subr.bf16.mxu0 %v4870_v51  ;;  %v3884_v20 = vld [vmem:[%s6899_s29 + $0x188] sm:$0xff]  ;;  %v3901_v43 = vld [vmem:[%s6899_s29 + $0x210] sm:$0xff]  ;;  %v3903_v49 = vld [vmem:[%s6899_s29 + $0x220] sm:$0xff] }
  0x55   : > { %4127 = vmatprep.subr.bf16.mxu1 %v4879_v0  ;;  %v5585_v40 = vld [vmem:[%s5364_s2 + $0x8] sm:$0xff]  ;;  %v3897_v47 = vld [vmem:[%s6899_s29 + $0x1f0] sm:$0xff]  ;;  %v3906_v54 = vld [vmem:[%s6899_s29 + $0x238] sm:$0xff] }
  0x56   : > { %4128 = vmatpush3.bf16.msra.mxu1 %v4880_v3  ;;  %v606_v45 = vrot.slane %v5585_v40, 7  ;;  %v3889_v51 = vld [vmem:[%s6899_s29 + $0x1b0] sm:$0xff] }
  0x57   : > { %654 = vperm.xlu0 %4851, %v628_v24   ;;  %4092 = vmatpush3.bf16.msra.mxu0 %v4872_v52  ;;  %v3894_v24 = vld [vmem:[%s6899_s29 + $0x1d8] sm:$0xff]  ;;  %v3905_v53 = vld [vmem:[%s6899_s29 + $0x230] sm:$0xff] }
  0x58   : > { %659 = vperm.xlu1 %4852, %v629_v26   ;;  %4157 = vmatprep.subr.bf16.mxu0 %v4883_v1  ;;  %v3885_v26 = vld [vmem:[%s6899_s29 + $0x190] sm:$0xff]  ;;  %v3890_v52 = vld [vmem:[%s6899_s29 + $0x1b8] sm:$0xff]  ;;  %v4884_v1 = vld [vmem:[%s5341_s27 + $0x100] sm:$0xff]  }
  0x59   : > { %4129 = vmatprep.subr.bf16.mxu1 %v4881_v4 }
  0x5a   : > { %4130 = vmatpush3.bf16.msra.mxu1 %v4882_v7 }
  0x5b   : > { %765 = vperm.xlu0 %4851, %v3859_v28   ;;  %4131 = vmatprep.subr.bf16.mxu1 %v4885_v8  ;;  %v5554_v28 = vld [vmem:[%s5364_s2 + $0x30] sm:$0xff] }
  0x5c   : > { %770 = vperm.xlu1 %4852, %v3860_v30   ;;  %v3895_v30 = vld [vmem:[%s6899_s29 + $0x1e0] sm:$0xff] }
  0x5e   : > { %4132 = vmatpush3.bf16.msra.mxu1 %v4886_v11 }
  0x5f   : > { %721 = vperm.xlu0 %4851, %v3857_v33   ;;  %4197 = vmatprep.subr.bf16.mxu1 %v4899_v16  ;;  %v611_v33 = vrot.slane %v5554_v28, 7  ;;  %v5677_v16 = vld [vmem:[%s5364_s2 + $0x18] sm:$0xff] }
  0x60   : > { %726 = vperm.xlu1 %4852, %v3858_v34   ;;  %v3899_v34 = vld [vmem:[%s6899_s29 + $0x200] sm:$0xff] }
  0x63   : > { %832 = vperm.xlu0 %4851, %v3869_v36   ;;  %v612_v36 = vrot.slane %v5565_v32, 7 }
  0x64   : > { %837 = vperm.xlu1 %4852, %v3870_v37   ;;  %v5576_v37 = vld [vmem:[%s5364_s2] sm:$0xff] }
  0x65   : > { %v605_v41 = vrot.slane %v5576_v37, 7 }
  0x67   : > { %664 = vperm.xlu0 %4851, %v630_v42   ;;  %v5589_v42 = vld [vmem:[%s5364_s2 + $0x10] sm:$0xff]  ;;  %v5636_v58 = vsel %vm615_vm0, %v612_v36, %v605_v41 }
  0x68   : > { %669 = vperm.xlu1 %4852, %v631_v44   ;;  %v3902_v44 = vld [vmem:[%s6899_s29 + $0x218] sm:$0xff]  ;;  %v607_v46 = vrot.slane %v5589_v42, 7 }
  0x6a   : > { %v5669_v11 = vsel %vm615_vm0, %v606_v45, %v607_v46 }
  0x6b   : > { %775 = vperm.xlu0 %4851, %v3861_v48   ;;  %v3898_v48 = vld [vmem:[%s6899_s29 + $0x1f8] sm:$0xff] }
  0x6c   : > { %780 = vperm.xlu1 %4852, %v3862_v50   ;;  %v3904_v50 = vld [vmem:[%s6899_s29 + $0x228] sm:$0xff] }
  0x6f   : > { %842 = vperm.xlu0 %4851, %v3871_v56  }
  0x70   : > { %847 = vperm.xlu1 %4852, %v3872_v57   ;;  %v5632_v57 = vsel %vm615_vm0, %v611_v33, %v612_v36 }
  0x73   : > { %879 = vperm.xlu0 %4851, %v3875_v60  }
  0x74   : > { %884 = vperm.xlu1 %4852, %v3876_v61  }
  0x77   : > { %785 = vperm.xlu0 %4851, %v3863_v63  }
  0x78   : > { %790 = vperm.xlu1 %4852, %v3864_v2   ;;  %v4887_v2 = vld [vmem:[%s5341_s27 + $0x148] sm:$0xff]  }
  0x7b   : > { %852 = vperm.xlu0 %4851, %v3873_v5  }
  0x7c   : > { %857 = vperm.xlu1 %4852, %v3874_v6  }
  0x7f   : > { %889 = vperm.xlu0 %4851, %v3877_v9   ;;  %v4888_v9 = vld [vmem:[%s5341_s27 + $0x108] sm:$0xff]  }
  0x80   : > { %894 = vperm.xlu1 %4852, %v3878_v10   ;;  %v5663_v10 = vsel %vm615_vm0, %v605_v41, %v606_v45 }
  0x83   : > { %795 = vperm.xlu0 %4851, %v3865_v12   ;;  %v4889_v12 = vld [vmem:[%s5341_s27 + $0x150] sm:$0xff]  }
  0x84   : > { %800 = vperm.xlu1 %4852, %v3866_v13  }
  0x87   : > { %899 = vperm.xlu0 %4851, %v3879_v14  }
  0x88   : > { %904 = vperm.xlu1 %4852, %v3880_v15  }
  0x8b   : > { %993 = vperm.xlu0 %4851, %v3891_v17   ;;  %v5680_v17 = vld [vmem:[%s5364_s2 + $0x20] sm:$0xff] }
  0x8c   : > { %998 = vperm.xlu1 %4852, %v3892_v18  }
  0x8f   : > { %936 = vperm.xlu0 %4851, %v3883_v19  }
  0x90   : > { %941 = vperm.xlu1 %4852, %v3884_v20  }
  0x93   : > { %909 = vperm.xlu0 %4851, %v3881_v21   ;;  %v4890_v21 = vld [vmem:[%s5341_s27 + $0x110] sm:$0xff]  }
  0x94   : > { %914 = vperm.xlu1 %4852, %v3882_v22  }
  0x97   : > { %1003 = vperm.xlu0 %4851, %v3893_v23  }
  0x98   : > { %1008 = vperm.xlu1 %4852, %v3894_v24   ;;  %v4891_v24 = vld [vmem:[%s5341_s27 + $0x158] sm:$0xff]  }
  0x9b   : > { %946 = vperm.xlu0 %4851, %v3885_v26  }
  0x9c   : > { %951 = vperm.xlu1 %4852, %v3886_v27   ;;  %v608_v27 = vrot.slane %v5677_v16, 7 }
  0x9f   : > { %1013 = vperm.xlu0 %4851, %v3895_v30   ;;  %v609_v30 = vrot.slane %v5680_v17, 7 }
  0xa0   : > { %1018 = vperm.xlu1 %4852, %v3896_v31  }
  0xa1   : > { %v5719_v45 = vsel %vm615_vm0, %v608_v27, %v609_v30 }
  0xa3   : > { %1050 = vperm.xlu0 %4851, %v3899_v34   ;;  %v4892_v34 = vld [vmem:[%s5341_s27 + $0x118] sm:$0xff]  }
  0xa4   : > { %1055 = vperm.xlu1 %4852, %v3900_v35  }
  0xa7   : > { %956 = vperm.xlu0 %4851, %v3887_v38   ;;  %v4893_v38 = vld [vmem:[%s5341_s27 + $0x160] sm:$0xff]  }
  0xa8   : > { %961 = vperm.xlu1 %4852, %v3888_v39  }
  0xab   : > { %1060 = vperm.xlu0 %4851, %v3901_v43   ;;  %v6823_v43 = vrot.slane %v5565_v32, 1 }
  0xac   : > { %1065 = vperm.xlu1 %4852, %v3902_v44   ;;  %v5713_v44 = vsel %vm615_vm0, %v607_v46, %v608_v27  ;;  %v4904_v27 = vld [vmem:[%s5341_s27 + $0x188] sm:$0xff]  }
  0xaf   : > { %1023 = vperm.xlu0 %4851, %v3897_v47   ;;  %v737_v47 = vrot.slane %v5576_v37, 1 }
  0xb0   : > { %1028 = vperm.xlu1 %4852, %v3898_v48   ;;  %v738_v48 = vrot.slane %v5585_v40, 1 }
  0xb3   : > { %1070 = vperm.xlu0 %4851, %v3903_v49  }
  0xb4   : > { %1075 = vperm.xlu1 %4852, %v3904_v50   ;;  %v4894_v50 = vld [vmem:[%s5341_s27 + $0x120] sm:$0xff]  }
  0xb7   : > { %966 = vperm.xlu0 %4851, %v3889_v51  }
  0xb8   : > { %971 = vperm.xlu1 %4852, %v3890_v52   ;;  %v4895_v52 = vld [vmem:[%s5341_s27 + $0x168] sm:$0xff]  }
  0xbb   : > { %1080 = vperm.xlu0 %4851, %v3905_v53  }
  0xbc   : > { %1085 = vperm.xlu1 %4852, %v3906_v54  }
  0xbe   : > { %v5624_v55 = vpop.permute.xlu0 %691 }
  0xbf   : > { %v5626_v56 = vpop.permute.xlu1 %634  ;;  %v729_v61 = vmul.f32 %v5624_v55, %v5565_v32 }
  0xc0   : > { %v672_v62 = vmul.f32 %v5626_v56, %v5632_v57 }
  0xc2   : > { %v5638_v59 = vpop.permute.xlu0 %696 }
  0xc3   : > { %v5640_v60 = vpop.permute.xlu1 %639  ;;  %v730_v63 = vmul.f32 %v5638_v59, %v5576_v37 }
  0xc4   : > { %v673_v0 = vmul.f32 %v5640_v60, %v5636_v58 }
  0xc5   : > { %v1097_v4 = vpack.c.bf16 %v730_v63, %v729_v61  ;;  %v5738_v61 = vsel %vm745_vm1, %v6823_v43, %v737_v47  ;;  %v4915_v43 = vld [vmem:[%s5341_s27 + $0x1f8] sm:$0xff]  }
  0xc6   : > { %v1096_v3 = vpack.c.bf16 %v673_v0, %v672_v62  ;;  %v5652_v5 = vpop.permute.xlu0 %701  ;;  %v5744_v62 = vsel %vm745_vm1, %v737_v47, %v738_v48  ;;  %v4896_v0 = vld [vmem:[%s5341_s27 + $0x128] sm:$0xff]   ;;  %v5780_v47 = vld [vmem:[%s5341_s27 + $0x200] sm:$0xff]  }
  0xc7   : > { %v5654_v6 = vpop.permute.xlu1 %706  ;;  %v731_v7 = vmul.f32 %v5652_v5, %v5585_v40  ;;  %1747 = vmatprep.mubr.bf16.mxu0 %v1097_v4 }
  0xc8   : > { %v732_v8 = vmul.f32 %v5654_v6, %v5589_v42  ;;  %1748 = vmatmul.mubr.bf16.vlgmr.msra.gmra.mrb[0].mxu0 %v1096_v3  ;;  %v4897_v3 = vld [vmem:[%s5341_s27 + $0x170] sm:$0xff]  }
  0xc9   : > { %4158 = vmatpush3.bf16.msra.mxu0 %v4884_v1 }
  0xca   : > { %v1106_v13 = vpack.c.bf16 %v732_v8, %v731_v7  ;;  %v5672_v14 = vpop.permute.xlu0 %644  ;;  %4159 = vmatprep.subr.bf16.mxu0 %v4887_v2  ;;  %v5757_v8 = vld [vmem:[%s5364_s2 + $0x28] sm:$0xff] }
  0xcb   : > { %v5674_v15 = vpop.permute.xlu1 %649  ;;  %v674_v18 = vmul.f32 %v5672_v14, %v5663_v10 }
  0xcc   : > { %v675_v19 = vmul.f32 %v5674_v15, %v5669_v11  ;;  %1755 = vmatprep.mubr.bf16.mxu0 %v1106_v13  ;;  %v4898_v13 = vld [vmem:[%s5341_s27 + $0x130] sm:$0xff]  }
  0xcd   : > { %4160 = vmatpush3.bf16.msra.mxu0 %v4888_v9  ;;  %v4901_v9 = vld [vmem:[%s5341_s27 + $0x180] sm:$0xff]  }
  0xce   : > { %v1105_v20 = vpack.c.bf16 %v675_v19, %v674_v18  ;;  %v5687_v22 = vpop.permute.xlu0 %711  ;;  %4161 = vmatprep.subr.bf16.mxu0 %v4889_v12  ;;  %v4903_v18 = vld [vmem:[%s5341_s27 + $0x1c8] sm:$0xff]  }
  0xcf   : > { %v5689_v23 = vpop.permute.xlu1 %716  ;;  %v733_v25 = vmul.f32 %v5687_v22, %v5677_v16 }
  0xd0   : > { %v734_v26 = vmul.f32 %v5689_v23, %v5680_v17  ;;  %1756 = vmatmul.mubr.bf16.gmra.mrb[4].mxu0 %v1105_v20 }
  0xd1   : > { %4162 = vmatpush3.bf16.msra.mxu0 %v4890_v21  ;;  %v4900_v21 = vld [vmem:[%s5341_s27 + $0x178] sm:$0xff]  }
  0xd2   : > { %v1115_v31 = vpack.c.bf16 %v734_v26, %v733_v25  ;;  %v5699_v35 = vpop.permute.xlu0 %822  ;;  %4163 = vmatprep.subr.bf16.mxu0 %v4891_v24  ;;  %v610_v26 = vrot.slane %v5757_v8, 7 }
  0xd3   : > { %v5701_v36 = vpop.permute.xlu1 %827  ;;  %v860_v39 = vmul.f32 %v5699_v35, %v5636_v58 }
  0xd4   : > { %v861_v41 = vmul.f32 %v5701_v36, %v5663_v10  ;;  %1763 = vmatprep.mubr.bf16.mxu0 %v1115_v31 }
  0xd5   : > { %4164 = vmatpush3.bf16.msra.mxu0 %v4892_v34  ;;  %v4902_v34 = vld [vmem:[%s5341_s27 + $0x138] sm:$0xff]  }
  0xd6   : > { %v1099_v49 = vpack.c.bf16 %v861_v41, %v860_v39  ;;  %v5725_v51 = vpop.permute.xlu0 %654  ;;  %4165 = vmatprep.subr.bf16.mxu0 %v4893_v38  ;;  %v4905_v38 = vld [vmem:[%s5341_s27 + $0x1d0] sm:$0xff]  }
  0xd7   : > { %v5727_v46 = vpop.permute.xlu1 %659  ;;  %v676_v53 = vmul.f32 %v5725_v51, %v5713_v44 }
  0xd8   : > { %v677_v54 = vmul.f32 %v5727_v46, %v5719_v45  ;;  %1812 = vmatprep.mubr.bf16.mxu1 %v1099_v49 }
  0xd9   : > { %4166 = vmatpush3.bf16.msra.mxu0 %v4894_v50 }
  0xda   : > { %v1114_v63 = vpack.c.bf16 %v677_v54, %v676_v53  ;;  %v5747_v1 = vpop.permute.xlu0 %765  ;;  %4167 = vmatprep.subr.bf16.mxu0 %v4895_v52  ;;  %v5790_v52 = vsel %vm615_vm0, %v609_v30, %v610_v26  ;;  %v5796_v53 = vsel %vm615_vm0, %v610_v26, %v611_v33  ;;  %v739_v54 = vrot.slane %v5589_v42, 1 }
  0xdb   : > { %v5749_v2 = vpop.permute.xlu1 %770  ;;  %v803_v4 = vmul.f32 %v5747_v1, %v5738_v61 }
  0xdc   : > { %v804_v7 = vmul.f32 %v5749_v2, %v5744_v62  ;;  %1764 = vmatmul.mubr.bf16.gmra.mrb[8].mxu0 %v1114_v63  ;;  %v740_v63 = vrot.slane %v5677_v16, 1 }
  0xdd   : > { %4168 = vmatpush3.bf16.msra.mxu0 %v4896_v0  ;;  %v4906_v0 = vld [vmem:[%s5341_s27 + $0x190] sm:$0xff]  }
  0xde   : > { %v1098_v12 = vpack.c.bf16 %v804_v7, %v803_v4  ;;  %v5762_v19 = vpop.permute.xlu0 %721  ;;  %4169 = vmatprep.subr.bf16.mxu0 %v4897_v3  ;;  %v4907_v4 = vld [vmem:[%s5341_s27 + $0x1d8] sm:$0xff]  }
  0xdf   : > { %v5764_v20 = vpop.permute.xlu1 %726  ;;  %v735_v24 = vmul.f32 %v5762_v19, %v5757_v8 }
  0xe0   : > { %v736_v25 = vmul.f32 %v5764_v20, %v5554_v28  ;;  %1813 = vmatmul.mubr.bf16.vlgmr.msra.gmra.mrb[0].mxu1 %v1098_v12  ;;  %v5815_v12 = vsel %vm745_vm1, %v738_v48, %v739_v54 }
  0xe1   : > { %4198 = vmatpush3.bf16.msra.mxu1 %v4901_v9  ;;  %4170 = vmatpush3.bf16.msra.mxu0 %v4898_v13  ;;  %v5819_v13 = vsel %vm745_vm1, %v739_v54, %v740_v63 }
  0xe2   : > { %v1124_v31 = vpack.c.bf16 %v736_v25, %v735_v24  ;;  %4199 = vmatprep.subr.bf16.mxu1 %v4903_v18  ;;  %v5775_v39 = vpop.permute.xlu0 %832  ;;  %4171 = vmatprep.subr.bf16.mxu0 %v4900_v21  ;;  %v4908_v18 = vld [vmem:[%s5341_s27 + $0x198] sm:$0xff]   ;;  %v4909_v24 = vld [vmem:[%s5341_s27 + $0x1e0] sm:$0xff]  }
  0xe3   : > { %v5777_v41 = vpop.permute.xlu1 %837  ;;  %v862_v49 = vmul.f32 %v5775_v39, %v5669_v11 }
  0xe4   : > { %v863_v50 = vmul.f32 %v5777_v41, %v5713_v44  ;;  %1771 = vmatprep.mubr.bf16.mxu0 %v1124_v31  ;;  %v4910_v31 = vld [vmem:[%s5341_s27 + $0x1a0] sm:$0xff]  }
  0xe5   : > { %4200 = vmatpush3.bf16.msra.mxu1 %v4904_v27  ;;  %4172 = vmatpush3.bf16.msra.mxu0 %v4902_v34 }
  0xe6   : > { %v1108_v3 = vpack.c.bf16 %v863_v50, %v862_v49  ;;  %4201 = vmatprep.subr.bf16.mxu1 %v4905_v38  ;;  %v5802_v30 = vpop.permute.xlu0 %664  ;;  %4489 = vmatprep.subr.bf16.mxu0 %v5780_v47  ;;  %v4911_v38 = vld [vmem:[%s5341_s27 + $0x1e8] sm:$0xff]  }
  0xe7   : > { %6900 = vst [vmem:[#allocation17_spill] sm:$0xff] %v5802_v30  ;;  %v5804_v7 = vpop.permute.xlu1 %669  ;;  %v678_v33 = vmul.f32 %v5802_v30, %v5790_v52 }
  0xe8   : > { %6901 = vst [vmem:[#allocation18_spill] sm:$0xff] %v5804_v7  ;;  %v679_v9 = vmul.f32 %v5804_v7, %v5796_v53  ;;  %1820 = vmatprep.mubr.bf16.mxu1 %v1108_v3  ;;  %v741_v3 = vrot.slane %v5680_v17, 1 }
  0xe9   : > { %4202 = vmatpush3.bf16.msra.mxu1 %v4906_v0 }
  0xea   : > { %v1123_v21 = vpack.c.bf16 %v679_v9, %v678_v33  ;;  %4203 = vmatprep.subr.bf16.mxu1 %v4907_v4  ;;  %v5823_v25 = vpop.permute.xlu0 %775  ;;  %v742_v4 = vrot.slane %v5757_v8, 1  ;;  %v4912_v33 = vld [vmem:[%s5341_s27 + $0x1a8] sm:$0xff]  }
  0xeb   : > { %v5825_v26 = vpop.permute.xlu1 %780  ;;  %v805_v27 = vmul.f32 %v5823_v25, %v5815_v12 }
  0xec   : > { %v806_v48 = vmul.f32 %v5825_v26, %v5819_v13  ;;  %1772 = vmatmul.mubr.bf16.gmra.mrb[12].mxu0 %v1123_v21 }
  0xed   : > { %4204 = vmatpush3.bf16.msra.mxu1 %v4908_v18  ;;  %v4913_v18 = vld [vmem:[%s5341_s27 + $0x1f0] sm:$0xff]  }
  0xee   : > { %v1107_v34 = vpack.c.bf16 %v806_v48, %v805_v27  ;;  %4205 = vmatprep.subr.bf16.mxu1 %v4909_v24  ;;  %v5833_v49 = vpop.permute.xlu0 %842 }
  0xef   : > { %v5835_v50 = vpop.permute.xlu1 %847  ;;  %v864_v54 = vmul.f32 %v5833_v49, %v5719_v45 }
  0xf0   : > { %v865_v0 = vmul.f32 %v5835_v50, %v5790_v52  ;;  %1821 = vmatmul.mubr.bf16.gmra.mrb[4].mxu1 %v1107_v34  ;;  %v5859_v34 = vsel %vm745_vm1, %v741_v3, %v742_v4 }
  0xf1   : > { %4206 = vmatpush3.bf16.msra.mxu1 %v4910_v31  ;;  %v5855_v31 = vsel %vm745_vm1, %v740_v63, %v741_v3  ;;  %v4918_v63 = vld [vmem:[%s5341_s27 + $0x208] sm:$0xff]  }
  0xf2   : > { %v1117_v9 = vpack.c.bf16 %v865_v0, %v864_v54  ;;  %4207 = vmatprep.subr.bf16.mxu1 %v4911_v38  ;;  %v5845_v21 = vpop.permute.xlu0 %879  ;;  %v1100_v38 = vpack.c.bf16 %v5585_v40, %v5576_v37  ;;  %v4914_v54 = vld [vmem:[%s5341_s27 + $0x1b0] sm:$0xff]  }
  0xf3   : > { %6902 = vst [vmem:[#allocation19_spill] sm:$0xff] %v5845_v21  ;;  %v5847_v24 = vpop.permute.xlu1 %884  ;;  %v917_v27 = vmul.f32 %v5845_v21, %v5744_v62 }
  0xf4   : > { %6903 = vst [vmem:[#allocation20_spill] sm:$0xff] %v5847_v24  ;;  %v918_v48 = vmul.f32 %v5847_v24, %v5815_v12  ;;  %1828 = vmatprep.mubr.bf16.mxu1 %v1117_v9 }
  0xf5   : > { %4208 = vmatpush3.bf16.msra.mxu1 %v4912_v33  ;;  %v4917_v33 = vld [vmem:[%s5341_s27 + $0x1b8] sm:$0xff]  }
  0xf6   : > { %v1101_v0 = vpack.c.bf16 %v918_v48, %v917_v27  ;;  %4209 = vmatprep.subr.bf16.mxu1 %v4913_v18  ;;  %v5865_v24 = vpop.permute.xlu0 %785  ;;  %v4919_v48 = vld [vmem:[%s5341_s27 + $0x210] sm:$0xff]  }
  0xf7   : > { %v5867_v9 = vpop.permute.xlu1 %790  ;;  %v807_v21 = vmul.f32 %v5865_v24, %v5855_v31 }
  0xf8   : > { %6904 = vst [vmem:[#allocation21_spill] sm:$0xff] %v5867_v9  ;;  %v808_v3 = vmul.f32 %v5867_v9, %v5859_v34  ;;  %1877 = vmatprep.mubr.bf16.mxu0 %v1101_v0 }
  0xf9   : > { %1878 = vmatmul.mubr.bf16.vlgmr.msra.gmra.mrb[16].mxu0 %v1100_v38  ;;  %4210 = vmatpush3.bf16.msra.mxu1 %v4914_v54  ;;  %v743_v38 = vrot.slane %v5554_v28, 1  ;;  %v4920_v54 = vld [vmem:[%s5341_s27 + $0x218] sm:$0xff]  }
  0xfa   : > { %v1116_v7 = vpack.c.bf16 %v808_v3, %v807_v21  ;;  %4211 = vmatprep.subr.bf16.mxu1 %v4915_v43  ;;  %4490 = vmatpush3.bf16.msra.mxu0 %v5780_v47  ;;  %v5876_v18 = vpop.permute.xlu0 %852 }
  0xfb   : > { %6905 = vst [vmem:[#allocation22_spill] sm:$0xff] %v5876_v18  ;;  %v5878_v27 = vpop.permute.xlu1 %857  ;;  %4491 = vmatprep.subr.bf16.mxu0 %v4918_v63  ;;  %v866_v30 = vmul.f32 %v5876_v18, %v5796_v53 }
  0xfc   : > { %6906 = vst [vmem:[#allocation23_spill] sm:$0xff] %v5878_v27  ;;  %v867_v0 = vmul.f32 %v5878_v27, %v5632_v57  ;;  %1829 = vmatmul.mubr.bf16.gmra.mrb[8].mxu1 %v1116_v7  ;;  %v5897_v7 = vsel %vm745_vm1, %v742_v4, %v743_v38 }
  0xfd   : > { %4212 = vmatpush3.bf16.msra.mxu1 %v4917_v33  ;;  %v1109_v33 = vpack.c.bf16 %v5677_v16, %v5589_v42 }
  0xfe   : > { %v1126_v43 = vpack.c.bf16 %v867_v0, %v866_v30  ;;  %4492 = vmatpush3.bf16.msra.mxu0 %v4918_v63  ;;  %v5886_v47 = vpop.permute.xlu0 %889  ;;  %v6909_v30 = vrot.slane %v5565_v32, 1 }
  0xff   : > { %6907 = vst [vmem:[#allocation24_spill] sm:$0xff] %v5886_v47  ;;  %v5888_v21 = vpop.permute.xlu1 %894  ;;  %4493 = vmatprep.subr.bf16.mxu0 %v4919_v48  ;;  %v919_v3 = vmul.f32 %v5886_v47, %v5819_v13 }
 0x100   : > { %6908 = vst [vmem:[#allocation25_spill] sm:$0xff] %v5888_v21  ;;  %v920_v18 = vmul.f32 %v5888_v21, %v5855_v31  ;;  %1836 = vmatprep.mubr.bf16.mxu1 %v1126_v43  ;;  %v5903_v63 = vsel %vm745_vm1, %v743_v38, %v6909_v30  ;;  %v4921_v43 = vld [vmem:[%s5341_s27 + $0x220] sm:$0xff]  }
 0x102   : > { %v1110_v0 = vpack.c.bf16 %v920_v18, %v919_v3  ;;  %4494 = vmatpush3.bf16.msra.mxu0 %v4919_v48  ;;  %v5907_v47 = vpop.permute.xlu0 %795  ;;  %v4922_v48 = vld [vmem:[%s5341_s27 + $0x228] sm:$0xff]  }
 0x103   : > { %6910 = vst [vmem:[#allocation26_spill] sm:$0xff] %v5907_v47  ;;  %v5909_v21 = vpop.permute.xlu1 %800  ;;  %4495 = vmatprep.subr.bf16.mxu0 %v4920_v54  ;;  %v809_v4 = vmul.f32 %v5907_v47, %v5897_v7 }
 0x104   : > { %6911 = vst [vmem:[#allocation27_spill] sm:$0xff] %v5909_v21  ;;  %v810_v27 = vmul.f32 %v5909_v21, %v5903_v63  ;;  %1885 = vmatprep.mubr.bf16.mxu0 %v1110_v0  ;;  %v1118_v0 = vpack.c.bf16 %v5757_v8, %v5680_v17 }
 0x105   : > { %1886 = vmatmul.mubr.bf16.gmra.mrb[20].mxu0 %v1109_v33 }
 0x106   : > { %v1125_v38 = vpack.c.bf16 %v810_v27, %v809_v4  ;;  %4496 = vmatpush3.bf16.msra.mxu0 %v4920_v54  ;;  %v5916_v30 = vpop.permute.xlu0 %899  ;;  %v4923_v4 = vld [vmem:[%s5341_s27 + $0x230] sm:$0xff]  }
 0x107   : > { %6912 = vst [vmem:[#allocation28_spill] sm:$0xff] %v5916_v30  ;;  %v5918_v18 = vpop.permute.xlu1 %904  ;;  %4497 = vmatprep.subr.bf16.mxu0 %v4921_v43  ;;  %v921_v3 = vmul.f32 %v5916_v30, %v5859_v34 }
 0x108   : > { %6913 = vst [vmem:[#allocation29_spill] sm:$0xff] %v5918_v18  ;;  %v922_v47 = vmul.f32 %v5918_v18, %v5897_v7  ;;  %1837 = vmatmul.mubr.bf16.gmra.mrb[12].mxu1 %v1125_v38 }
 0x10a   : > { %v1119_v33 = vpack.c.bf16 %v922_v47, %v921_v3  ;;  %4498 = vmatpush3.bf16.msra.mxu0 %v4921_v43  ;;  %v5927_v27 = vpop.permute.xlu0 %993  ;;  %v4924_v43 = vld [vmem:[%s5341_s27 + $0x238] sm:$0xff]   ;;  %s6742_s27 = scalar_lea.sflag [#allocation3], %s6996_s25 }
 0x10b   : > { %v5929_v54 = vpop.permute.xlu1 %998  ;;  %4499 = vmatprep.subr.bf16.mxu0 %v4922_v48  ;;  %v1031_v21 = vmul.f32 %v5927_v27, %v5585_v40 }
 0x10c   : > { %6914 = vst [vmem:[#allocation30_spill] sm:$0xff] %v5929_v54  ;;  %v1032_v30 = vmul.f32 %v5929_v54, %v5589_v42  ;;  %1893 = vmatprep.mubr.bf16.mxu0 %v1119_v33 }
 0x10d   : > { %1894 = vmatmul.mubr.bf16.gmra.mrb[24].mxu0 %v1118_v0 }
 0x10e   : > { %v1103_v38 = vpack.c.bf16 %v1032_v30, %v1031_v21  ;;  %4500 = vmatpush3.bf16.msra.mxu0 %v4922_v48  ;;  %v5936_v18 = vpop.permute.xlu0 %936 }
 0x10f   : > { %v5938_v47 = vpop.permute.xlu1 %941  ;;  %4501 = vmatprep.subr.bf16.mxu0 %v4923_v4  ;;  %v974_v3 = vmul.f32 %v5936_v18, %v5663_v10  ;;  %v1127_v10 = vpack.c.bf16 %v5565_v32, %v5554_v28 }
 0x110   : > { %v975_v9 = vmul.f32 %v5938_v47, %v5669_v11  ;;  %1942 = vmatprep.mubr.bf16.mxu1 %v1103_v38 }
 0x112   : > { %v1102_v40 = vpack.c.bf16 %v975_v9, %v974_v3  ;;  %4502 = vmatpush3.bf16.msra.mxu0 %v4923_v4  ;;  %v5945_v42 = vpop.permute.xlu0 %909 }
 0x113   : > { %6915 = vst [vmem:[#allocation31_spill] sm:$0xff] %v5945_v42  ;;  %v5947_v0 = vpop.permute.xlu1 %914  ;;  %4503 = vmatprep.subr.bf16.mxu0 %v4924_v43  ;;  %v923_v21 = vmul.f32 %v5945_v42, %v5903_v63 }
 0x114   : > { %6916 = vst [vmem:[#allocation32_spill] sm:$0xff] %v5947_v0  ;;  %v924_v30 = vmul.f32 %v5947_v0, %v5738_v61  ;;  %1943 = vmatmul.mubr.bf16.vlgmr.msra.gmra.mrb[16].mxu1 %v1102_v40 }
 0x116   : > { %v1128_v48 = vpack.c.bf16 %v924_v30, %v923_v21  ;;  %4504 = vmatpush3.bf16.msra.mxu0 %v4924_v43  ;;  %v5955_v11 = vpop.permute.xlu0 %1003 }
 0x117   : > { %6917 = vst [vmem:[#allocation33_spill] sm:$0xff] %v5955_v11  ;;  %v5957_v9 = vpop.permute.xlu1 %1008  ;;  %v1033_v33 = vmul.f32 %v5955_v11, %v5677_v16 }
 0x118   : > { %6918 = vst [vmem:[#allocation34_spill] sm:$0xff] %v5957_v9  ;;  %v1034_v4 = vmul.f32 %v5957_v9, %v5680_v17  ;;  %1901 = vmatprep.mubr.bf16.mxu0 %v1128_v48 }
 0x119   : > { %1902 = vmatmul.mubr.bf16.gmra.mrb[28].mxu0 %v1127_v10 }
 0x11a   : > { %v1112_v38 = vpack.c.bf16 %v1034_v4, %v1033_v33  ;;  %v5963_v3 = vpop.permute.xlu0 %946 }
 0x11b   : > { %6919 = vst [vmem:[#allocation35_spill] sm:$0xff] %v5963_v3  ;;  %v5965_v40 = vpop.permute.xlu1 %951  ;;  %v976_v43 = vmul.f32 %v5963_v3, %v5713_v44 }
 0x11c   : > { %6920 = vst [vmem:[#allocation36_spill] sm:$0xff] %v5965_v40  ;;  %v977_v21 = vmul.f32 %v5965_v40, %v5719_v45  ;;  %1950 = vmatprep.mubr.bf16.mxu1 %v1112_v38 }
 0x11e   : > { %v1111_v30 = vpack.c.bf16 %v977_v21, %v976_v43  ;;  %v5971_v0 = vpop.permute.xlu0 %1013 }
 0x11f   : > { %6921 = vst [vmem:[#allocation37_spill] sm:$0xff] %v5971_v0  ;;  %v5973_v16 = vpop.permute.xlu1 %1018  ;;  %v1035_v17 = vmul.f32 %v5971_v0, %v5757_v8 }
 0x120   : > { %6922 = vst [vmem:[#allocation38_spill] sm:$0xff] %v5973_v16  ;;  %v1036_v10 = vmul.f32 %v5973_v16, %v5554_v28  ;;  %1951 = vmatmul.mubr.bf16.gmra.mrb[20].mxu1 %v1111_v30 }
 0x122   : > { %v1121_v48 = vpack.c.bf16 %v1036_v10, %v1035_v17  ;;  %v5979_v33 = vpop.permute.xlu0 %1050 }
 0x123   : > { %6923 = vst [vmem:[#allocation39_spill] sm:$0xff] %v5979_v33  ;;  %v5981_v44 = vpop.permute.xlu1 %1055  ;;  %v1088_v45 = vmul.f32 %v5979_v33, %v5815_v12 }
 0x124   : > { %6924 = vst [vmem:[#allocation40_spill] sm:$0xff] %v5981_v44  ;;  %v1089_v4 = vmul.f32 %v5981_v44, %v5819_v13  ;;  %1958 = vmatprep.mubr.bf16.mxu1 %v1121_v48 }
 0x126   : > { %v1104_v38 = vpack.c.bf16 %v1089_v4, %v1088_v45  ;;  %v5987_v43 = vpop.permute.xlu0 %956 }
 0x127   : > { %6925 = vst [vmem:[#allocation41_spill] sm:$0xff] %v5987_v43  ;;  %v5989_v8 = vpop.permute.xlu1 %961  ;;  %v978_v28 = vmul.f32 %v5987_v43, %v5790_v52 }
 0x128   : > { %6926 = vst [vmem:[#allocation42_spill] sm:$0xff] %v5989_v8  ;;  %v979_v21 = vmul.f32 %v5989_v8, %v5796_v53  ;;  %4505 = vmatprep.mubr.bf16.mxu0 %v1104_v38 }
 0x12a   : > { %v1120_v30 = vpack.c.bf16 %v979_v21, %v978_v28  ;;  %v5995_v17 = vpop.permute.xlu0 %1060 }
 0x12b   : > { %v5997_v12 = vpop.permute.xlu1 %1065  ;;  %v1090_v13 = vmul.f32 %v5995_v17, %v5855_v31 }
 0x12c   : > { %v1091_v10 = vmul.f32 %v5997_v12, %v5859_v34  ;;  %1959 = vmatmul.mubr.bf16.gmra.mrb[24].mxu1 %v1120_v30 }
 0x12e   : > { %v1113_v48 = vpack.c.bf16 %v1091_v10, %v1090_v13  ;;  %v6003_v45 = vpop.permute.xlu0 %1023 }
 0x12f   : > { %6927 = vst [vmem:[#allocation43_spill] sm:$0xff] %v6003_v45  ;;  %v6005_v52 = vpop.permute.xlu1 %1028  ;;  %v1037_v53 = vmul.f32 %v6003_v45, %v5565_v32 }
 0x130   : > { %6928 = vst [vmem:[#allocation44_spill] sm:$0xff] %v6005_v52  ;;  %v1038_v4 = vmul.f32 %v6005_v52, %v5576_v37  ;;  %4506 = vmatmul.mubr.bf16.vlgmr.msra.gmra.mrb[32].mxu0 %v1113_v48 }
 0x132   : > { %v1130_v38 = vpack.c.bf16 %v1038_v4, %v1037_v53  ;;  %v6011_v28 = vpop.permute.xlu0 %1070 }
 0x133   : > { %6929 = vst [vmem:[#allocation45_spill] sm:$0xff] %v6011_v28  ;;  %v6013_v31 = vpop.permute.xlu1 %1075  ;;  %v1092_v34 = vmul.f32 %v6011_v28, %v5897_v7 }
 0x134   : > { %6930 = vst [vmem:[#allocation46_spill] sm:$0xff] %v6013_v31  ;;  %v1093_v21 = vmul.f32 %v6013_v31, %v5903_v63  ;;  %1966 = vmatprep.mubr.bf16.mxu1 %v1130_v38 }
 0x136   : > { %v1122_v30 = vpack.c.bf16 %v1093_v21, %v1092_v34  ;;  %v6019_v13 = vpop.permute.xlu0 %966  ;;  %v6853_v21 = vmov 0.0|0.0  }
 0x137   : > { %6931 = vst [vmem:[#allocation47_spill] sm:$0xff] %v6019_v13  ;;  %v6021_v32 = vpop.permute.xlu1 %971  ;;  %v980_v37 = vmul.f32 %v6019_v13, %v5632_v57  ;;  %v2074_v57 = vld [vmem:[%s6935_s11] sm:$0xff]  ;;  %4677 = vmatprep.subr.bf16.mxu1 %v6853_v21  ;;  %4701 = vmatprep.subr.bf16.mxu0 %v6853_v21 }
 0x138   : > { %6932 = vst [vmem:[#allocation48_spill] sm:$0xff] %v6021_v32  ;;  %v981_v10 = vmul.f32 %v6021_v32, %v5636_v58  ;;  %4509 = vmatprep.mubr.bf16.mxu0 %v1122_v30  ;;  %v2075_v58 = vld [vmem:[%s6935_s11 + $0x8] sm:$0xff] }
 0x139   : > { %v6041_v34 = vpack.c.bf16 %v2075_v58, %v2074_v57  ;;  %v2082_v57 = vld [vmem:[%s6935_s11 + $0x40] sm:$0xff]  ;;  %v2083_v58 = vld [vmem:[%s6935_s11 + $0x48] sm:$0xff] }
 0x13a   : > { %v1129_v48 = vpack.c.bf16 %v981_v10, %v980_v37  ;;  %v6027_v53 = vpop.permute.xlu0 %1080  ;;  %v2078_v37 = vld [vmem:[%s6935_s11 + $0x20] sm:$0xff]  ;;  %v2079_v10 = vld [vmem:[%s6935_s11 + $0x28] sm:$0xff] }
 0x13b   : > { %6933 = vst [vmem:[#allocation49_spill] sm:$0xff] %v6027_v53  ;;  %v6029_v7 = vpop.permute.xlu1 %1085  ;;  %v1094_v63 = vmul.f32 %v6027_v53, %v5738_v61  ;;  %6936 = vst [vmem:[#allocation51_spill] sm:$0xff] %v6041_v34  ;;  %4679 = vmatpush3.bf16.msra.mxu1 %v6041_v34  ;;  %4703 = vmatpush3.bf16.msra.mxu0 %v6041_v34  ;;  %v2076_v61 = vld [vmem:[%s6935_s11 + $0x10] sm:$0xff] }
 0x13c   : > { %6934 = vst [vmem:[#allocation50_spill] sm:$0xff] %v6029_v7  ;;  %v1095_v4 = vmul.f32 %v6029_v7, %v5744_v62  ;;  %1967 = vmatmul.mubr.bf16.gmra.mrb[28].mxu1 %v1129_v48  ;;  %4680 = vmatprep.subr.bf16.mxu1 %v6853_v21  ;;  %v2077_v62 = vld [vmem:[%s6935_s11 + $0x18] sm:$0xff]  ;;  %v6067_v48 = vpack.c.bf16 %v2079_v10, %v2078_v37 }
 0x13d   : > { %4704 = vmatprep.subr.bf16.mxu0 %v6853_v21  ;;  %v6055_v30 = vpack.c.bf16 %v2077_v62, %v2076_v61  ;;  %v6091_v61 = vpack.c.bf16 %v2083_v58, %v2082_v57 }
 0x13e   : > { %v1131_v38 = vpack.c.bf16 %v1095_v4, %v1094_v63  ;;  %6938 = vst [vmem:[#allocation53_spill] sm:$0xff] %v6067_v48  ;;  %v2080_v63 = vld [vmem:[%s6935_s11 + $0x30] sm:$0xff]  ;;  %v2081_v4 = vld [vmem:[%s6935_s11 + $0x38] sm:$0xff] }
 0x13f   : > { %6937 = vst [vmem:[#allocation52_spill] sm:$0xff] %v6055_v30  ;;  %4682 = vmatpush3.bf16.msra.mxu1 %v6055_v30  ;;  %4706 = vmatpush3.bf16.msra.mxu0 %v6055_v30  ;;  %6940 = vst [vmem:[#allocation55_spill] sm:$0xff] %v6091_v61 }
 0x140   : > { %4510 = vmatmul.mubr.bf16.gmra.mrb[36].mxu0 %v1131_v38  ;;  %4683 = vmatprep.subr.bf16.mxu1 %v6853_v21  ;;  %v6079_v38 = vpack.c.bf16 %v2081_v4, %v2080_v63  ;;  %v2084_v4 = vld [vmem:[%s6935_s11 + $0x50] sm:$0xff] }
 0x141   : > { %4707 = vmatprep.subr.bf16.mxu0 %v6853_v21 }
 0x142   : > { %6939 = vst [vmem:[#allocation54_spill] sm:$0xff] %v6079_v38 }
 0x143   : > { %4685 = vmatpush3.bf16.msra.mxu1 %v6067_v48  ;;  %4709 = vmatpush3.bf16.msra.mxu0 %v6067_v48 }
 0x144   : > { %4686 = vmatprep.subr.bf16.mxu1 %v6853_v21  ;;  %4710 = vmatprep.subr.bf16.mxu0 %v6853_v21 }
 0x147   : > { %4688 = vmatpush3.bf16.msra.mxu1 %v6079_v38  ;;  %4712 = vmatpush3.bf16.msra.mxu0 %v6079_v38  ;;  %v2085_v38 = vld [vmem:[%s6935_s11 + $0x58] sm:$0xff] }
 0x148   : > { %4689 = vmatprep.subr.bf16.mxu1 %v6853_v21  ;;  %4713 = vmatprep.subr.bf16.mxu0 %v6853_v21  ;;  %v6103_v58 = vpack.c.bf16 %v2085_v38, %v2084_v4 }
 0x14a   : > { %6941 = vst [vmem:[#allocation56_spill] sm:$0xff] %v6103_v58 }
 0x14b   : > { %4691 = vmatpush3.bf16.msra.mxu1 %v6091_v61  ;;  %4715 = vmatpush3.bf16.msra.mxu0 %v6091_v61 }
 0x14c   : > { %4692 = vmatprep.subr.bf16.mxu1 %v6853_v21  ;;  %4716 = vmatprep.subr.bf16.mxu0 %v6853_v21 }
 0x14f   : > { %4694 = vmatpush3.bf16.msra.mxu1 %v6103_v58  ;;  %4718 = vmatpush3.bf16.msra.mxu0 %v6103_v58  ;;  %v2088_v58 = vld [vmem:[%s6935_s11 + $0x70] sm:$0xff] }
 0x150   : > { %4695 = vmatprep.subr.bf16.mxu1 %v6853_v21  ;;  %4719 = vmatprep.subr.bf16.mxu0 %v6853_v21 }
 0x19b   : > { %v4093_v62 = vpop.f32.mrb[0].mxu0 }
 0x19c   : > { %v4094_v37 = vpop.f32.mrb[1].mxu0 }
 0x19d   : > { %v4095_v10 = vadd.f32 %v4094_v37, %v4093_v62  ;;  %v4096_v63 = vpop.f32.mrb[2].mxu0  ;;  %v2086_v62 = vld [vmem:[%s6935_s11 + $0x60] sm:$0xff]  ;;  %v2087_v37 = vld [vmem:[%s6935_s11 + $0x68] sm:$0xff] }
 0x19e   : > { %v4097_v57 = vpop.f32.mrb[3].mxu0  ;;  %v6115_v61 = vpack.c.bf16 %v2087_v37, %v2086_v62  ;;  %v2089_v62 = vld [vmem:[%s6935_s11 + $0x78] sm:$0xff] }
 0x19f   : > { %v4098_v48 = vadd.f32 %v4097_v57, %v4096_v63  ;;  %v6127_v30 = vpack.c.bf16 %v2089_v62, %v2088_v58  ;;  %v3907_v58 = vld [vmem:[%s6944_s26] ss:$0 sm:$0xff] }
 0x1a0   : > { %6942 = vst [vmem:[#allocation57_spill] sm:$0xff] %v6115_v61  ;;  %4697 = vmatpush3.bf16.msra.mxu1 %v6115_v61  ;;  %4721 = vmatpush3.bf16.msra.mxu0 %v6115_v61  ;;  %v6859_v61 = vmov 0.0   ;;  %v1750_v44 = vadd.f32 %v4095_v10, %v3907_v58 }
 0x1a1   : > { %4698 = vmatprep.subr.bf16.mxu1 %v6853_v21  ;;  %4722 = vmatprep.subr.bf16.mxu0 %v6853_v21  ;;  %6943 = vst [vmem:[#allocation58_spill] sm:$0xff] %v6127_v30  ;;  %v1753_v33 = vadd.f32 %v4098_v48, %v3907_v58 }
 0x1a2   : > { %4545 = vmatprep.mubr.msk.f32.mxu1 %vm5171_vm2, %v6859_v61  ;;  %4580 = vmatprep.mubr.msk.f32.mxu0 %vm5171_vm2, %v6859_v61 }
 0x1a3   : > { %v4099_v38 = vpop.f32.mrb[4].mxu0 }
 0x1a4   : > { %v4100_v63 = vpop.f32.mrb[5].mxu0  ;;  %4700 = vmatpush3.bf16.msra.mxu1 %v6127_v30  ;;  %4724 = vmatpush3.bf16.msra.mxu0 %v6127_v30 }
 0x1a5   : > { %v4101_v4 = vadd.f32 %v4100_v63, %v4099_v38  ;;  %v4102_v57 = vpop.f32.mrb[6].mxu0 }
 0x1a6   : > { %v4103_v37 = vpop.f32.mrb[7].mxu0 }
 0x1a7   : > { %v4104_v38 = vadd.f32 %v4103_v37, %v4102_v57  ;;  %v1758_v0 = vadd.f32 %v4101_v4, %v3907_v58 }
 0x1a9   : > { %v1761_v10 = vadd.f32 %v4104_v38, %v3907_v58 }
 0x1af   : > { %v4105_v63 = vpop.f32.mrb[8].mxu0 }
 0x1b0   : > { %v4106_v34 = vpop.f32.mrb[9].mxu0 }
 0x1b1   : > { %v4107_v7 = vadd.f32 %v4106_v34, %v4105_v63  ;;  %v4108_v21 = vpop.f32.mrb[10].mxu0 }
 0x1b2   : > { %v4109_v62 = vpop.f32.mrb[11].mxu0 }
 0x1b3   : > { %v4110_v53 = vadd.f32 %v4109_v62, %v4108_v21  ;;  %v4133_v31 = vpop.f32.mrb[0].mxu1 }
 0x1b4   : > { %v4134_v28 = vpop.f32.mrb[1].mxu1 }
 0x1b5   : > { %v4135_v61 = vadd.f32 %v4134_v28, %v4133_v31  ;;  %v4136_v57 = vpop.f32.mrb[2].mxu1 }
 0x1b6   : > { %v4137_v37 = vpop.f32.mrb[3].mxu1 }
 0x1b7   : > { %v1815_v32 = vadd.f32 %v4135_v61, %v1750_v44  ;;  %v4138_v30 = vadd.f32 %v4137_v37, %v4136_v57 }
 0x1b9   : > { %v1818_v13 = vadd.f32 %v4138_v30, %v1753_v33 }
 0x1bf   : > { %v4111_v52 = vpop.f32.mrb[12].mxu0 }
 0x1c0   : > { %v4112_v34 = vpop.f32.mrb[13].mxu0 }
 0x1c1   : > { %v4113_v63 = vadd.f32 %v4112_v34, %v4111_v52  ;;  %v4114_v45 = vpop.f32.mrb[14].mxu0 }
 0x1c2   : > { %v4115_v8 = vpop.f32.mrb[15].mxu0 }
 0x1c3   : > { %v4116_v43 = vadd.f32 %v4115_v8, %v4114_v45  ;;  %v4139_v42 = vpop.f32.mrb[4].mxu1  ;;  %v1766_v8 = vadd.f32 %v4107_v7, %v3907_v58 }
 0x1c4   : > { %v4140_v16 = vpop.f32.mrb[5].mxu1 }
 0x1c5   : > { %v4141_v21 = vadd.f32 %v4140_v16, %v4139_v42  ;;  %v4142_v62 = vpop.f32.mrb[6].mxu1  ;;  %v1769_v16 = vadd.f32 %v4110_v53, %v3907_v58 }
 0x1c6   : > { %v4143_v40 = vpop.f32.mrb[7].mxu1 }
 0x1c7   : > { %v1823_v28 = vadd.f32 %v4141_v21, %v1758_v0  ;;  %v4144_v31 = vadd.f32 %v4143_v40, %v4142_v62 }
 0x1c9   : > { %v1826_v3 = vadd.f32 %v4144_v31, %v1761_v10 }
 0x1cc   : > { %v4173_v48 = vpop.f32.mrb[16].mxu0 }
 0x1cd   : > { %v4174_v44 = vpop.f32.mrb[17].mxu0 }
 0x1ce   : > { %v4175_v61 = vadd.f32 %v4174_v44, %v4173_v48  ;;  %v4176_v33 = vpop.f32.mrb[18].mxu0 }
 0x1cf   : > { %v4145_v30 = vpop.f32.mrb[8].mxu1  ;;  %v4177_v57 = vpop.f32.mrb[19].mxu0 }
 0x1d0   : > { %v1880_v52 = vadd.f32 %v4175_v61, %v1815_v32  ;;  %v4178_v37 = vadd.f32 %v4177_v57, %v4176_v33  ;;  %v4146_v34 = vpop.f32.mrb[9].mxu1  ;;  %v1774_v61 = vadd.f32 %v4113_v63, %v3907_v58 }
 0x1d1   : > { %v4147_v45 = vadd.f32 %v4146_v34, %v4145_v30  ;;  %v4148_v9 = vpop.f32.mrb[10].mxu1 }
 0x1d2   : > { %v1883_v4 = vadd.f32 %v4178_v37, %v1818_v13  ;;  %v4149_v42 = vpop.f32.mrb[11].mxu1  ;;  %v1777_v13 = vadd.f32 %v4116_v43, %v3907_v58 }
 0x1d3   : > { %v1831_v11 = vadd.f32 %v4147_v45, %v1766_v8  ;;  %v4150_v38 = vadd.f32 %v4149_v42, %v4148_v9 }
 0x1d5   : > { %v1834_v0 = vadd.f32 %v4150_v38, %v1769_v16 }
 0x1d8   : > { %v4179_v40 = vpop.f32.mrb[20].mxu0 }
 0x1d9   : > { %v4180_v21 = vpop.f32.mrb[21].mxu0 }
 0x1da   : > { %v4181_v62 = vadd.f32 %v4180_v21, %v4179_v40  ;;  %v4182_v10 = vpop.f32.mrb[22].mxu0 }
 0x1db   : > { %v4151_v31 = vpop.f32.mrb[12].mxu1  ;;  %v4183_v48 = vpop.f32.mrb[23].mxu0 }
 0x1dc   : > { %v1888_v44 = vadd.f32 %v4181_v62, %v1823_v28  ;;  %v4184_v54 = vadd.f32 %v4183_v48, %v4182_v10  ;;  %v4152_v32 = vpop.f32.mrb[13].mxu1 }
 0x1dd   : > { %v4153_v33 = vadd.f32 %v4152_v32, %v4151_v31  ;;  %v4154_v7 = vpop.f32.mrb[14].mxu1 }
 0x1de   : > { %v1891_v30 = vadd.f32 %v4184_v54, %v1826_v3  ;;  %v4155_v57 = vpop.f32.mrb[15].mxu1 }
 0x1df   : > { %v1839_v37 = vadd.f32 %v4153_v33, %v1774_v61  ;;  %v4156_v53 = vadd.f32 %v4155_v57, %v4154_v7 }
 0x1e0   : > { %v4185_v34 = vpop.f32.mrb[24].mxu0 }
 0x1e1   : > { %v1842_v9 = vadd.f32 %v4156_v53, %v1777_v13  ;;  %v4186_v8 = vpop.f32.mrb[25].mxu0 }
 0x1e2   : > { %v4187_v45 = vadd.f32 %v4186_v8, %v4185_v34  ;;  %v4188_v42 = vpop.f32.mrb[26].mxu0 }
 0x1e3   : > { %v4189_v16 = vpop.f32.mrb[27].mxu0 }
 0x1e4   : > { %v1896_v38 = vadd.f32 %v4187_v45, %v1831_v11  ;;  %v4190_v40 = vadd.f32 %v4189_v16, %v4188_v42 }
 0x1e6   : > { %v1899_v21 = vadd.f32 %v4190_v40, %v1834_v0 }
 0x1e7   : > { %v4213_v28 = vpop.f32.mrb[16].mxu1 }
 0x1e8   : > { %v4214_v62 = vpop.f32.mrb[17].mxu1 }
 0x1e9   : > { %v4215_v10 = vadd.f32 %v4214_v62, %v4213_v28  ;;  %v4216_v63 = vpop.f32.mrb[18].mxu1 }
 0x1ea   : > { %v4217_v31 = vpop.f32.mrb[19].mxu1 }
 0x1eb   : > { %v4218_v48 = vadd.f32 %v4217_v31, %v4216_v63  ;;  %v1945_v54 = vadd.f32 %v4215_v10, %v1880_v52 }
 0x1ec   : > { %v4191_v3 = vpop.f32.mrb[28].mxu0 }
 0x1ed   : > { %v4192_v43 = vpop.f32.mrb[29].mxu0  ;;  %v1948_v58 = vadd.f32 %v4218_v48, %v1883_v4 }
 0x1ee   : > { %v4193_v32 = vadd.f32 %v4192_v43, %v4191_v3  ;;  %v4194_v61 = vpop.f32.mrb[30].mxu0 }
 0x1ef   : > { %v4195_v33 = vpop.f32.mrb[31].mxu0 }
 0x1f0   : > { %v1904_v7 = vadd.f32 %v4193_v32, %v1839_v37  ;;  %v4196_v57 = vadd.f32 %v4195_v33, %v4194_v61 }
 0x1f2   : > { %v1907_v13 = vadd.f32 %v4196_v57, %v1842_v9 }
 0x1f3   : > { %v4219_v53 = vpop.f32.mrb[20].mxu1 }
 0x1f4   : > { %v4220_v11 = vpop.f32.mrb[21].mxu1 }
 0x1f5   : > { %v4221_v34 = vadd.f32 %v4220_v11, %v4219_v53  ;;  %v4222_v0 = vpop.f32.mrb[22].mxu1 }
 0x1f6   : > { %v4223_v8 = vpop.f32.mrb[23].mxu1 }
 0x1f7   : > { %v4224_v45 = vadd.f32 %v4223_v8, %v4222_v0  ;;  %v1953_v42 = vadd.f32 %v4221_v34, %v1888_v44 }
 0x1f9   : > { %v1956_v16 = vadd.f32 %v4224_v45, %v1891_v30 }
 0x1ff   : > { %v4225_v40 = vpop.f32.mrb[24].mxu1 }
 0x200   : > { %v4226_v28 = vpop.f32.mrb[25].mxu1 }
 0x201   : > { %v4227_v52 = vadd.f32 %v4226_v28, %v4225_v40  ;;  %v4228_v62 = vpop.f32.mrb[26].mxu1 }
 0x202   : > { %v4229_v10 = vpop.f32.mrb[27].mxu1 }
 0x203   : > { %v4230_v4 = vadd.f32 %v4229_v10, %v4228_v62  ;;  %v4507_v63 = vpop.f32.mrb[32].mxu0  ;;  %v1961_v31 = vadd.f32 %v4227_v52, %v1896_v38 }
 0x204   : > { %v6140_v48 = vadd.f32 %v4507_v63, %v1953_v42  ;;  %v2009_v37 = vpop.f32.mrb[33].mxu0 }
 0x205   : > { %v6142_v9 = vadd.f32 %v2009_v37, %v1945_v54  ;;  %v4508_v3 = vpop.f32.mrb[34].mxu0  ;;  %v1964_v43 = vadd.f32 %v4230_v4, %v1899_v21 }
 0x206   : > { %v6144_v32 = vadd.f32 %v4508_v3, %v1956_v16  ;;  %v2012_v61 = vpop.f32.mrb[35].mxu0  ;;  %v2055_v21 = vmul.f32 %v6140_v48, %v6140_v48 }
 0x207   : > { %v6146_v44 = vadd.f32 %v2012_v61, %v1948_v58  ;;  %v2053_v33 = vmul.f32 %v6142_v9, %v6142_v9 }
 0x208   : > { %v2056_v40 = vmul.f32 %v6144_v32, %v6144_v32 }
 0x209   : > { %v2054_v30 = vmul.f32 %v6146_v44, %v6146_v44  ;;  %v2040_v38 = vadd.f32 %v6146_v44, %v6142_v9 }
 0x20b   : > { %v2061_v57 = vadd.f32 %v2054_v30, %v2053_v33  ;;  %v2041_v11 = vadd.f32 %v2040_v38, %v6140_v48 }
 0x20d   : > { %v2062_v8 = vadd.f32 %v2061_v57, %v2055_v21  ;;  %v2042_v10 = vadd.f32 %v2041_v11, %v6144_v32 }
 0x20f   : > { %v4231_v53 = vpop.f32.mrb[28].mxu1 }
 0x210   : > { %v4232_v54 = vpop.f32.mrb[29].mxu1 }
 0x211   : > { %v4233_v34 = vadd.f32 %v4232_v54, %v4231_v53  ;;  %v4234_v58 = vpop.f32.mrb[30].mxu1 }
 0x212   : > { %v4235_v0 = vpop.f32.mrb[31].mxu1 }
 0x213   : > { %v4236_v45 = vadd.f32 %v4235_v0, %v4234_v58  ;;  %v1969_v42 = vadd.f32 %v4233_v34, %v1904_v7  ;;  %v4511_v16 = vpop.f32.mrb[36].mxu0  ;;  %v2063_v7 = vadd.f32 %v2062_v8, %v2056_v40 }
 0x214   : > { %v2025_v28 = vpop.f32.mrb[37].mxu0 }
 0x215   : > { %v6159_v52 = vadd.f32 %v4511_v16, %v1969_v42  ;;  %v6161_v62 = vadd.f32 %v2025_v28, %v1961_v31  ;;  %v1972_v4 = vadd.f32 %v4236_v45, %v1907_v13  ;;  %v4512_v63 = vpop.f32.mrb[38].mxu0 }
 0x216   : > { %v2028_v37 = vpop.f32.mrb[39].mxu0 }
 0x217   : > { %v2043_v3 = vadd.f32 %v2042_v10, %v6161_v62  ;;  %v2057_v61 = vmul.f32 %v6161_v62, %v6161_v62  ;;  %v6167_v30 = vadd.f32 %v4512_v63, %v1972_v4  ;;  %v6169_v33 = vadd.f32 %v2028_v37, %v1964_v43 }
 0x218   : > { %v2059_v13 = vmul.f32 %v6159_v52, %v6159_v52 }
 0x219   : > { %v2064_v38 = vadd.f32 %v2063_v7, %v2057_v61  ;;  %v2044_v57 = vadd.f32 %v2043_v3, %v6169_v33  ;;  %v2058_v31 = vmul.f32 %v6169_v33, %v6169_v33  ;;  %v2060_v21 = vmul.f32 %v6167_v30, %v6167_v30  ;;  %v4925_v3 = vld [vmem:[%s5350_s16 + $0x40] sm:$0xff]  }
 0x21a   : > { %v4926_v61 = vld [vmem:[%s5350_s16] sm:$0xff]   ;;  %4283 = vmatprep.subr.bf16.mxu1 %v4925_v3  ;;  %v4951_v3 = vld [vmem:[%s5350_s16 + $0xf0] sm:$0xff]  }
 0x21b   : > { %v2045_v53 = vadd.f32 %v2044_v57, %v6159_v52  ;;  %v2065_v54 = vadd.f32 %v2064_v38, %v2058_v31  ;;  %v4927_v7 = vld [vmem:[%s5350_s16 + $0xc0] sm:$0xff]   ;;  %v4929_v57 = vld [vmem:[%s5350_s16 + $0x48] sm:$0xff]  }
 0x21c   : > { %v4928_v38 = vld [vmem:[%s5350_s16 + $0x80] sm:$0xff]   ;;  %4323 = vmatprep.subr.bf16.mxu0 %v4927_v7  ;;  %v4931_v31 = vld [vmem:[%s5350_s16 + $0xc8] sm:$0xff]   ;;  %v4952_v7 = vld [vmem:[%s5350_s16 + $0xb0] sm:$0xff]  }
 0x21d   : > { %v2046_v11 = vadd.f32 %v2045_v53, %v6167_v30  ;;  %v2066_v34 = vadd.f32 %v2065_v54, %v2059_v13  ;;  %v4930_v13 = vld [vmem:[%s5350_s16 + $0x8] sm:$0xff]   ;;  %v4933_v54 = vld [vmem:[%s5350_s16 + $0x50] sm:$0xff]  }
 0x21e   : > { %v4932_v53 = vld [vmem:[%s5350_s16 + $0x88] sm:$0xff]  }
 0x21f   : > { %v2047_v43 = vrot.slane %v2046_v11, 4  ;;  %v2067_v58 = vadd.f32 %v2066_v34, %v2060_v21  ;;  %v4935_v21 = vld [vmem:[%s5350_s16 + $0xd0] sm:$0xff]  }
 0x220   : > { %v4936_v34 = vld [vmem:[%s5350_s16 + $0x90] sm:$0xff]  }
 0x221   : > { %v2048_v0 = vadd.f32 %v2047_v43, %v2046_v11  ;;  %v2068_v8 = vrot.slane %v2067_v58, 4  ;;  %v4934_v11 = vld [vmem:[%s5350_s16 + $0x10] sm:$0xff]   ;;  %v4937_v43 = vld [vmem:[%s5350_s16 + $0x58] sm:$0xff]  }
 0x223   : > { %v2049_v45 = vrot.slane %v2048_v0, 2  ;;  %v2069_v42 = vadd.f32 %v2068_v8, %v2067_v58  ;;  %v4939_v58 = vld [vmem:[%s5350_s16 + $0xd8] sm:$0xff]  }
 0x224   : > { %v4940_v8 = vld [vmem:[%s5350_s16 + $0x98] sm:$0xff]  }
 0x225   : > { %v2050_v16 = vadd.f32 %v2049_v45, %v2048_v0  ;;  %v2070_v40 = vrot.slane %v2069_v42, 2  ;;  %v4938_v0 = vld [vmem:[%s5350_s16 + $0x18] sm:$0xff]   ;;  %v4941_v45 = vld [vmem:[%s5350_s16 + $0x60] sm:$0xff]  }
 0x227   : > { %v2051_v28 = vrot.slane %v2050_v16, 1  ;;  %v2071_v10 = vadd.f32 %v2070_v40, %v2069_v42  ;;  %v4943_v42 = vld [vmem:[%s5350_s16 + $0xe0] sm:$0xff]  }
 0x228   : > { %v4944_v40 = vld [vmem:[%s5350_s16 + $0xa0] sm:$0xff]  }
 0x229   : > { %v2052_v4 = vadd.f32 %v2051_v28, %v2050_v16  ;;  %v2072_v63 = vrot.slane %v2071_v10, 1  ;;  %v4942_v16 = vld [vmem:[%s5350_s16 + $0x20] sm:$0xff]   ;;  %v4945_v28 = vld [vmem:[%s5350_s16 + $0x68] sm:$0xff]  }
 0x22b   : > { %4546 = vmatmul.mubr.f32.vlgmr.msra.gmra.mrb[32].mxu1 %v2052_v4  ;;  %v2073_v37 = vadd.f32 %v2072_v63, %v2071_v10  ;;  %v4947_v10 = vld [vmem:[%s5350_s16 + $0xe8] sm:$0xff]  }
 0x22c   : > { %4284 = vmatpush3.bf16.msra.mxu1 %v4926_v61  ;;  %v4946_v4 = vld [vmem:[%s5350_s16 + $0x28] sm:$0xff]   ;;  %v4950_v61 = vld [vmem:[%s5350_s16 + $0x30] sm:$0xff]  }
 0x22d   : > { %4581 = vmatmul.mubr.f32.vlgmr.msra.gmra.mrb[40].mxu0 %v2073_v37  ;;  %4285 = vmatprep.subr.bf16.mxu1 %v4929_v57  ;;  %v4948_v63 = vld [vmem:[%s5350_s16 + $0xa8] sm:$0xff]   ;;  %v4949_v37 = vld [vmem:[%s5350_s16 + $0x70] sm:$0xff]   ;;  %v4954_v57 = vld [vmem:[%s5350_s16 + $0x38] sm:$0xff]  }
 0x22e   : > { %4324 = vmatpush3.bf16.msra.mxu0 %v4928_v38  ;;  %v4953_v38 = vld [vmem:[%s5350_s16 + $0x78] sm:$0xff]  }
 0x22f   : > { %4325 = vmatprep.subr.bf16.mxu0 %v4931_v31  ;;  %v4955_v31 = vld [vmem:[%s5350_s16 + $0xf8] sm:$0xff]  }
 0x230   : > { %4286 = vmatpush3.bf16.msra.mxu1 %v4930_v13  ;;  %v4956_v13 = vld [vmem:[%s5350_s16 + $0xb8] sm:$0xff]  }
 0x231   : > { %4287 = vmatprep.subr.bf16.mxu1 %v4933_v54  ;;  %v4959_v54 = vld [vmem:[%s5350_s16 + $0x1c0] sm:$0xff]  }
 0x232   : > { %4326 = vmatpush3.bf16.msra.mxu0 %v4932_v53  ;;  %v4957_v53 = vld [vmem:[%s5350_s16 + $0x140] sm:$0xff]  }
 0x233   : > { %4327 = vmatprep.subr.bf16.mxu0 %v4935_v21 }
 0x234   : > { %4288 = vmatpush3.bf16.msra.mxu1 %v4934_v11 }
 0x235   : > { %4289 = vmatprep.subr.bf16.mxu1 %v4937_v43 }
 0x236   : > { %4328 = vmatpush3.bf16.msra.mxu0 %v4936_v34 }
 0x237   : > { %4329 = vmatprep.subr.bf16.mxu0 %v4939_v58 }
 0x238   : > { %4290 = vmatpush3.bf16.msra.mxu1 %v4938_v0 }
 0x239   : > { %4291 = vmatprep.subr.bf16.mxu1 %v4941_v45 }
 0x23a   : > { %4330 = vmatpush3.bf16.msra.mxu0 %v4940_v8 }
 0x23b   : > { %4331 = vmatprep.subr.bf16.mxu0 %v4943_v42  ;;  %v2235_v42 = vld [vmem:[%s6945_s22] sm:$0x1] }
 0x23c   : > { %4292 = vmatpush3.bf16.msra.mxu1 %v4942_v16  ;;  %v6220_v16 = vsub.s32 0, %v5556_v29  ;;  %v4976_v29 = vld [vmem:[%s5350_s16 + $0x1a0] sm:$0xff]  }
 0x23d   : > { %4293 = vmatprep.subr.bf16.mxu1 %v4945_v28 }
 0x23e   : > { %4332 = vmatpush3.bf16.msra.mxu0 %v4944_v40 }
 0x23f   : > { %4333 = vmatprep.subr.bf16.mxu0 %v4947_v10  ;;  %v2237_v10 = vld [vmem:[%s561_s18] sm:$0x1]  ;;  %s6995_s18 = smov %s6994_s28 }
 0x240   : > { %4294 = vmatpush3.bf16.msra.mxu1 %v4946_v4 }
 0x241   : > { %4295 = vmatprep.subr.bf16.mxu1 %v4949_v37 }
 0x242   : > { %4334 = vmatpush3.bf16.msra.mxu0 %v4948_v63 }
 0x243   : > { %4335 = vmatprep.subr.bf16.mxu0 %v4951_v3 }
 0x244   : > { %4296 = vmatpush3.bf16.msra.mxu1 %v4950_v61 }
 0x245   : > { %4297 = vmatprep.subr.bf16.mxu1 %v4953_v38 }
 0x246   : > { %4336 = vmatpush3.bf16.msra.mxu0 %v4952_v7 }
 0x247   : > { %4337 = vmatprep.subr.bf16.mxu0 %v4955_v31 }
 0x248   : > { %4298 = vmatpush3.bf16.msra.mxu1 %v4954_v57 }
 0x249   : > { %4363 = vmatprep.subr.bf16.mxu1 %v4957_v53 }
 0x24a   : > { %4338 = vmatpush3.bf16.msra.mxu0 %v4956_v13 }
 0x24b   : > { %4403 = vmatprep.subr.bf16.mxu0 %v4959_v54 }
 0x2fe   : > { %v2156_v21 = vpop.f32.mrb[32].mxu1 }
 0x2ff   : > { %v2230_v11 = vmul.f32 %v2156_v21, %v2156_v21  ;;  %v4547_v34 = vpop.f32.mrb[33].mxu1 }
 0x300   : > { %v2226_v43 = vpop.f32.mrb[40].mxu0 }
 0x301   : > { %v2231_v58 = vsub.f32 %v2226_v43, %v2230_v11  ;;  %v4582_v0 = vpop.f32.mrb[41].mxu0 }
 0x303   : > { %v2232_v8 = vmax.f32 %v2231_v58, 0.0 }
 0x305   : > { %v2233_v45 = vadd.f32 1e-05, %v2232_v8 }
 0x307   : > { %4997 = vrsqrt.f32 %v2233_v45 }
 0x311   : > { %v4998_v40 = vpop.eup %4997 }
 0x312   : > { %v2236_v28 = vmul.f32 %v4998_v40, %v2235_v42 }
 0x314   : > { %v2238_v4 = vmul.f32 %v2236_v28, %v2156_v21  ;;  %v2243_v63 = vrot.slane %v2236_v28, %v6220_v16 }
 0x316   : > { %v2239_v37 = vsub.f32 %v2237_v10, %v2238_v4  ;;  %v2244_v3 = vmul.f32 %v2243_v63, %v6142_v9  ;;  %v2251_v7 = vmul.f32 %v2243_v63, %v6167_v30  ;;  %v2250_v38 = vmul.f32 %v2243_v63, %v6159_v52 }
 0x317   : > { %v2245_v57 = vmul.f32 %v2243_v63, %v6146_v44  ;;  %v2246_v31 = vmul.f32 %v2243_v63, %v6140_v48  ;;  %v2247_v13 = vmul.f32 %v2243_v63, %v6144_v32  ;;  %v2248_v53 = vmul.f32 %v2243_v63, %v6161_v62 }
 0x318   : > { %v2256_v61 = vrot.slane %v2239_v37, %v6220_v16  ;;  %v2249_v54 = vmul.f32 %v2243_v63, %v6169_v33 }
 0x31a   : > { %v2258_v21 = vadd.f32 %v2256_v61, %v2244_v3  ;;  %v2265_v11 = vadd.f32 %v2256_v61, %v2251_v7  ;;  %v2264_v34 = vadd.f32 %v2256_v61, %v2250_v38  ;;  %v2259_v9 = vadd.f32 %v2256_v61, %v2245_v57 }
 0x31b   : > { %v2260_v43 = vadd.f32 %v2256_v61, %v2246_v31  ;;  %v6237_v58 = vadd.f32 %v2256_v61, %v2247_v13  ;;  %v6239_v30 = vadd.f32 %v2256_v61, %v2248_v53  ;;  %v6241_v52 = vadd.f32 %v2256_v61, %v2249_v54 }
 0x31c   : > { %v3980_v44 = vmul.f32 -1.442695, %v2258_v21  ;;  %v3987_v0 = vmul.f32 -1.442695, %v2265_v11  ;;  %v3986_v48 = vmul.f32 -1.442695, %v2264_v34 }
 0x31d   : > { %v3981_v8 = vmul.f32 -1.442695, %v2259_v9  ;;  %v3982_v32 = vmul.f32 -1.442695, %v2260_v43  ;;  %v3983_v62 = vmul.f32 -1.442695, %v6237_v58 }
 0x31e   : > { %4999 = vpow2.f32 %v3980_v44  ;;  %v3984_v33 = vmul.f32 -1.442695, %v6239_v30  ;;  %v3985_v45 = vmul.f32 -1.442695, %v6241_v52  ;;  %v6251_v44 = vld [vmem:[%s6946_s21] ss:$0 sm:$0xff] }
 0x31f   : > { %5001 = vpow2.f32 %v3987_v0  ;;  %s5173_s21 = smov [#allocation2]  }
 0x320   : > { %5003 = vpow2.f32 %v3986_v48 }
 0x321   : > { %5005 = vpow2.f32 %v3981_v8 }
 0x322   : > { %5007 = vpow2.f32 %v3982_v32 }
 0x323   : > { %5009 = vpow2.f32 %v3983_v62 }
 0x324   : > { %5011 = vpow2.f32 %v3984_v33 }
 0x325   : > { %5013 = vpow2.f32 %v3985_v45 }
 0x328   : > { %v5000_v42 = vpop.eup %4999 }
 0x329   : > { %v5002_v40 = vpop.eup %5001  ;;  %v2290_v28 = vadd.f32 1.0, %v5000_v42 }
 0x32a   : > { %v5004_v10 = vpop.eup %5003  ;;  %v2297_v4 = vadd.f32 1.0, %v5002_v40 }
 0x32b   : > { %v5006_v63 = vpop.eup %5005  ;;  %5015 = vrcp.f32 %v2290_v28  ;;  %v2296_v37 = vadd.f32 1.0, %v5004_v10 }
 0x32c   : > { %v5008_v3 = vpop.eup %5007  ;;  %5017 = vrcp.f32 %v2297_v4  ;;  %v2291_v61 = vadd.f32 1.0, %v5006_v63 }
 0x32d   : > { %v5010_v7 = vpop.eup %5009  ;;  %5019 = vrcp.f32 %v2296_v37  ;;  %v2292_v38 = vadd.f32 1.0, %v5008_v3 }
 0x32e   : > { %v5012_v57 = vpop.eup %5011  ;;  %5021 = vrcp.f32 %v2291_v61  ;;  %v2293_v31 = vadd.f32 1.0, %v5010_v7 }
 0x32f   : > { %5023 = vrcp.f32 %v2292_v38  ;;  %v2294_v13 = vadd.f32 1.0, %v5012_v57  ;;  %v5014_v53 = vpop.eup %5013 }
 0x330   : > { %5025 = vrcp.f32 %v2293_v31  ;;  %v2295_v0 = vadd.f32 1.0, %v5014_v53 }
 0x331   : > { %5027 = vrcp.f32 %v2294_v13 }
 0x332   : > { %5029 = vrcp.f32 %v2295_v0 }
 0x335   : > { %v5016_v54 = vpop.eup %5015 }
 0x336   : > { %v5018_v48 = vpop.eup %5017  ;;  %v2314_v8 = vmul.f32 %v5016_v54, %v2258_v21 }
 0x337   : > { %v5020_v32 = vpop.eup %5019  ;;  %v2321_v62 = vmul.f32 %v5018_v48, %v2265_v11 }
 0x338   : > { %v5022_v33 = vpop.eup %5021  ;;  %v6254_v45 = vadd.f32 %v6251_v44, %v2314_v8  ;;  %v2320_v42 = vmul.f32 %v5020_v32, %v2264_v34 }
 0x339   : > { %v5024_v40 = vpop.eup %5023  ;;  %v6257_v28 = vadd.f32 %v6251_v44, %v2321_v62  ;;  %v2315_v10 = vmul.f32 %v5022_v33, %v2259_v9  ;;  %v4958_v62 = vld [vmem:[%s5350_s16 + $0x100] sm:$0xff]  }
 0x33a   : > { %v5026_v4 = vpop.eup %5025  ;;  %v2362_v63 = vmul.f32 %v6254_v45, %v5638_v59  ;;  %v6262_v37 = vadd.f32 %v6251_v44, %v2320_v42  ;;  %v2337_v21 = vrot.slane %v6254_v45, 7  ;;  %v2316_v11 = vmul.f32 %v5024_v40, %v2260_v43 }
 0x33b   : > { %v2361_v3 = vmul.f32 %v6257_v28, %v5624_v55  ;;  %v2344_v34 = vrot.slane %v6257_v28, 7  ;;  %v6269_v61 = vadd.f32 %v6251_v44, %v2315_v10  ;;  %v2369_v9 = vrot.slane %v6254_v45, 1  ;;  %v5028_v48 = vpop.eup %5027 }
 0x33c   : > { %v2343_v7 = vrot.slane %v6262_v37, 7  ;;  %v6274_v59 = vadd.f32 %v6251_v44, %v2316_v11  ;;  %v2376_v38 = vrot.slane %v6257_v28, 1  ;;  %v2317_v57 = vmul.f32 %v5026_v4, %v6237_v58  ;;  %v5030_v11 = vpop.eup %5029 }
 0x33d   : > { %v2434_v43 = vpack.c.bf16 %v2362_v63, %v2361_v3  ;;  %v6280_v55 = vsel %vm615_vm0, %v2344_v34, %v2337_v21  ;;  %v2338_v31 = vrot.slane %v6269_v61, 7  ;;  %v2363_v13 = vmul.f32 %v6269_v61, %v5652_v5 }
 0x33e   : > { %v6289_v53 = vsel %vm615_vm0, %v2343_v7, %v2344_v34  ;;  %v2354_v58 = vmul.f32 %v6280_v55, %v5640_v60  ;;  %v2393_v54 = vmul.f32 %v6280_v55, %v5699_v35  ;;  %v2364_v0 = vmul.f32 %v6274_v59, %v5654_v6 }
 0x33f   : > { %3084 = vmatprep.mubr.bf16.mxu1 %v2434_v43  ;;  %v2353_v5 = vmul.f32 %v6289_v53, %v5626_v56  ;;  %v2351_v8 = vsel %vm615_vm0, %v2337_v21, %v2338_v31  ;;  %v2370_v32 = vrot.slane %v6269_v61, 1  ;;  %v6306_v60 = vsel %vm745_vm1, %v2376_v38, %v2369_v9 }
 0x340   : > { %v2394_v35 = vmul.f32 %v2351_v8, %v5701_v36  ;;  %v6310_v6 = vmul.f32 %v2351_v8, %v5936_v18  ;;  %v2443_v33 = vpack.c.bf16 %v2364_v0, %v2363_v13  ;;  %v2385_v56 = vmul.f32 %v6306_v60, %v5747_v1  ;;  %v4961_v36 = vld [vmem:[%s5350_s16 + $0x148] sm:$0xff]  }
 0x341   : > { %v2433_v42 = vpack.c.bf16 %v2354_v58, %v2353_v5  ;;  %v6317_v40 = vsel %vm745_vm1, %v2369_v9, %v2370_v32  ;;  %v6320_v10 = vadd.f32 %v6251_v44, %v2317_v57  ;;  %v2339_v4 = vrot.slane %v6274_v59, 7  ;;  %v4960_v9 = vld [vmem:[%s5350_s16 + $0x180] sm:$0xff]   ;;  %v4962_v13 = vld [vmem:[%s5350_s16 + $0x108] sm:$0xff]  }
 0x342   : > { %v2436_v63 = vpack.c.bf16 %v2394_v35, %v2393_v54  ;;  %v2386_v18 = vmul.f32 %v6317_v40, %v5749_v2  ;;  %v2355_v21 = vmul.f32 %v2351_v8, %v5672_v14  ;;  %v2318_v1 = vmul.f32 %v5028_v48, %v6239_v30  ;;  %v4963_v58 = vld [vmem:[%s5350_s16 + $0x1c8] sm:$0xff]  }
 0x343   : > { %3085 = vmatmul.mubr.bf16.vlgmr.msra.gmra.mrb[36].mxu1 %v2433_v42  ;;  %v2340_v3 = vrot.slane %v6320_v10, 7  ;;  %v2350_v34 = vsel %vm615_vm0, %v2338_v31, %v2339_v4  ;;  %v2365_v57 = vmul.f32 %v6320_v10, %v5687_v22  ;;  %v2371_v43 = vrot.slane %v6274_v59, 1  ;;  %v4965_v22 = vld [vmem:[%s5350_s16 + $0x150] sm:$0xff]  }
 0x344   : > { %3149 = vmatprep.mubr.bf16.mxu0 %v2436_v63  ;;  %4364 = vmatpush3.bf16.msra.mxu1 %v4958_v62  ;;  %v2435_v2 = vpack.c.bf16 %v2386_v18, %v2385_v56  ;;  %v2395_v14 = vmul.f32 %v2350_v34, %v5775_v39  ;;  %v6337_v30 = vmul.f32 %v2350_v34, %v5938_v47  ;;  %v2372_v54 = vrot.slane %v6320_v10, 1  ;;  %v4969_v63 = vld [vmem:[%s5350_s16 + $0x158] sm:$0xff]  }
 0x345   : > { %3092 = vmatprep.mubr.bf16.mxu1 %v2443_v33  ;;  %v6344_v31 = vsel %vm615_vm0, %v2339_v4, %v2340_v3  ;;  %4365 = vmatprep.subr.bf16.mxu1 %v4961_v36  ;;  %v2356_v0 = vmul.f32 %v2350_v34, %v5674_v15  ;;  %v6349_v39 = vadd.f32 %v6251_v44, %v2318_v1  ;;  %v4964_v15 = vld [vmem:[%s5350_s16 + $0x188] sm:$0xff]  }
 0x346   : > { %3150 = vmatmul.mubr.bf16.vlgmr.msra.gmra.mrb[44].mxu0 %v2435_v2  ;;  %v2396_v47 = vmul.f32 %v6344_v31, %v5777_v41  ;;  %v6355_v48 = vsel %vm745_vm1, %v2371_v43, %v2372_v54  ;;  %v6359_v5 = vsel %vm745_vm1, %v2370_v32, %v2371_v43  ;;  %v2319_v8 = vmul.f32 %v5030_v11, %v6241_v52  ;;  %v4966_v32 = vld [vmem:[%s5350_s16 + $0x110] sm:$0xff]  }
 0x347   : > { %4404 = vmatpush3.bf16.msra.mxu0 %v4960_v9  ;;  %v2442_v35 = vpack.c.bf16 %v2356_v0, %v2355_v21  ;;  %v2366_v62 = vmul.f32 %v6349_v39, %v5689_v23  ;;  %v2387_v41 = vmul.f32 %v6359_v5, %v5823_v25  ;;  %v2388_v33 = vmul.f32 %v6355_v48, %v5825_v26  ;;  %v4967_v25 = vld [vmem:[%s5350_s16 + $0x1d0] sm:$0xff]  }
 0x348   : > { %v2445_v56 = vpack.c.bf16 %v2396_v47, %v2395_v14  ;;  %4366 = vmatpush3.bf16.msra.mxu1 %v4962_v13  ;;  %4405 = vmatprep.subr.bf16.mxu0 %v4963_v58  ;;  %v6371_v52 = vadd.f32 %v6251_v44, %v2319_v8  ;;  %v2341_v42 = vrot.slane %v6349_v39, 7  ;;  %v2357_v4 = vmul.f32 %v6344_v31, %v5725_v51  ;;  %v4968_v11 = vld [vmem:[%s5350_s16 + $0x190] sm:$0xff]   ;;  %v4973_v14 = vld [vmem:[%s5350_s16 + $0x160] sm:$0xff]  }
 0x349   : > { %4367 = vmatprep.subr.bf16.mxu1 %v4965_v22  ;;  %v2452_v23 = vpack.c.bf16 %v2366_v62, %v2365_v57  ;;  %v2444_v36 = vpack.c.bf16 %v2388_v33, %v2387_v41  ;;  %v2368_v26 = vmul.f32 %v6262_v37, %v5764_v20  ;;  %v2373_v18 = vrot.slane %v6349_v39, 1  ;;  %v4971_v57 = vld [vmem:[%s5350_s16 + $0x1d8] sm:$0xff]   ;;  %v6949_v62 = vld [vmem:[#allocation23_spill] sm:$0xff]  ;;  %v6950_v41 = vld [vmem:[#allocation17_spill] sm:$0xff] }
 0x34a   : > { %3157 = vmatprep.mubr.bf16.mxu0 %v2445_v56  ;;  %v2342_v44 = vrot.slane %v6371_v52, 7  ;;  %v6384_v21 = vsel %vm615_vm0, %v2340_v3, %v2341_v42  ;;  %v2367_v51 = vmul.f32 %v6371_v52, %v5762_v19  ;;  %v2374_v1 = vrot.slane %v6371_v52, 1  ;;  %v4970_v3 = vld [vmem:[%s5350_s16 + $0x118] sm:$0xff]   ;;  %v4974_v33 = vld [vmem:[%s5350_s16 + $0x120] sm:$0xff]  }
 0x34b   : > { %4406 = vmatpush3.bf16.msra.mxu0 %v4964_v15  ;;  %3093 = vmatmul.mubr.bf16.gmra.mrb[40].mxu1 %v2442_v35  ;;  %v2397_v20 = vmul.f32 %v6384_v21, %v5833_v49  ;;  %v2358_v34 = vmul.f32 %v6384_v21, %v5727_v46  ;;  %v2380_v9 = vsel %vm745_vm1, %v2372_v54, %v2373_v18  ;;  %v2375_v2 = vrot.slane %v6262_v37, 1  ;;  %v6947_v54 = vld [vmem:[#allocation21_spill] sm:$0xff]  ;;  %v6948_v15 = vld [vmem:[#allocation22_spill] sm:$0xff] }
 0x34c   : > { %4368 = vmatpush3.bf16.msra.mxu1 %v4966_v32  ;;  %3100 = vmatprep.mubr.bf16.mxu1 %v2452_v23  ;;  %v6398_v19 = vsel %vm615_vm0, %v2341_v42, %v2342_v44  ;;  %v2461_v43 = vpack.c.bf16 %v2368_v26, %v2367_v51  ;;  %v2379_v49 = vsel %vm745_vm1, %v2373_v18, %v2374_v1  ;;  %v6954_v51 = vld [vmem:[#allocation19_spill] sm:$0xff] }
 0x34d   : > { %4407 = vmatprep.subr.bf16.mxu0 %v4967_v25  ;;  %v2398_v46 = vmul.f32 %v6398_v19, %v5835_v50  ;;  %4369 = vmatprep.subr.bf16.mxu1 %v4969_v63  ;;  %v2451_v13 = vpack.c.bf16 %v2358_v34, %v2357_v4  ;;  %v2389_v58 = vmul.f32 %v2380_v9, %v5865_v24  ;;  %v4972_v24 = vld [vmem:[%s5350_s16 + $0x198] sm:$0xff]   ;;  %v4975_v4 = vld [vmem:[%s5350_s16 + $0x1e0] sm:$0xff]   ;;  %v6952_v63 = vld [vmem:[#allocation27_spill] sm:$0xff] }
 0x34e   : > { %3158 = vmatmul.mubr.bf16.gmra.mrb[48].mxu0 %v2444_v36  ;;  %v2390_v22 = vmul.f32 %v2379_v49, %v6947_v54  ;;  %v6411_v0 = vmul.f32 %v2380_v9, %v5995_v17  ;;  %v6414_v47 = vmul.f32 %v2379_v49, %v5997_v12  ;;  %v6420_v50 = vsel %vm615_vm0, %v2342_v44, %v2343_v7  ;;  %v6951_v7 = vld [vmem:[#allocation18_spill] sm:$0xff]  ;;  %v6957_v54 = vld [vmem:[#allocation24_spill] sm:$0xff] }
 0x34f   : > { %v2454_v8 = vpack.c.bf16 %v2398_v46, %v2397_v20  ;;  %4408 = vmatpush3.bf16.msra.mxu0 %v4968_v11  ;;  %v2399_v35 = vmul.f32 %v6420_v50, %v6948_v15  ;;  %v2400_v17 = vmul.f32 %v6289_v53, %v6949_v62  ;;  %v6429_v12 = vmul.f32 %v6398_v19, %v6950_v41  ;;  %v4977_v36 = vld [vmem:[%s5350_s16 + $0x168] sm:$0xff]   ;;  %v6955_v11 = vld [vmem:[#allocation20_spill] sm:$0xff] }
 0x350   : > { %4370 = vmatpush3.bf16.msra.mxu1 %v4970_v3  ;;  %4409 = vmatprep.subr.bf16.mxu0 %v4971_v57  ;;  %v2453_v56 = vpack.c.bf16 %v2390_v22, %v2389_v58  ;;  %v2360_v32 = vmul.f32 %v6420_v50, %v6951_v7  ;;  %v6438_v42 = vsel %vm745_vm1, %v2375_v2, %v2376_v38  ;;  %v6953_v44 = vld [vmem:[#allocation26_spill] sm:$0xff]  ;;  %v4981_v22 = vld [vmem:[%s5350_s16 + $0x170] sm:$0xff]  }
 0x351   : > { %3165 = vmatprep.mubr.bf16.mxu0 %v2454_v8  ;;  %4371 = vmatprep.subr.bf16.mxu1 %v4973_v14  ;;  %v2463_v23 = vpack.c.bf16 %v2400_v17, %v2399_v35  ;;  %v6444_v25 = vsel %vm745_vm1, %v2374_v1, %v2375_v2  ;;  %v6448_v26 = vmul.f32 %v6438_v42, %v6952_v63  ;;  %v6956_v3 = vld [vmem:[#allocation30_spill] sm:$0xff]  ;;  %v6959_v35 = vld [vmem:[#allocation33_spill] sm:$0xff] }
 0x352   : > { %v2460_v18 = vpack.c.bf16 %v2360_v32, %v6429_v12  ;;  %v6453_v38 = vmul.f32 %v6444_v25, %v6953_v44  ;;  %v2401_v20 = vmul.f32 %v6317_v40, %v6954_v51  ;;  %v2402_v34 = vmul.f32 %v6359_v5, %v6955_v11  ;;  %v4978_v46 = vld [vmem:[%s5350_s16 + $0x128] sm:$0xff]   ;;  %v6962_v32 = vld [vmem:[#allocation29_spill] sm:$0xff]  ;;  %v4985_v11 = vld [vmem:[%s5350_s16 + $0x178] sm:$0xff]  }
 0x353   : > { %4410 = vmatpush3.bf16.msra.mxu0 %v4972_v24  ;;  %3101 = vmatmul.mubr.bf16.gmra.mrb[44].mxu1 %v2451_v13  ;;  %v6462_v1 = vmul.f32 %v6269_v61, %v5927_v27  ;;  %v6466_v57 = vmul.f32 %v6274_v59, %v6956_v3  ;;  %v2437_v2 = vpack.c.bf16 %v6269_v61, %v6254_v45  ;;  %v4979_v14 = vld [vmem:[%s5350_s16 + $0x1e8] sm:$0xff]   ;;  %v6958_v24 = vld [vmem:[#allocation25_spill] sm:$0xff]  ;;  %v6983_v61 = vld [vmem:[#allocation52_spill] sm:$0xff] }
 0x354   : > { %4372 = vmatpush3.bf16.msra.mxu1 %v4974_v33  ;;  %3108 = vmatprep.mubr.bf16.mxu1 %v2461_v43  ;;  %v2462_v58 = vpack.c.bf16 %v6448_v26, %v6453_v38  ;;  %v2438_v13 = vpack.c.bf16 %v2402_v34, %v2401_v20  ;;  %v6476_v27 = vmul.f32 %v6355_v48, %v6957_v54  ;;  %v6960_v17 = vld [vmem:[#allocation34_spill] sm:$0xff]  ;;  %v6961_v33 = vld [vmem:[#allocation28_spill] sm:$0xff]  ;;  %v4982_v26 = vld [vmem:[%s5350_s16 + $0x130] sm:$0xff]  }
 0x355   : > { %4411 = vmatprep.subr.bf16.mxu0 %v4975_v4  ;;  %4373 = vmatprep.subr.bf16.mxu1 %v4977_v36  ;;  %v2440_v8 = vpack.c.bf16 %v6466_v57, %v6462_v1  ;;  %v6482_v43 = vmul.f32 %v2380_v9, %v6958_v24  ;;  %v2439_v15 = vpack.c.bf16 %v6337_v30, %v6310_v6  ;;  %v4980_v7 = vld [vmem:[%s5350_s16 + $0x1a8] sm:$0xff]   ;;  %v6963_v36 = vld [vmem:[#allocation35_spill] sm:$0xff]  ;;  %v6965_v38 = vld [vmem:[#allocation37_spill] sm:$0xff] }
 0x356   : > { %3166 = vmatmul.mubr.bf16.gmra.mrb[52].mxu0 %v2453_v56  ;;  %v6488_v62 = vmul.f32 %v6320_v10, %v6959_v35  ;;  %v6492_v41 = vmul.f32 %v6349_v39, %v6960_v17  ;;  %v2446_v12 = vpack.c.bf16 %v6320_v10, %v6274_v59  ;;  %v6497_v9 = vmul.f32 %v2379_v49, %v6961_v33  ;;  %v4983_v20 = vld [vmem:[%s5350_s16 + $0x1f0] sm:$0xff]   ;;  %v6966_v34 = vld [vmem:[#allocation38_spill] sm:$0xff]  ;;  %v6969_v54 = vld [vmem:[#allocation41_spill] sm:$0xff] }
 0x357   : > { %3173 = vmatprep.mubr.bf16.mxu0 %v2463_v23  ;;  %4412 = vmatpush3.bf16.msra.mxu0 %v4976_v29  ;;  %v2447_v56 = vpack.c.bf16 %v6482_v43, %v6476_v27  ;;  %v6504_v4 = vmul.f32 %v6444_v25, %v6962_v32  ;;  %v6508_v63 = vmul.f32 %v6344_v31, %v6963_v36  ;;  %v6964_v23 = vld [vmem:[#allocation36_spill] sm:$0xff]  ;;  %v6967_v1 = vld [vmem:[#allocation31_spill] sm:$0xff]  ;;  %v4989_v32 = vld [vmem:[%s5350_s16 + $0x200] sm:$0xff]  }
 0x358   : > { %4374 = vmatpush3.bf16.msra.mxu1 %v4978_v46  ;;  %4413 = vmatprep.subr.bf16.mxu0 %v4979_v14  ;;  %v2449_v49 = vpack.c.bf16 %v6492_v41, %v6488_v62  ;;  %v6515_v44 = vmul.f32 %v6384_v21, %v6964_v23  ;;  %v6519_v51 = vmul.f32 %v6371_v52, %v6965_v38  ;;  %v6968_v46 = vld [vmem:[#allocation32_spill] sm:$0xff]  ;;  %v4984_v43 = vld [vmem:[%s5350_s16 + $0x1b0] sm:$0xff]   ;;  %v4993_v6 = vld [vmem:[%s5350_s16 + $0x220] sm:$0xff]  }
 0x359   : > { %4375 = vmatprep.subr.bf16.mxu1 %v4981_v22  ;;  %v2456_v31 = vpack.c.bf16 %v6504_v4, %v6497_v9  ;;  %v6527_v29 = vmul.f32 %v6262_v37, %v6966_v34  ;;  %v2455_v21 = vpack.c.bf16 %v6371_v52, %v6349_v39  ;;  %v6533_v3 = vmul.f32 %v6438_v42, %v6967_v1  ;;  %v6970_v22 = vld [vmem:[#allocation42_spill] sm:$0xff]  ;;  %v6971_v62 = vld [vmem:[#allocation43_spill] sm:$0xff]  ;;  %v6972_v41 = vld [vmem:[#allocation44_spill] sm:$0xff] }
 0x35a   : > { %v2448_v57 = vpack.c.bf16 %v6515_v44, %v6508_v63  ;;  %v6539_v14 = vmul.f32 %v6306_v60, %v6968_v46  ;;  %v6543_v27 = vmul.f32 %v6398_v19, %v6969_v54  ;;  %v6547_v24 = vmul.f32 %v6420_v50, %v6970_v22  ;;  %v4986_v19 = vld [vmem:[%s5350_s16 + $0x138] sm:$0xff]   ;;  %v6973_v36 = vld [vmem:[#allocation47_spill] sm:$0xff]  ;;  %v6978_v34 = vld [vmem:[#allocation46_spill] sm:$0xff] }
 0x35b   : > { %4414 = vmatpush3.bf16.msra.mxu0 %v4980_v7  ;;  %3109 = vmatmul.mubr.bf16.gmra.mrb[48].mxu1 %v2460_v18  ;;  %v2458_v35 = vpack.c.bf16 %v6527_v29, %v6519_v51  ;;  %v6554_v17 = vmul.f32 %v6257_v28, %v6971_v62  ;;  %v6558_v33 = vmul.f32 %v6254_v45, %v6972_v41  ;;  %v4987_v50 = vld [vmem:[%s5350_s16 + $0x1f8] sm:$0xff]   ;;  %v6975_v23 = vld [vmem:[#allocation39_spill] sm:$0xff]  ;;  %v6979_v29 = vld [vmem:[#allocation49_spill] sm:$0xff] }
 0x35c   : > { %4376 = vmatpush3.bf16.msra.mxu1 %v4982_v26  ;;  %3214 = vmatprep.mubr.bf16.mxu1 %v2438_v13  ;;  %v2465_v9 = vpack.c.bf16 %v6539_v14, %v6533_v3  ;;  %v2457_v18 = vpack.c.bf16 %v6547_v24, %v6543_v27  ;;  %v2464_v7 = vpack.c.bf16 %v6257_v28, %v6262_v37  ;;  %v6974_v63 = vld [vmem:[#allocation48_spill] sm:$0xff]  ;;  %v6980_v1 = vld [vmem:[#allocation50_spill] sm:$0xff]  ;;  %v6982_v14 = vld [vmem:[#allocation51_spill] sm:$0xff] }
 0x35d   : > { %4415 = vmatprep.subr.bf16.mxu0 %v4983_v20  ;;  %4377 = vmatprep.subr.bf16.mxu1 %v4985_v11  ;;  %v2467_v4 = vpack.c.bf16 %v6558_v33, %v6554_v17  ;;  %v6573_v13 = vmul.f32 %v6289_v53, %v6973_v36  ;;  %v6577_v26 = vmul.f32 %v6280_v55, %v6974_v63  ;;  %v6976_v38 = vld [vmem:[#allocation40_spill] sm:$0xff]  ;;  %v6977_v11 = vld [vmem:[#allocation45_spill] sm:$0xff]  ;;  %v4990_v3 = vld [vmem:[%s5350_s16 + $0x208] sm:$0xff]  }
 0x35e   : > { %3174 = vmatmul.mubr.bf16.gmra.mrb[56].mxu0 %v2462_v58  ;;  %v6581_v44 = vmul.f32 %v6359_v5, %v6975_v23  ;;  %v2426_v51 = vmul.f32 %v6355_v48, %v6976_v38  ;;  %v2450_v20 = vpack.c.bf16 %v6414_v47, %v6411_v0  ;;  %v6589_v53 = vmul.f32 %v6444_v25, %v6977_v11  ;;  %v4988_v55 = vld [vmem:[%s5350_s16 + $0x1b8] sm:$0xff]   ;;  %v6984_v30 = vld [vmem:[#allocation53_spill] sm:$0xff]  ;;  %v4994_v59 = vld [vmem:[%s5350_s16 + $0x228] sm:$0xff]  }
 0x35f   : > { %4416 = vmatpush3.bf16.msra.mxu0 %v4984_v43  ;;  %3279 = vmatprep.mubr.bf16.mxu0 %v2440_v8  ;;  %v2466_v58 = vpack.c.bf16 %v6577_v26, %v6573_v13  ;;  %v6596_v5 = vmul.f32 %v6438_v42, %v6978_v34  ;;  %v6600_v48 = vmul.f32 %v6306_v60, %v6979_v29  ;;  %v4991_v60 = vld [vmem:[%s5350_s16 + $0x210] sm:$0xff]   ;;  %v4992_v45 = vld [vmem:[%s5350_s16 + $0x218] sm:$0xff]   ;;  %v6985_v10 = vld [vmem:[#allocation54_spill] sm:$0xff] }
 0x360   : > { %4378 = vmatpush3.bf16.msra.mxu1 %v4986_v19  ;;  %4417 = vmatprep.subr.bf16.mxu0 %v4987_v50  ;;  %v2441_v25 = vpack.c.bf16 %v2426_v51, %v6581_v44  ;;  %v6605_v8 = vmul.f32 %v6317_v40, %v6980_v1  ;;  %v6981_v40 = vmov 0.0|0.0   ;;  %v6987_v39 = vld [vmem:[#allocation56_spill] sm:$0xff]  ;;  %v6988_v52 = vld [vmem:[#allocation57_spill] sm:$0xff]  ;;  %v6990_v28 = vld [vmem:[#allocation58_spill] sm:$0xff] }
 0x361   : > { %4583 = vmatprep.subr.bf16.mxu1 %v4989_v32  ;;  %v2459_v46 = vpack.c.bf16 %v6596_v5, %v6589_v53  ;;  %v3989_v0 = vld [vmem:[%s569_s15] ss:$0 sm:$0xff] }
 0x362   : > { %v2468_v42 = vpack.c.bf16 %v6605_v8, %v6600_v48 }
 0x363   : > { %4418 = vmatpush3.bf16.msra.mxu0 %v4988_v55  ;;  %3215 = vmatmul.mubr.bf16.vlgmr.msra.gmra.mrb[52].mxu1 %v2437_v2  ;;  %v4995_v2 = vld [vmem:[%s5350_s16 + $0x230] sm:$0xff]  }
 0x364   : > { %4584 = vmatpush3.bf16.msra.mxu1 %v4989_v32  ;;  %3222 = vmatprep.mubr.bf16.mxu1 %v2447_v56  ;;  %v6989_v56 = vmov 0.0  }
 0x365   : > { %4585 = vmatprep.subr.bf16.mxu1 %v4990_v3  ;;  %4725 = vmatprep.subr.bf16.mxu0 %v6981_v40 }
 0x366   : > { %3280 = vmatmul.mubr.bf16.vlgmr.msra.gmra.mrb[60].mxu0 %v2439_v15  ;;  %v6986_v15 = vld [vmem:[#allocation55_spill] sm:$0xff] }
 0x367   : > { %3287 = vmatprep.mubr.bf16.mxu0 %v2449_v49  ;;  %4727 = vmatpush3.bf16.msra.mxu0 %v6982_v14 }
 0x368   : > { %4586 = vmatpush3.bf16.msra.mxu1 %v4990_v3  ;;  %4728 = vmatprep.subr.bf16.mxu0 %v6981_v40 }
 0x369   : > { %4587 = vmatprep.subr.bf16.mxu1 %v4991_v60 }
 0x36b   : > { %3223 = vmatmul.mubr.bf16.gmra.mrb[56].mxu1 %v2446_v12  ;;  %4730 = vmatpush3.bf16.msra.mxu0 %v6983_v61  ;;  %v4996_v12 = vld [vmem:[%s5350_s16 + $0x238] sm:$0xff]   ;;  %s5077_s16 = sshll.u32 %s5173_s21, 4  ;;  %s5078_s16 = int_to_ptr.vmem [resolvable:$false] %s5077_s16 }
 0x36c   : > { %4588 = vmatpush3.bf16.msra.mxu1 %v4991_v60  ;;  %3230 = vmatprep.mubr.bf16.mxu1 %v2456_v31  ;;  %s5079_s19 = scalar_lea.vmem %s5078_s16, 2048 }
 0x36d   : > { %4589 = vmatprep.subr.bf16.mxu1 %v4992_v45  ;;  %4731 = vmatprep.subr.bf16.mxu0 %v6981_v40 }
 0x36e   : > { %3288 = vmatmul.mubr.bf16.gmra.mrb[64].mxu0 %v2448_v57 }
 0x36f   : > { %3295 = vmatprep.mubr.bf16.mxu0 %v2458_v35  ;;  %4733 = vmatpush3.bf16.msra.mxu0 %v6984_v30 }
 0x370   : > { %4590 = vmatpush3.bf16.msra.mxu1 %v4992_v45  ;;  %4734 = vmatprep.subr.bf16.mxu0 %v6981_v40 }
 0x371   : > { %4591 = vmatprep.subr.bf16.mxu1 %v4993_v6 }
 0x373   : > { %3231 = vmatmul.mubr.bf16.gmra.mrb[60].mxu1 %v2455_v21  ;;  %4736 = vmatpush3.bf16.msra.mxu0 %v6985_v10 }
 0x374   : > { %4592 = vmatpush3.bf16.msra.mxu1 %v4993_v6  ;;  %3238 = vmatprep.mubr.bf16.mxu1 %v2465_v9 }
 0x375   : > { %4593 = vmatprep.subr.bf16.mxu1 %v4994_v59  ;;  %4737 = vmatprep.subr.bf16.mxu0 %v6981_v40 }
 0x376   : > { %3296 = vmatmul.mubr.bf16.gmra.mrb[68].mxu0 %v2457_v18 }
 0x377   : > { %3303 = vmatprep.mubr.bf16.mxu0 %v2467_v4  ;;  %4739 = vmatpush3.bf16.msra.mxu0 %v6986_v15 }
 0x378   : > { %4594 = vmatpush3.bf16.msra.mxu1 %v4994_v59  ;;  %4740 = vmatprep.subr.bf16.mxu0 %v6981_v40 }
 0x379   : > { %4595 = vmatprep.subr.bf16.mxu1 %v4995_v2 }
 0x37b   : > { %3239 = vmatmul.mubr.bf16.gmra.mrb[64].mxu1 %v2464_v7  ;;  %4742 = vmatpush3.bf16.msra.mxu0 %v6987_v39 }
 0x37c   : > { %4596 = vmatpush3.bf16.msra.mxu1 %v4995_v2  ;;  %4599 = vmatprep.mubr.bf16.mxu1 %v2441_v25 }
 0x37d   : > { %4597 = vmatprep.subr.bf16.mxu1 %v4996_v12  ;;  %4743 = vmatprep.subr.bf16.mxu0 %v6981_v40 }
 0x37e   : > { %3304 = vmatmul.mubr.bf16.gmra.mrb[72].mxu0 %v2466_v58 }
 0x37f   : > { %4745 = vmatpush3.bf16.msra.mxu0 %v6988_v52  ;;  %4639 = vmatprep.mubr.msk.f32.mxu0 %vm5171_vm2, %v6989_v56 }
 0x380   : > { %4598 = vmatpush3.bf16.msra.mxu1 %v4996_v12  ;;  %4746 = vmatprep.subr.bf16.mxu0 %v6981_v40 }
 0x381   : > { %4749 = vmatprep.subr.bf16.mxu1 %v6981_v40 }
 0x383   : > { %4600 = vmatmul.mubr.bf16.vlgmr.msra.gmra.mrb[68].mxu1 %v2450_v20  ;;  %4748 = vmatpush3.bf16.msra.mxu0 %v6990_v28 }
 0x384   : > { %4603 = vmatprep.mubr.bf16.mxu1 %v2459_v46  ;;  %4751 = vmatpush3.bf16.msra.mxu1 %v6982_v14 }
 0x385   : > { %4752 = vmatprep.subr.bf16.mxu1 %v6981_v40 }
 0x388   : > { %4754 = vmatpush3.bf16.msra.mxu1 %v6983_v61 }
 0x389   : > { %4755 = vmatprep.subr.bf16.mxu1 %v6981_v40 }
 0x38b   : > { %4604 = vmatmul.mubr.bf16.gmra.mrb[72].mxu1 %v2468_v42 }
 0x38c   : > { %4757 = vmatpush3.bf16.msra.mxu1 %v6984_v30  ;;  %4674 = vmatprep.mubr.msk.f32.mxu1 %vm5171_vm2, %v6989_v56 }
 0x38d   : > { %4758 = vmatprep.subr.bf16.mxu1 %v6981_v40 }
 0x390   : > { %4760 = vmatpush3.bf16.msra.mxu1 %v6985_v10 }
 0x391   : > { %4761 = vmatprep.subr.bf16.mxu1 %v6981_v40 }
 0x394   : > { %4763 = vmatpush3.bf16.msra.mxu1 %v6986_v15 }
 0x395   : > { %4764 = vmatprep.subr.bf16.mxu1 %v6981_v40 }
 0x398   : > { %4766 = vmatpush3.bf16.msra.mxu1 %v6987_v39 }
 0x399   : > { %4767 = vmatprep.subr.bf16.mxu1 %v6981_v40 }
 0x39c   : > { %4769 = vmatpush3.bf16.msra.mxu1 %v6988_v52 }
 0x39d   : > { %4770 = vmatprep.subr.bf16.mxu1 %v6981_v40 }
 0x3a0   : > { %4772 = vmatpush3.bf16.msra.mxu1 %v6990_v28 }
 0x416   : > { %v4299_v37 = vpop.f32.mrb[36].mxu1 }
 0x417   : > { %v4300_v47 = vpop.f32.mrb[37].mxu1 }
 0x418   : > { %v4301_v49 = vadd.f32 %v4300_v47, %v4299_v37  ;;  %v4302_v31 = vpop.f32.mrb[38].mxu1 }
 0x419   : > { %v4339_v21 = vpop.f32.mrb[44].mxu0  ;;  %v4303_v57 = vpop.f32.mrb[39].mxu1 }
 0x41a   : > { %v3087_v54 = vadd.f32 %v4301_v49, %v3989_v0  ;;  %v4340_v27 = vpop.f32.mrb[45].mxu0  ;;  %v4304_v22 = vadd.f32 %v4303_v57, %v4302_v31 }
 0x41b   : > { %v4341_v24 = vadd.f32 %v4340_v27, %v4339_v21  ;;  %v4342_v43 = vpop.f32.mrb[46].mxu0 }
 0x41c   : > { %v3090_v35 = vadd.f32 %v4304_v22, %v3989_v0  ;;  %v4343_v62 = vpop.f32.mrb[47].mxu0 }
 0x41d   : > { %v3152_v17 = vadd.f32 %v4341_v24, %v3087_v54  ;;  %v4344_v41 = vadd.f32 %v4343_v62, %v4342_v43 }
 0x41e   : > { %v4305_v33 = vpop.f32.mrb[40].mxu1 }
 0x41f   : > { %v3155_v19 = vadd.f32 %v4344_v41, %v3090_v35  ;;  %v4306_v50 = vpop.f32.mrb[41].mxu1 }
 0x420   : > { %v4307_v9 = vadd.f32 %v4306_v50, %v4305_v33  ;;  %v4308_v18 = vpop.f32.mrb[42].mxu1 }
 0x421   : > { %v4345_v7 = vpop.f32.mrb[48].mxu0  ;;  %v4309_v32 = vpop.f32.mrb[43].mxu1 }
 0x422   : > { %v3095_v4 = vadd.f32 %v4307_v9, %v3989_v0  ;;  %v4346_v36 = vpop.f32.mrb[49].mxu0  ;;  %v4310_v13 = vadd.f32 %v4309_v32, %v4308_v18 }
 0x423   : > { %v4347_v63 = vadd.f32 %v4346_v36, %v4345_v7  ;;  %v4348_v26 = vpop.f32.mrb[50].mxu0 }
 0x424   : > { %v3098_v23 = vadd.f32 %v4310_v13, %v3989_v0  ;;  %v4349_v44 = vpop.f32.mrb[51].mxu0 }
 0x425   : > { %v3160_v38 = vadd.f32 %v4347_v63, %v3095_v4  ;;  %v4350_v51 = vadd.f32 %v4349_v44, %v4348_v26 }
 0x426   : > { %v4311_v20 = vpop.f32.mrb[44].mxu1 }
 0x427   : > { %v3163_v11 = vadd.f32 %v4350_v51, %v3098_v23  ;;  %v4312_v53 = vpop.f32.mrb[45].mxu1 }
 0x428   : > { %v4313_v55 = vadd.f32 %v4312_v53, %v4311_v20  ;;  %v4314_v58 = vpop.f32.mrb[46].mxu1 }
 0x429   : > { %v4351_v34 = vpop.f32.mrb[52].mxu0  ;;  %v4315_v5 = vpop.f32.mrb[47].mxu1 }
 0x42a   : > { %v3103_v29 = vadd.f32 %v4313_v55, %v3989_v0  ;;  %v4352_v48 = vpop.f32.mrb[53].mxu0  ;;  %v4316_v25 = vadd.f32 %v4315_v5, %v4314_v58 }
 0x42b   : > { %v4353_v1 = vadd.f32 %v4352_v48, %v4351_v34  ;;  %v4354_v8 = vpop.f32.mrb[54].mxu0 }
 0x42c   : > { %v3106_v3 = vadd.f32 %v4316_v25, %v3989_v0  ;;  %v4355_v46 = vpop.f32.mrb[55].mxu0 }
 0x42d   : > { %v3168_v42 = vadd.f32 %v4353_v1, %v3103_v29  ;;  %v4356_v60 = vadd.f32 %v4355_v46, %v4354_v8 }
 0x42e   : > { %v4317_v40 = vpop.f32.mrb[48].mxu1 }
 0x42f   : > { %v3171_v14 = vadd.f32 %v4356_v60, %v3106_v3  ;;  %v4318_v45 = vpop.f32.mrb[49].mxu1 }
 0x430   : > { %v4319_v61 = vadd.f32 %v4318_v45, %v4317_v40  ;;  %v4320_v6 = vpop.f32.mrb[50].mxu1 }
 0x431   : > { %v4357_v30 = vpop.f32.mrb[56].mxu0  ;;  %v4321_v59 = vpop.f32.mrb[51].mxu1 }
 0x432   : > { %v3111_v10 = vadd.f32 %v4319_v61, %v3989_v0  ;;  %v4358_v2 = vpop.f32.mrb[57].mxu0  ;;  %v4322_v15 = vadd.f32 %v4321_v59, %v4320_v6 }
 0x433   : > { %v4359_v12 = vadd.f32 %v4358_v2, %v4357_v30  ;;  %v4360_v39 = vpop.f32.mrb[58].mxu0 }
 0x434   : > { %v3114_v52 = vadd.f32 %v4322_v15, %v3989_v0  ;;  %v4361_v56 = vpop.f32.mrb[59].mxu0 }
 0x435   : > { %v3176_v28 = vadd.f32 %v4359_v12, %v3111_v10  ;;  %v4362_v37 = vadd.f32 %v4361_v56, %v4360_v39 }
 0x436   : > { %v4379_v47 = vpop.f32.mrb[52].mxu1 }
 0x437   : > { %v3179_v49 = vadd.f32 %v4362_v37, %v3114_v52  ;;  %v4380_v31 = vpop.f32.mrb[53].mxu1 }
 0x438   : > { %v4381_v21 = vadd.f32 %v4380_v31, %v4379_v47  ;;  %v4382_v57 = vpop.f32.mrb[54].mxu1 }
 0x439   : > { %v4419_v54 = vpop.f32.mrb[60].mxu0  ;;  %v4383_v27 = vpop.f32.mrb[55].mxu1 }
 0x43a   : > { %v3217_v22 = vadd.f32 %v4381_v21, %v3152_v17  ;;  %v4420_v24 = vpop.f32.mrb[61].mxu0  ;;  %v4384_v43 = vadd.f32 %v4383_v27, %v4382_v57 }
 0x43b   : > { %v4421_v35 = vadd.f32 %v4420_v24, %v4419_v54  ;;  %v4422_v62 = vpop.f32.mrb[62].mxu0 }
 0x43c   : > { %v3220_v41 = vadd.f32 %v4384_v43, %v3155_v19  ;;  %v4423_v33 = vpop.f32.mrb[63].mxu0 }
 0x43d   : > { %v4424_v50 = vadd.f32 %v4423_v33, %v4422_v62  ;;  %v3282_v9 = vadd.f32 %v4421_v35, %v3217_v22 }
 0x43e   : > { %v4385_v0 = vpop.f32.mrb[56].mxu1 }
 0x43f   : > { %v4386_v18 = vpop.f32.mrb[57].mxu1  ;;  %v3285_v7 = vadd.f32 %v4424_v50, %v3220_v41 }
 0x440   : > { %v4387_v32 = vadd.f32 %v4386_v18, %v4385_v0  ;;  %v4388_v4 = vpop.f32.mrb[58].mxu1 }
 0x441   : > { %v4425_v36 = vpop.f32.mrb[64].mxu0  ;;  %v4389_v13 = vpop.f32.mrb[59].mxu1 }
 0x442   : > { %v3225_v63 = vadd.f32 %v4387_v32, %v3160_v38  ;;  %v4426_v26 = vpop.f32.mrb[65].mxu0  ;;  %v4390_v23 = vadd.f32 %v4389_v13, %v4388_v4 }
 0x443   : > { %v4427_v44 = vadd.f32 %v4426_v26, %v4425_v36  ;;  %v4428_v17 = vpop.f32.mrb[66].mxu0 }
 0x444   : > { %v3228_v51 = vadd.f32 %v4390_v23, %v3163_v11  ;;  %v4429_v20 = vpop.f32.mrb[67].mxu0 }
 0x445   : > { %v4430_v53 = vadd.f32 %v4429_v20, %v4428_v17  ;;  %v3290_v55 = vadd.f32 %v4427_v44, %v3225_v63 }
 0x446   : > { %v4391_v19 = vpop.f32.mrb[60].mxu1 }
 0x447   : > { %v4392_v58 = vpop.f32.mrb[61].mxu1  ;;  %v3293_v34 = vadd.f32 %v4430_v53, %v3228_v51 }
 0x448   : > { %v4393_v5 = vadd.f32 %v4392_v58, %v4391_v19  ;;  %v4394_v29 = vpop.f32.mrb[62].mxu1 }
 0x449   : > { %v4431_v48 = vpop.f32.mrb[68].mxu0  ;;  %v4395_v25 = vpop.f32.mrb[63].mxu1 }
 0x44a   : > { %v3233_v1 = vadd.f32 %v4393_v5, %v3168_v42  ;;  %v4432_v8 = vpop.f32.mrb[69].mxu0  ;;  %v4396_v3 = vadd.f32 %v4395_v25, %v4394_v29 }
 0x44b   : > { %v4433_v46 = vadd.f32 %v4432_v8, %v4431_v48  ;;  %v4434_v38 = vpop.f32.mrb[70].mxu0 }
 0x44c   : > { %v3236_v60 = vadd.f32 %v4396_v3, %v3171_v14  ;;  %v4435_v40 = vpop.f32.mrb[71].mxu0 }
 0x44d   : > { %v4436_v45 = vadd.f32 %v4435_v40, %v4434_v38  ;;  %v3298_v61 = vadd.f32 %v4433_v46, %v3233_v1 }
 0x44e   : > { %v4397_v11 = vpop.f32.mrb[64].mxu1 }
 0x44f   : > { %v4398_v6 = vpop.f32.mrb[65].mxu1  ;;  %v3301_v30 = vadd.f32 %v4436_v45, %v3236_v60 }
 0x450   : > { %v4399_v59 = vadd.f32 %v4398_v6, %v4397_v11  ;;  %v4400_v10 = vpop.f32.mrb[66].mxu1 }
 0x451   : > { %v4437_v2 = vpop.f32.mrb[72].mxu0  ;;  %v4401_v15 = vpop.f32.mrb[67].mxu1 }
 0x452   : > { %v3241_v12 = vadd.f32 %v4399_v59, %v3176_v28  ;;  %v4438_v39 = vpop.f32.mrb[73].mxu0  ;;  %v4402_v52 = vadd.f32 %v4401_v15, %v4400_v10 }
 0x453   : > { %v4439_v56 = vadd.f32 %v4438_v39, %v4437_v2  ;;  %v4440_v42 = vpop.f32.mrb[74].mxu0 }
 0x454   : > { %v3244_v37 = vadd.f32 %v4402_v52, %v3179_v49  ;;  %v4441_v47 = vpop.f32.mrb[75].mxu0 }
 0x455   : > { %v4442_v31 = vadd.f32 %v4441_v47, %v4440_v42  ;;  %v3306_v21 = vadd.f32 %v4439_v56, %v3241_v12 }
 0x456   : > { %v4601_v14 = vpop.f32.mrb[68].mxu1 }
 0x457   : > { %v6677_v57 = vadd.f32 %v4601_v14, %v3290_v55  ;;  %v3346_v54 = vpop.f32.mrb[69].mxu1  ;;  %v3309_v27 = vadd.f32 %v4442_v31, %v3244_v37  ;;  %v3556_v37 = vld [vmem:[%s572_s30] sm:$0x1]  ;;  %s3673_s30 = sshll.u32 %s5364_s2, 4  ;;  %s6734_s30 = int_to_ptr.vmem [resolvable:$true] %s3673_s30 }
 0x458   : > { %v6679_v22 = vadd.f32 %v3346_v54, %v3282_v9  ;;  %v4602_v24 = vpop.f32.mrb[70].mxu1  ;;  %s5073_s10 = scalar_lea.vmem %s6734_s30, 1024  ;;  %p5080_p5 = scmp.lt.s32.totalorder %s6734_s30, %s5078_s16 }
 0x459   : > { %v6681_v43 = vadd.f32 %v4602_v24, %v3293_v34  ;;  %v3349_v35 = vpop.f32.mrb[71].mxu1  ;;  %v3392_v33 = vmul.f32 %v6677_v57, %v6677_v57  ;;  %p5074_p1 = scmp.ne.s32.totalorder %s6734_s30, %s5073_s10  ;;  %p5081_p6 = scmp.lt.s32.totalorder %s5079_s19, %s5073_s10 }
 0x45a   : > { %v3350_v28 = vadd.f32 %v3349_v35, %v3285_v7  ;;  %v3390_v62 = vmul.f32 %v6679_v22, %v6679_v22 }
 0x45b   : > { %v3393_v4 = vmul.f32 %v6681_v43, %v6681_v43  ;;  %p5075_p2 = pnand %p5074_p1, %p5290_p3  ;;  %p5082_p7 = por %p5081_p6, %p5080_p5 }
 0x45c   : > { %v3377_v49 = vadd.f32 %v3350_v28, %v6679_v22  ;;  %v3391_v41 = vmul.f32 %v3350_v28, %v3350_v28 }
 0x45d   : > { %p5076_p4 = pneg %p5075_p2 }
 0x45e   : > { %v3378_v50 = vadd.f32 %v3377_v49, %v6677_v57  ;;  %v3398_v0 = vadd.f32 %v3391_v41, %v3390_v62  ;;  %v4605_v18 = vpop.f32.mrb[72].mxu1 }
 0x45f   : > { %v3371_v9 = vadd.f32 %v4605_v18, %v3306_v21  ;;  %v3362_v32 = vpop.f32.mrb[73].mxu1  ;;  %v3558_v21 = vld [vmem:[%s575_s0] sm:$0x1]  ;;  %s6991_s0 = sld [smem:[#allocation8_spill]]  ;;  %p5083_p8 = pnand %p5082_p7, %p5076_p4 }
 0x460   : > { %v3399_v36 = vadd.f32 %v3398_v0, %v3392_v33  ;;  %v3363_v7 = vadd.f32 %v3362_v32, %v3298_v61  ;;  %v3379_v13 = vadd.f32 %v3378_v50, %v6681_v43  ;;  %v4606_v63 = vpop.f32.mrb[74].mxu1 }
 0x461   : > { %v3374_v26 = vadd.f32 %v4606_v63, %v3309_v27  ;;  %v3365_v23 = vpop.f32.mrb[75].mxu1  ;;  %v3396_v58 = vmul.f32 %v3371_v9, %v3371_v9 }
 0x462   : > { %v3380_v44 = vadd.f32 %v3379_v13, %v3363_v7  ;;  %v3394_v17 = vmul.f32 %v3363_v7, %v3363_v7  ;;  %v3400_v51 = vadd.f32 %v3399_v36, %v3393_v4  ;;  %v3366_v20 = vadd.f32 %v3365_v23, %v3301_v30 }
 0x463   : > { %v3397_v29 = vmul.f32 %v3374_v26, %v3374_v26 }
 0x464   : > { %v3401_v53 = vadd.f32 %v3400_v51, %v3394_v17  ;;  %v3381_v55 = vadd.f32 %v3380_v44, %v3366_v20  ;;  %v3395_v19 = vmul.f32 %v3366_v20, %v3366_v20 }
 0x465   : > { %s4076_s13 = sshll.u32 %s6991_s0, 10 }
 0x466   : > { %v3382_v34 = vadd.f32 %v3381_v55, %v3371_v9  ;;  %v3402_v5 = vadd.f32 %v3401_v53, %v3395_v19  ;;  %s6732_s22 = scalar_lea.hbm %s6994_s28, %s4076_s13 }
 0x468   : > { %v3383_v48 = vadd.f32 %v3382_v34, %v3374_v26  ;;  %v3403_v25 = vadd.f32 %v3402_v5, %v3396_v58 }
 0x46a   : > { %v3384_v1 = vrot.slane %v3383_v48, 4  ;;  %v3404_v8 = vadd.f32 %v3403_v25, %v3397_v29 }
 0x46c   : > { %v3385_v3 = vadd.f32 %v3384_v1, %v3383_v48  ;;  %v3405_v46 = vrot.slane %v3404_v8, 4 }
 0x46e   : > { %v3386_v38 = vrot.slane %v3385_v3, 2  ;;  %v3406_v60 = vadd.f32 %v3405_v46, %v3404_v8 }
 0x470   : > { %v3387_v40 = vadd.f32 %v3386_v38, %v3385_v3  ;;  %v3407_v45 = vrot.slane %v3406_v60, 2 }
 0x472   : > { %v3388_v61 = vrot.slane %v3387_v40, 1  ;;  %v3408_v11 = vadd.f32 %v3407_v45, %v3406_v60 }
 0x474   : > { %v3389_v6 = vadd.f32 %v3388_v61, %v3387_v40  ;;  %v3409_v30 = vrot.slane %v3408_v11, 1 }
 0x476   : > { %4640 = vmatmul.mubr.f32.vlgmr.msra.gmra.mrb[42].mxu0 %v3389_v6  ;;  %v3410_v59 = vadd.f32 %v3409_v30, %v3408_v11 }
 0x478   : > { %4675 = vmatmul.mubr.f32.vlgmr.msra.gmra.mrb[34].mxu1 %v3410_v59  ;;  %v5065_v59 = vld [vmem:[%s5364_s2] sm:$0xff] }
 0x549   : > { %v3477_v10 = vpop.f32.mrb[42].mxu0 }
 0x54a   : > { %v3551_v2 = vmul.f32 %v3477_v10, %v3477_v10  ;;  %v4641_v15 = vpop.f32.mrb[43].mxu0 }
 0x54b   : > { %v3547_v12 = vpop.f32.mrb[34].mxu1 }
 0x54c   : > { %v3552_v39 = vsub.f32 %v3547_v12, %v3551_v2  ;;  %v4676_v52 = vpop.f32.mrb[35].mxu1  ;;  %v5066_v12 = vld [vmem:[%s5364_s2 + $0x8] sm:$0xff] }
 0x54e   : > { %v3553_v56 = vmax.f32 %v3552_v39, 0.0 }
 0x550   : > { %v3554_v42 = vadd.f32 1e-05, %v3553_v56 }
 0x552   : > { %5031 = vrsqrt.f32 %v3554_v42  ;;  %v5067_v42 = vld [vmem:[%s5364_s2 + $0x10] sm:$0xff] }
 0x55c   : > { %v5032_v47 = vpop.eup %5031 }
 0x55d   : > { %v3557_v31 = vmul.f32 %v5032_v47, %v3556_v37 }
 0x55f   : > { %v3559_v14 = vmul.f32 %v3557_v31, %v3477_v10  ;;  %v3564_v54 = vrot.slane %v3557_v31, %v6220_v16 }
 0x561   : > { %v3560_v27 = vsub.f32 %v3558_v21, %v3559_v14  ;;  %v3565_v24 = vmul.f32 %v3564_v54, %v6679_v22  ;;  %v3566_v35 = vmul.f32 %v3564_v54, %v3350_v28  ;;  %v3567_v62 = vmul.f32 %v3564_v54, %v6677_v57  ;;  %v5068_v21 = vld [vmem:[%s5364_s2 + $0x18] sm:$0xff] }
 0x562   : > { %v3568_v49 = vmul.f32 %v3564_v54, %v6681_v43  ;;  %v3569_v33 = vmul.f32 %v3564_v54, %v3363_v7  ;;  %v3570_v50 = vmul.f32 %v3564_v54, %v3366_v20  ;;  %v3571_v0 = vmul.f32 %v3564_v54, %v3371_v9 }
 0x563   : > { %v3577_v41 = vrot.slane %v3560_v27, %v6220_v16  ;;  %v3572_v18 = vmul.f32 %v3564_v54, %v3374_v26 }
 0x565   : > { %v3579_v32 = vadd.f32 %v3577_v41, %v3565_v24  ;;  %v3580_v4 = vadd.f32 %v3577_v41, %v3566_v35  ;;  %v3581_v36 = vadd.f32 %v3577_v41, %v3567_v62  ;;  %v3582_v13 = vadd.f32 %v3577_v41, %v3568_v49  ;;  %v5069_v24 = vld [vmem:[%s5364_s2 + $0x20] sm:$0xff]  ;;  %v5070_v49 = vld [vmem:[%s5364_s2 + $0x28] sm:$0xff] }
 0x566   : > { %v3583_v63 = vadd.f32 %v3577_v41, %v3569_v33  ;;  %v3584_v23 = vadd.f32 %v3577_v41, %v3570_v50  ;;  %v6707_v44 = vadd.f32 %v3577_v41, %v3571_v0  ;;  %v6709_v22 = vadd.f32 %v3577_v41, %v3572_v18  ;;  %v5071_v33 = vld [vmem:[%s5364_s2 + $0x30] sm:$0xff]  ;;  %v5072_v0 = vld [vmem:[%s5364_s2 + $0x38] sm:$0xff] }
 0x567   : > { %v4062_v28 = vmul.f32 -1.442695, %v3579_v32  ;;  %v4063_v57 = vmul.f32 -1.442695, %v3580_v4  ;;  %v4064_v17 = vmul.f32 -1.442695, %v3581_v36 }
 0x568   : > { %v4065_v43 = vmul.f32 -1.442695, %v3582_v13  ;;  %v4066_v16 = vmul.f32 -1.442695, %v3583_v63  ;;  %v4067_v7 = vmul.f32 -1.442695, %v3584_v23 }
 0x569   : > { %5033 = vpow2.f32 %v4062_v28  ;;  %v4068_v9 = vmul.f32 -1.442695, %v6707_v44  ;;  %v4069_v26 = vmul.f32 -1.442695, %v6709_v22 }
 0x56a   : > { %5035 = vpow2.f32 %v4063_v57 }
 0x56b   : > { %5037 = vpow2.f32 %v4064_v17 }
 0x56c   : > { %5039 = vpow2.f32 %v4065_v43 }
 0x56d   : > { %5041 = vpow2.f32 %v4066_v16 }
 0x56e   : > { %5043 = vpow2.f32 %v4067_v7 }
 0x56f   : > { %5045 = vpow2.f32 %v4068_v9 }
 0x570   : > { %5047 = vpow2.f32 %v4069_v26 }
 0x573   : > { %v5034_v51 = vpop.eup %5033 }
 0x574   : > { %v5036_v20 = vpop.eup %5035  ;;  %v3611_v53 = vadd.f32 1.0, %v5034_v51 }
 0x575   : > { %v5038_v55 = vpop.eup %5037  ;;  %v3612_v19 = vadd.f32 1.0, %v5036_v20 }
 0x576   : > { %v5040_v58 = vpop.eup %5039  ;;  %v3613_v34 = vadd.f32 1.0, %v5038_v55  ;;  %5049 = vrcp.f32 %v3611_v53 }
 0x577   : > { %v5042_v5 = vpop.eup %5041  ;;  %v3614_v29 = vadd.f32 1.0, %v5040_v58  ;;  %5051 = vrcp.f32 %v3612_v19 }
 0x578   : > { %v5044_v48 = vpop.eup %5043  ;;  %v3615_v25 = vadd.f32 1.0, %v5042_v5  ;;  %5053 = vrcp.f32 %v3613_v34 }
 0x579   : > { %v5046_v1 = vpop.eup %5045  ;;  %v3616_v8 = vadd.f32 1.0, %v5044_v48  ;;  %5055 = vrcp.f32 %v3614_v29 }
 0x57a   : > { %v5048_v3 = vpop.eup %5047  ;;  %v3617_v46 = vadd.f32 1.0, %v5046_v1  ;;  %5057 = vrcp.f32 %v3615_v25 }
 0x57b   : > { %v3618_v38 = vadd.f32 1.0, %v5048_v3  ;;  %5059 = vrcp.f32 %v3616_v8 }
 0x57c   : > { %5061 = vrcp.f32 %v3617_v46 }
 0x57d   : > { %5063 = vrcp.f32 %v3618_v38 }
 0x580   : > { %v5050_v60 = vpop.eup %5049 }
 0x581   : > { %v5052_v40 = vpop.eup %5051  ;;  %v3635_v45 = vmul.f32 %v5050_v60, %v3579_v32 }
 0x582   : > { %v5054_v61 = vpop.eup %5053  ;;  %v3636_v11 = vmul.f32 %v5052_v40, %v3580_v4 }
 0x583   : > { %v5056_v6 = vpop.eup %5055  ;;  %v3637_v30 = vmul.f32 %v5054_v61, %v3581_v36  ;;  %v3643_v10 = vadd.f32 %v5065_v59, %v3635_v45 }
 0x584   : > { %v5058_v2 = vpop.eup %5057  ;;  %v3638_v15 = vmul.f32 %v5056_v6, %v3582_v13  ;;  %v3644_v39 = vadd.f32 %v5066_v12, %v3636_v11 }
 0x585   : > { %v5060_v52 = vpop.eup %5059  ;;  %v3639_v56 = vmul.f32 %v5058_v2, %v3583_v63  ;;  %v3645_v37 = vadd.f32 %v5067_v42, %v3637_v30  ;;  %3651 = vst [vmem:[%s5364_s2] sm:$0xff] %v3643_v10 }
 0x586   : > { %v5062_v47 = vpop.eup %5061  ;;  %v3640_v31 = vmul.f32 %v5060_v52, %v3584_v23  ;;  %v3646_v14 = vadd.f32 %v5068_v21, %v3638_v15  ;;  %3652 = vst [vmem:[%s5364_s2 + $0x8] sm:$0xff] %v3644_v39 }
 0x587   : > { %v5064_v54 = vpop.eup %5063  ;;  %v3641_v27 = vmul.f32 %v5062_v47, %v6707_v44  ;;  %v3647_v35 = vadd.f32 %v5069_v24, %v3639_v56  ;;  %3653 = vst [vmem:[%s5364_s2 + $0x10] sm:$0xff] %v3645_v37 }
 0x588   : > { %v3642_v62 = vmul.f32 %v5064_v54, %v6709_v22  ;;  %v3648_v41 = vadd.f32 %v5070_v49, %v3640_v31  ;;  %3654 = vst [vmem:[%s5364_s2 + $0x18] sm:$0xff] %v3646_v14 }
 0x589   : > { %v3649_v50 = vadd.f32 %v5071_v33, %v3641_v27  ;;  %3655 = vst [vmem:[%s5364_s2 + $0x20] sm:$0xff] %v3647_v35 }
 0x58a   : > { %v3650_v18 = vadd.f32 %v5072_v0, %v3642_v62  ;;  %3656 = vst [vmem:[%s5364_s2 + $0x28] sm:$0xff] %v3648_v41 }
 0x58b   : > { %3657 = vst [vmem:[%s5364_s2 + $0x30] sm:$0xff] %v3649_v50 }
 0x58c   : > { %3658 = vst [vmem:[%s5364_s2 + $0x38] sm:$0xff] %v3650_v18 }
 0x58d   : > { %5086 = shalt.err (!%p5083_p8)
}
 0x58e   : > { %s5087_s2 = scalar_lea.hbm %s6732_s22, 1024  ;;  %s5091_s14 = scalar_lea.hbm %s6995_s18, 2048 }
 0x58f   : > { %p5088_p10 = scmp.ne.s32.totalorder %s6732_s22, %s5087_s2  ;;  %p5092_p13 = scmp.lt.u32.totalorder %s6732_s22, %s6995_s18 }
 0x590   : > { %p5093_p0 = scmp.lt.u32.totalorder %s5091_s14, %s5087_s2  ;;  %p5095_p2 = scmp.lt.u32.totalorder %s5087_s2, %s6732_s22 }
 0x591   : > { %p5089_p11 = pnand %p5088_p10, %p5290_p3 }
 0x592   : > { %p5094_p1 = por %p5093_p0, %p5092_p13 }
 0x593   : > { %p5090_p12 = pneg %p5089_p11 }
 0x594   : > { %p5096_p4 = por %p5095_p2, %p5094_p1 }
 0x596   : > { %p5097_p5 = pnand %p5096_p4, %p5090_p12 }
 0x598   : > { %5100 = shalt.err (!%p5097_p5)
}
 0x599   : > { %s5174_s13 = smov 128   ;;  %s5175_s23 = smov 8  }
 0x59a   : > { %4774 = dma.vmem_to_hbm [thread:$0]  (%p5290_p3), %s6734_s30, 1024, %s6732_s22, %s6742_s27, %s5174_s13, %s5174_s13, %s5175_s23  }
 0x59b PF: > { %s6997_s26 = sld [smem:[#allocation11_spill]]  ;;  %s6998_s12 = sld [smem:[#allocation5_spill]] }
 0x5a1   : > { %p4780_p6 = scmp.ge.s32.totalorder %s6997_s26, 2  ;;  %s3688_s25 = sand.u32 1, %s6998_s12  }
 0x5a2   : > { %s3689_s10 = scalar_lea.sflag [#allocation3], %s3688_s25 }
 0x5a3   : > { %p4777_p7 = pnand %p4780_p6, %p5300_p9 }
 0x5a5   : > { %5134 = dma.done.wait (!%p4777_p7), %s3689_s10, 1024  }
 0x5a6   : > { %5136 = vsyncadd (!%p4777_p7), %s3689_s10, 4294966272  ;;  %s25_s28 = sadd.s32 1, %s6997_s26   ;;  %s7000_s21 = sld [smem:[#allocation6_spill]] }
 0x5a7   : > { %p22_p8 = scmp.ge.s32.totalorder %s25_s28, 6   ;;  %s7001_s22 = sld [smem:[#allocation7_spill]] }
 0x5a8   : > { %s7002_s23 = sld [smem:[#allocation16_spill]]  ;;  %s7003_s24 = sld [smem:[#allocation9_spill]] }
 0x5a9   : > { %s7004_s25 = sld [smem:[#allocation10_spill]]  ;;  %s7005_s26 = sld [smem:[#allocation12_spill]] }
 0x5aa   : > { %s7006_s27 = sld [smem:[#allocation14_spill]]  ;;  %24 = sbr.rel (!%p22_p8) target bundleno = 11 (0xb), region = 141 }
 0x5b1   :  { %3694 = vsyncpa [#allocation3], 1 }
 0x5b2   :  { %3696 = vsyncpa [#allocation3 + $0x1], 1 }

</bundles_post_ra>
